<compile_context>
chip_gen: v6e
topology: v6e:2x2x1
jax: 0.10.0
libtpu: 0.0.40
codegen_flags: <defaults>
</compile_context>

<pallas_src>
import functools

import jax
import jax.numpy as jnp
from jax import lax
from jax.experimental import pallas as pl
from jax.experimental.pallas import tpu as pltpu


def _vdsr_kernel(xpad_ref, w_in_ref, b_in_ref, w_hid_ref, b_hid_ref,
                 w_out_ref, b_out_ref, o_ref, act_ref, *, H, W, C, n_hidden):
    """Fused forward pass for one batch element.

    xpad_ref : (1, H+2, W+2, 8)  f32  zero-padded input; ch0 = image, ch1..7 = 0
    w_in_ref : (3, 24, C)        bf16 input-layer weights, kw folded into K
    b_in_ref : (1, C)            f32
    w_hid_ref: (3, 3*C, C)       bf16 shared hidden-layer weights
    b_hid_ref: (1, C)            f32
    w_out_ref: (3, 3*C, 8)       bf16 output-layer weights (Cout padded 1->8)
    b_out_ref: (1, 8)            f32  (padded lanes are 0)
    o_ref    : (1, H, W, 8)      f32  channel 0 = final result (+ residual)
    act_ref  : (H+2, W+2, C)     f32  VMEM scratch, zero halo
    """

    def conv3x3(a, w_ref):
        """3x3 'same' conv of a zero-haloed (H+2, W+2, Cin) value.

        Returns the (H*W, Cout) f32 pre-activation (no bias).  kw taps are
        folded into channels -> 3 MXU matmuls with K = 3*Cin; kh taps are
        leading-axis slices (free).
        """
        cin = a.shape[-1]
        cout = w_ref.shape[-1]
        ab = a.astype(jnp.bfloat16)
        p = jnp.concatenate(
            [ab[:, 0:W, :], ab[:, 1:W + 1, :], ab[:, 2:W + 2, :]], axis=-1
        )  # (H+2, W, 3*cin)
        acc = jnp.zeros((H * W, cout), jnp.float32)
        for kh in range(3):
            acc = acc + jnp.dot(
                p[kh:kh + H].reshape(H * W, 3 * cin),
                w_ref[kh],
                preferred_element_type=jnp.float32,
            )
        return acc

    # ---- input layer: 1 (channel-padded to 8) -> 64, ReLU -------------------
    x0 = xpad_ref[0]                                   # (H+2, W+2, 8)
    y0 = jnp.maximum(conv3x3(x0, w_in_ref) + b_in_ref[...], 0.0)
    act_ref[...] = jnp.zeros((H + 2, W + 2, C), jnp.float32)   # zero halo once
    act_ref[1:H + 1, 1:W + 1, :] = y0.reshape(H, W, C)

    # ---- 19 applications of the SHARED hidden layer: 64 -> 64, ReLU ---------
    def hidden_step(_i, carry):
        a = act_ref[...]
        yh = jnp.maximum(conv3x3(a, w_hid_ref) + b_hid_ref[...], 0.0)
        act_ref[1:H + 1, 1:W + 1, :] = yh.reshape(H, W, C)
        return carry

    lax.fori_loop(0, n_hidden, hidden_step, 0)

    # ---- output layer: 64 -> 1 (padded to 8), ReLU, fused residual add ------
    a = act_ref[...]
    yo = jnp.maximum(conv3x3(a, w_out_ref) + b_out_ref[...], 0.0)
    res = xpad_ref[0][1:H + 1, 1:W + 1, :]             # ch0 = input, rest = 0
    o_ref[0] = yo.reshape(H, W, o_ref.shape[-1]) + res


def init_params(key):
    """Deterministic params matching the nn.Conv2d shapes in Net.__init__ (HWIO)."""
    k1, k2, k3, k4, k5, k6 = jax.random.split(key, 6)

    def conv_init(kw_key, kb_key, cin, cout):
        fan_in = cin * 3 * 3
        bound = 1.0 / jnp.sqrt(fan_in)
        w = jax.random.uniform(kw_key, (3, 3, cin, cout), jnp.float32, -bound, bound)
        b = jax.random.uniform(kb_key, (cout,), jnp.float32, -bound, bound)
        return w, b

    w_in, b_in = conv_init(k1, k2, 1, 64)
    w_hid, b_hid = conv_init(k3, k4, 64, 64)
    w_out, b_out = conv_init(k5, k6, 64, 1)
    return dict(w_in=w_in, b_in=b_in, w_hid=w_hid, b_hid=b_hid,
                w_out=w_out, b_out=b_out)


def net_forward(params, x_nchw, *, n_hidden=19):
    """Forward pass of Net. x_nchw: (B, 1, H, W) f32 -> (B, 1, H, W) f32."""
    B, cin, H, W = x_nchw.shape
    assert cin == 1
    C = 64    # hidden width
    CP = 8    # lane padding for the 1-channel input / output

    # One-time layout work at the network boundary.
    x = jnp.transpose(x_nchw, (0, 2, 3, 1))                        # (B, H, W, 1)
    x_pad = jnp.pad(x, ((0, 0), (1, 1), (1, 1), (0, CP - 1)))      # (B, H+2, W+2, 8)

    # Fold kw into the contraction axis: (3,3,cin,cout) -> (3, 3*cin, cout); bf16.
    w_in = jnp.pad(params["w_in"], ((0, 0), (0, 0), (0, CP - 1), (0, 0)))
    w_in = w_in.reshape(3, 3 * CP, C).astype(jnp.bfloat16)
    w_hid = params["w_hid"].reshape(3, 3 * C, C).astype(jnp.bfloat16)
    w_out = jnp.pad(params["w_out"], ((0, 0), (0, 0), (0, 0), (0, CP - 1)))
    w_out = w_out.reshape(3, 3 * C, CP).astype(jnp.bfloat16)
    b_in = params["b_in"].reshape(1, C)
    b_hid = params["b_hid"].reshape(1, C)
    b_out = jnp.pad(params["b_out"], ((0, CP - 1),)).reshape(1, CP)

    kernel = functools.partial(_vdsr_kernel, H=H, W=W, C=C, n_hidden=n_hidden)

    out = pl.pallas_call(
        kernel,
        out_shape=jax.ShapeDtypeStruct((B, H, W, CP), jnp.float32),
        grid_spec=pltpu.PrefetchScalarGridSpec(
            num_scalar_prefetch=0,
            grid=(B,),
            in_specs=[
                pl.BlockSpec((1, H + 2, W + 2, CP), lambda b: (b, 0, 0, 0)),
                pl.BlockSpec((3, 3 * CP, C), lambda b: (0, 0, 0)),
                pl.BlockSpec((1, C), lambda b: (0, 0)),
                pl.BlockSpec((3, 3 * C, C), lambda b: (0, 0, 0)),
                pl.BlockSpec((1, C), lambda b: (0, 0)),
                pl.BlockSpec((3, 3 * C, CP), lambda b: (0, 0, 0)),
                pl.BlockSpec((1, CP), lambda b: (0, 0)),
            ],
            out_specs=pl.BlockSpec((1, H, W, CP), lambda b: (b, 0, 0, 0)),
            scratch_shapes=[pltpu.VMEM((H + 2, W + 2, C), jnp.float32)],
        ),
        compiler_params=pltpu.CompilerParams(
            dimension_semantics=("parallel",),
        ),
    )(x_pad, w_in, b_in, w_hid, b_hid, w_out, b_out)

    # Channel 0 holds the result (other lanes are exactly zero); back to NCHW.
    return out[..., 0][:, None, :, :]


if __name__ == "__main__":
    key = jax.random.PRNGKey(0)
    pkey, xkey = jax.random.split(key)
    params = init_params(pkey)

    # Small input consistent with the module: batch=2, 1 channel, 16x16 spatial.
    x = jax.random.normal(xkey, (2, 1, 16, 16), jnp.float32)

    fwd = jax.jit(net_forward)
    y = fwd(params, x)
    jax.block_until_ready(y)

    assert y.shape == x.shape and y.dtype == jnp.float32
    print("KERNEL_OK")
</pallas_src>

<mosaic_0001>
module attributes {stable_mosaic.version = 11 : i64} {
  func.func @_vdsr_kernel(%arg0: i32, %arg1: memref<1x18x18x8xf32, #tpu.memory_space<vmem>>, %arg2: memref<3x24x64xbf16, #tpu.memory_space<vmem>>, %arg3: memref<1x64xf32, #tpu.memory_space<vmem>>, %arg4: memref<3x192x64xbf16, #tpu.memory_space<vmem>>, %arg5: memref<1x64xf32, #tpu.memory_space<vmem>>, %arg6: memref<3x192x8xbf16, #tpu.memory_space<vmem>>, %arg7: memref<1x8xf32, #tpu.memory_space<vmem>>, %arg8: memref<1x16x16x8xf32, #tpu.memory_space<vmem>>, %arg9: memref<18x18x64xf32, #tpu.memory_space<vmem>>) attributes {dimension_semantics = [#tpu.dimension_semantics<parallel>], iteration_bounds = array<i64: 2>, scalar_prefetch = 0 : i64, scratch_operands = 1 : i64, tpu.core_type = #tpu.core_type<tc>, window_params = [{transform_indices = @transform_0, window_bounds = array<i64: 1, 18, 18, 8>}, {pipeline_mode = #tpu.pipeline_mode<synchronous>, transform_indices = @transform_1, window_bounds = array<i64: 3, 24, 64>}, {pipeline_mode = #tpu.pipeline_mode<synchronous>, transform_indices = @transform_2, window_bounds = array<i64: 1, 64>}, {pipeline_mode = #tpu.pipeline_mode<synchronous>, transform_indices = @transform_3, window_bounds = array<i64: 3, 192, 64>}, {pipeline_mode = #tpu.pipeline_mode<synchronous>, transform_indices = @transform_4, window_bounds = array<i64: 1, 64>}, {pipeline_mode = #tpu.pipeline_mode<synchronous>, transform_indices = @transform_5, window_bounds = array<i64: 3, 192, 8>}, {pipeline_mode = #tpu.pipeline_mode<synchronous>, transform_indices = @transform_6, window_bounds = array<i64: 1, 8>}, {transform_indices = @transform_7, window_bounds = array<i64: 1, 16, 16, 8>}]} {
    %c0 = arith.constant 0 : index
    %c0_0 = arith.constant 0 : index
    %c0_1 = arith.constant 0 : index
    %c0_2 = arith.constant 0 : index
    %0 = vector.load %arg1[%c0, %c0_0, %c0_1, %c0_2] : memref<1x18x18x8xf32, #tpu.memory_space<vmem>>, vector<1x18x18x8xf32>
    %1 = vector.shape_cast %0 : vector<1x18x18x8xf32> to vector<18x18x8xf32>
    %2 = arith.truncf %1 : vector<18x18x8xf32> to vector<18x18x8xbf16>
    %3 = vector.extract_strided_slice %2 {offsets = [0, 0, 0], sizes = [18, 16, 8], strides = [1, 1, 1]} : vector<18x18x8xbf16> to vector<18x16x8xbf16>
    %4 = vector.extract_strided_slice %2 {offsets = [0, 1, 0], sizes = [18, 16, 8], strides = [1, 1, 1]} : vector<18x18x8xbf16> to vector<18x16x8xbf16>
    %5 = vector.extract_strided_slice %2 {offsets = [0, 2, 0], sizes = [18, 16, 8], strides = [1, 1, 1]} : vector<18x18x8xbf16> to vector<18x16x8xbf16>
    %6 = tpu.concatenate %3, %4, %5 in 2 : vector<18x16x8xbf16>, vector<18x16x8xbf16>, vector<18x16x8xbf16> -> vector<18x16x24xbf16>
    %cst = arith.constant 0.000000e+00 : f32
    %7 = vector.broadcast %cst : f32 to vector<256x64xf32>
    %8 = vector.extract_strided_slice %6 {offsets = [0, 0, 0], sizes = [16, 16, 24], strides = [1, 1, 1]} : vector<18x16x24xbf16> to vector<16x16x24xbf16>
    %9 = vector.shape_cast %8 : vector<16x16x24xbf16> to vector<256x24xbf16>
    %c0_3 = arith.constant 0 : index
    %c0_4 = arith.constant 0 : index
    %c0_5 = arith.constant 0 : index
    %10 = vector.load %arg2[%c0_3, %c0_4, %c0_5] : memref<3x24x64xbf16, #tpu.memory_space<vmem>>, vector<1x24x64xbf16>
    %11 = vector.shape_cast %10 : vector<1x24x64xbf16> to vector<24x64xbf16>
    %cst_6 = arith.constant dense<0.000000e+00> : vector<256x64xf32>
    %12 = tpu.matmul %9, %11, %cst_6 {dimension_numbers = #tpu.dot_dimension_numbers<[1], [0], [0], [1], [0, 0, 1, 1], [], []>} : vector<256x24xbf16>, vector<24x64xbf16>, vector<256x64xf32> -> vector<256x64xf32>
    %13 = arith.addf %7, %12 : vector<256x64xf32>
    %14 = vector.extract_strided_slice %6 {offsets = [1, 0, 0], sizes = [16, 16, 24], strides = [1, 1, 1]} : vector<18x16x24xbf16> to vector<16x16x24xbf16>
    %15 = vector.shape_cast %14 : vector<16x16x24xbf16> to vector<256x24xbf16>
    %c1 = arith.constant 1 : index
    %c0_7 = arith.constant 0 : index
    %c0_8 = arith.constant 0 : index
    %16 = vector.load %arg2[%c1, %c0_7, %c0_8] : memref<3x24x64xbf16, #tpu.memory_space<vmem>>, vector<1x24x64xbf16>
    %17 = vector.shape_cast %16 : vector<1x24x64xbf16> to vector<24x64xbf16>
    %cst_9 = arith.constant dense<0.000000e+00> : vector<256x64xf32>
    %18 = tpu.matmul %15, %17, %cst_9 {dimension_numbers = #tpu.dot_dimension_numbers<[1], [0], [0], [1], [0, 0, 1, 1], [], []>} : vector<256x24xbf16>, vector<24x64xbf16>, vector<256x64xf32> -> vector<256x64xf32>
    %19 = arith.addf %13, %18 : vector<256x64xf32>
    %20 = vector.extract_strided_slice %6 {offsets = [2, 0, 0], sizes = [16, 16, 24], strides = [1, 1, 1]} : vector<18x16x24xbf16> to vector<16x16x24xbf16>
    %21 = vector.shape_cast %20 : vector<16x16x24xbf16> to vector<256x24xbf16>
    %c2 = arith.constant 2 : index
    %c0_10 = arith.constant 0 : index
    %c0_11 = arith.constant 0 : index
    %22 = vector.load %arg2[%c2, %c0_10, %c0_11] : memref<3x24x64xbf16, #tpu.memory_space<vmem>>, vector<1x24x64xbf16>
    %23 = vector.shape_cast %22 : vector<1x24x64xbf16> to vector<24x64xbf16>
    %cst_12 = arith.constant dense<0.000000e+00> : vector<256x64xf32>
    %24 = tpu.matmul %21, %23, %cst_12 {dimension_numbers = #tpu.dot_dimension_numbers<[1], [0], [0], [1], [0, 0, 1, 1], [], []>} : vector<256x24xbf16>, vector<24x64xbf16>, vector<256x64xf32> -> vector<256x64xf32>
    %25 = arith.addf %19, %24 : vector<256x64xf32>
    %c0_13 = arith.constant 0 : index
    %c0_14 = arith.constant 0 : index
    %26 = vector.load %arg3[%c0_13, %c0_14] : memref<1x64xf32, #tpu.memory_space<vmem>>, vector<1x64xf32>
    %27 = vector.broadcast %26 : vector<1x64xf32> to vector<256x64xf32>
    %28 = arith.addf %25, %27 : vector<256x64xf32>
    %cst_15 = arith.constant 0.000000e+00 : f32
    %29 = vector.broadcast %cst_15 : f32 to vector<256x64xf32>
    %30 = arith.maximumf %28, %29 : vector<256x64xf32>
    %cst_16 = arith.constant 0.000000e+00 : f32
    %31 = vector.broadcast %cst_16 : f32 to vector<18x18x64xf32>
    %c0_17 = arith.constant 0 : index
    %c0_18 = arith.constant 0 : index
    %c0_19 = arith.constant 0 : index
    %32 = vector.load %arg9[%c0_17, %c0_18, %c0_19] : memref<18x18x64xf32, #tpu.memory_space<vmem>>, vector<18x18x64xf32>
    tpu.vector_store %arg9[%c0_17, %c0_18, %c0_19], %31 {strides = array<i32>} : memref<18x18x64xf32, #tpu.memory_space<vmem>>, vector<18x18x64xf32>,
    %33 = vector.shape_cast %30 : vector<256x64xf32> to vector<16x16x64xf32>
    %c1_20 = arith.constant 1 : index
    %c1_21 = arith.constant 1 : index
    %c0_22 = arith.constant 0 : index
    %34 = vector.load %arg9[%c1_20, %c1_21, %c0_22] : memref<18x18x64xf32, #tpu.memory_space<vmem>>, vector<16x16x64xf32>
    tpu.vector_store %arg9[%c1_20, %c1_21, %c0_22], %33 {strides = array<i32>} : memref<18x18x64xf32, #tpu.memory_space<vmem>>, vector<16x16x64xf32>,
    %c0_i32 = arith.constant 0 : i32
    %c19_i32 = arith.constant 19 : i32
    %35 = arith.addi %c0_i32, %c19_i32 : i32
    %c1_i32 = arith.constant 1 : i32
    scf.for %arg10 = %c0_i32 to %35 step %c1_i32  : i32 {
      %c0_50 = arith.constant 0 : index
      %c0_51 = arith.constant 0 : index
      %c0_52 = arith.constant 0 : index
      %74 = vector.load %arg9[%c0_50, %c0_51, %c0_52] : memref<18x18x64xf32, #tpu.memory_space<vmem>>, vector<18x18x64xf32>
      %75 = arith.truncf %74 : vector<18x18x64xf32> to vector<18x18x64xbf16>
      %76 = vector.extract_strided_slice %75 {offsets = [0, 0, 0], sizes = [18, 16, 64], strides = [1, 1, 1]} : vector<18x18x64xbf16> to vector<18x16x64xbf16>
      %77 = vector.extract_strided_slice %75 {offsets = [0, 1, 0], sizes = [18, 16, 64], strides = [1, 1, 1]} : vector<18x18x64xbf16> to vector<18x16x64xbf16>
      %78 = vector.extract_strided_slice %75 {offsets = [0, 2, 0], sizes = [18, 16, 64], strides = [1, 1, 1]} : vector<18x18x64xbf16> to vector<18x16x64xbf16>
      %79 = tpu.concatenate %76, %77, %78 in 2 : vector<18x16x64xbf16>, vector<18x16x64xbf16>, vector<18x16x64xbf16> -> vector<18x16x192xbf16>
      %cst_53 = arith.constant 0.000000e+00 : f32
      %80 = vector.broadcast %cst_53 : f32 to vector<256x64xf32>
      %81 = vector.extract_strided_slice %79 {offsets = [0, 0, 0], sizes = [16, 16, 192], strides = [1, 1, 1]} : vector<18x16x192xbf16> to vector<16x16x192xbf16>
      %82 = vector.shape_cast %81 : vector<16x16x192xbf16> to vector<256x192xbf16>
      %c0_54 = arith.constant 0 : index
      %c0_55 = arith.constant 0 : index
      %c0_56 = arith.constant 0 : index
      %83 = vector.load %arg4[%c0_54, %c0_55, %c0_56] : memref<3x192x64xbf16, #tpu.memory_space<vmem>>, vector<1x192x64xbf16>
      %84 = vector.shape_cast %83 : vector<1x192x64xbf16> to vector<192x64xbf16>
      %cst_57 = arith.constant dense<0.000000e+00> : vector<256x64xf32>
      %85 = tpu.matmul %82, %84, %cst_57 {dimension_numbers = #tpu.dot_dimension_numbers<[1], [0], [0], [1], [0, 0, 1, 1], [], []>} : vector<256x192xbf16>, vector<192x64xbf16>, vector<256x64xf32> -> vector<256x64xf32>
      %86 = arith.addf %80, %85 : vector<256x64xf32>
      %87 = vector.extract_strided_slice %79 {offsets = [1, 0, 0], sizes = [16, 16, 192], strides = [1, 1, 1]} : vector<18x16x192xbf16> to vector<16x16x192xbf16>
      %88 = vector.shape_cast %87 : vector<16x16x192xbf16> to vector<256x192xbf16>
      %c1_58 = arith.constant 1 : index
      %c0_59 = arith.constant 0 : index
      %c0_60 = arith.constant 0 : index
      %89 = vector.load %arg4[%c1_58, %c0_59, %c0_60] : memref<3x192x64xbf16, #tpu.memory_space<vmem>>, vector<1x192x64xbf16>
      %90 = vector.shape_cast %89 : vector<1x192x64xbf16> to vector<192x64xbf16>
      %cst_61 = arith.constant dense<0.000000e+00> : vector<256x64xf32>
      %91 = tpu.matmul %88, %90, %cst_61 {dimension_numbers = #tpu.dot_dimension_numbers<[1], [0], [0], [1], [0, 0, 1, 1], [], []>} : vector<256x192xbf16>, vector<192x64xbf16>, vector<256x64xf32> -> vector<256x64xf32>
      %92 = arith.addf %86, %91 : vector<256x64xf32>
      %93 = vector.extract_strided_slice %79 {offsets = [2, 0, 0], sizes = [16, 16, 192], strides = [1, 1, 1]} : vector<18x16x192xbf16> to vector<16x16x192xbf16>
      %94 = vector.shape_cast %93 : vector<16x16x192xbf16> to vector<256x192xbf16>
      %c2_62 = arith.constant 2 : index
      %c0_63 = arith.constant 0 : index
      %c0_64 = arith.constant 0 : index
      %95 = vector.load %arg4[%c2_62, %c0_63, %c0_64] : memref<3x192x64xbf16, #tpu.memory_space<vmem>>, vector<1x192x64xbf16>
      %96 = vector.shape_cast %95 : vector<1x192x64xbf16> to vector<192x64xbf16>
      %cst_65 = arith.constant dense<0.000000e+00> : vector<256x64xf32>
      %97 = tpu.matmul %94, %96, %cst_65 {dimension_numbers = #tpu.dot_dimension_numbers<[1], [0], [0], [1], [0, 0, 1, 1], [], []>} : vector<256x192xbf16>, vector<192x64xbf16>, vector<256x64xf32> -> vector<256x64xf32>
      %98 = arith.addf %92, %97 : vector<256x64xf32>
      %c0_66 = arith.constant 0 : index
      %c0_67 = arith.constant 0 : index
      %99 = vector.load %arg5[%c0_66, %c0_67] : memref<1x64xf32, #tpu.memory_space<vmem>>, vector<1x64xf32>
      %100 = vector.broadcast %99 : vector<1x64xf32> to vector<256x64xf32>
      %101 = arith.addf %98, %100 : vector<256x64xf32>
      %cst_68 = arith.constant 0.000000e+00 : f32
      %102 = vector.broadcast %cst_68 : f32 to vector<256x64xf32>
      %103 = arith.maximumf %101, %102 : vector<256x64xf32>
      %104 = vector.shape_cast %103 : vector<256x64xf32> to vector<16x16x64xf32>
      %c1_69 = arith.constant 1 : index
      %c1_70 = arith.constant 1 : index
      %c0_71 = arith.constant 0 : index
      %105 = vector.load %arg9[%c1_69, %c1_70, %c0_71] : memref<18x18x64xf32, #tpu.memory_space<vmem>>, vector<16x16x64xf32>
      tpu.vector_store %arg9[%c1_69, %c1_70, %c0_71], %104 {strides = array<i32>} : memref<18x18x64xf32, #tpu.memory_space<vmem>>, vector<16x16x64xf32>,
    }
    %c0_23 = arith.constant 0 : index
    %c0_24 = arith.constant 0 : index
    %c0_25 = arith.constant 0 : index
    %36 = vector.load %arg9[%c0_23, %c0_24, %c0_25] : memref<18x18x64xf32, #tpu.memory_space<vmem>>, vector<18x18x64xf32>
    %37 = arith.truncf %36 : vector<18x18x64xf32> to vector<18x18x64xbf16>
    %38 = vector.extract_strided_slice %37 {offsets = [0, 0, 0], sizes = [18, 16, 64], strides = [1, 1, 1]} : vector<18x18x64xbf16> to vector<18x16x64xbf16>
    %39 = vector.extract_strided_slice %37 {offsets = [0, 1, 0], sizes = [18, 16, 64], strides = [1, 1, 1]} : vector<18x18x64xbf16> to vector<18x16x64xbf16>
    %40 = vector.extract_strided_slice %37 {offsets = [0, 2, 0], sizes = [18, 16, 64], strides = [1, 1, 1]} : vector<18x18x64xbf16> to vector<18x16x64xbf16>
    %41 = tpu.concatenate %38, %39, %40 in 2 : vector<18x16x64xbf16>, vector<18x16x64xbf16>, vector<18x16x64xbf16> -> vector<18x16x192xbf16>
    %cst_26 = arith.constant 0.000000e+00 : f32
    %42 = vector.broadcast %cst_26 : f32 to vector<256x8xf32>
    %43 = vector.extract_strided_slice %41 {offsets = [0, 0, 0], sizes = [16, 16, 192], strides = [1, 1, 1]} : vector<18x16x192xbf16> to vector<16x16x192xbf16>
    %44 = vector.shape_cast %43 : vector<16x16x192xbf16> to vector<256x192xbf16>
    %c0_27 = arith.constant 0 : index
    %c0_28 = arith.constant 0 : index
    %c0_29 = arith.constant 0 : index
    %45 = vector.load %arg6[%c0_27, %c0_28, %c0_29] : memref<3x192x8xbf16, #tpu.memory_space<vmem>>, vector<1x192x8xbf16>
    %46 = vector.shape_cast %45 : vector<1x192x8xbf16> to vector<192x8xbf16>
    %cst_30 = arith.constant dense<0.000000e+00> : vector<256x8xf32>
    %47 = tpu.matmul %44, %46, %cst_30 {dimension_numbers = #tpu.dot_dimension_numbers<[1], [0], [0], [1], [0, 0, 1, 1], [], []>} : vector<256x192xbf16>, vector<192x8xbf16>, vector<256x8xf32> -> vector<256x8xf32>
    %48 = arith.addf %42, %47 : vector<256x8xf32>
    %49 = vector.extract_strided_slice %41 {offsets = [1, 0, 0], sizes = [16, 16, 192], strides = [1, 1, 1]} : vector<18x16x192xbf16> to vector<16x16x192xbf16>
    %50 = vector.shape_cast %49 : vector<16x16x192xbf16> to vector<256x192xbf16>
    %c1_31 = arith.constant 1 : index
    %c0_32 = arith.constant 0 : index
    %c0_33 = arith.constant 0 : index
    %51 = vector.load %arg6[%c1_31, %c0_32, %c0_33] : memref<3x192x8xbf16, #tpu.memory_space<vmem>>, vector<1x192x8xbf16>
    %52 = vector.shape_cast %51 : vector<1x192x8xbf16> to vector<192x8xbf16>
    %cst_34 = arith.constant dense<0.000000e+00> : vector<256x8xf32>
    %53 = tpu.matmul %50, %52, %cst_34 {dimension_numbers = #tpu.dot_dimension_numbers<[1], [0], [0], [1], [0, 0, 1, 1], [], []>} : vector<256x192xbf16>, vector<192x8xbf16>, vector<256x8xf32> -> vector<256x8xf32>
    %54 = arith.addf %48, %53 : vector<256x8xf32>
    %55 = vector.extract_strided_slice %41 {offsets = [2, 0, 0], sizes = [16, 16, 192], strides = [1, 1, 1]} : vector<18x16x192xbf16> to vector<16x16x192xbf16>
    %56 = vector.shape_cast %55 : vector<16x16x192xbf16> to vector<256x192xbf16>
    %c2_35 = arith.constant 2 : index
    %c0_36 = arith.constant 0 : index
    %c0_37 = arith.constant 0 : index
    %57 = vector.load %arg6[%c2_35, %c0_36, %c0_37] : memref<3x192x8xbf16, #tpu.memory_space<vmem>>, vector<1x192x8xbf16>
    %58 = vector.shape_cast %57 : vector<1x192x8xbf16> to vector<192x8xbf16>
    %cst_38 = arith.constant dense<0.000000e+00> : vector<256x8xf32>
    %59 = tpu.matmul %56, %58, %cst_38 {dimension_numbers = #tpu.dot_dimension_numbers<[1], [0], [0], [1], [0, 0, 1, 1], [], []>} : vector<256x192xbf16>, vector<192x8xbf16>, vector<256x8xf32> -> vector<256x8xf32>
    %60 = arith.addf %54, %59 : vector<256x8xf32>
    %c0_39 = arith.constant 0 : index
    %c0_40 = arith.constant 0 : index
    %61 = vector.load %arg7[%c0_39, %c0_40] : memref<1x8xf32, #tpu.memory_space<vmem>>, vector<1x8xf32>
    %62 = vector.broadcast %61 : vector<1x8xf32> to vector<256x8xf32>
    %63 = arith.addf %60, %62 : vector<256x8xf32>
    %cst_41 = arith.constant 0.000000e+00 : f32
    %64 = vector.broadcast %cst_41 : f32 to vector<256x8xf32>
    %65 = arith.maximumf %63, %64 : vector<256x8xf32>
    %c0_42 = arith.constant 0 : index
    %c0_43 = arith.constant 0 : index
    %c0_44 = arith.constant 0 : index
    %c0_45 = arith.constant 0 : index
    %66 = vector.load %arg1[%c0_42, %c0_43, %c0_44, %c0_45] : memref<1x18x18x8xf32, #tpu.memory_space<vmem>>, vector<1x18x18x8xf32>
    %67 = vector.shape_cast %66 : vector<1x18x18x8xf32> to vector<18x18x8xf32>
    %68 = vector.extract_strided_slice %67 {offsets = [1, 1, 0], sizes = [16, 16, 8], strides = [1, 1, 1]} : vector<18x18x8xf32> to vector<16x16x8xf32>
    %69 = vector.shape_cast %65 : vector<256x8xf32> to vector<16x16x8xf32>
    %70 = arith.addf %69, %68 : vector<16x16x8xf32>
    %c0_46 = arith.constant 0 : index
    %c0_47 = arith.constant 0 : index
    %c0_48 = arith.constant 0 : index
    %c0_49 = arith.constant 0 : index
    %71 = vector.load %arg8[%c0_46, %c0_47, %c0_48, %c0_49] : memref<1x16x16x8xf32, #tpu.memory_space<vmem>>, vector<1x16x16x8xf32>
    %72 = vector.shape_cast %71 : vector<1x16x16x8xf32> to vector<16x16x8xf32>
    %73 = vector.shape_cast %70 : vector<16x16x8xf32> to vector<1x16x16x8xf32>
    tpu.vector_store %arg8[%c0_46, %c0_47, %c0_48, %c0_49], %73 {strides = array<i32>} : memref<1x16x16x8xf32, #tpu.memory_space<vmem>>, vector<1x16x16x8xf32>,
    return
  }
  func.func @transform_0(%arg0: i32) -> (i32, i32, i32, i32) {
    %c0_i32 = arith.constant 0 : i32
    %c0_i32_0 = arith.constant 0 : i32
    %c0_i32_1 = arith.constant 0 : i32
    %c0_i32_2 = arith.constant 0 : i32
    return %arg0, %c0_i32, %c0_i32_0, %c0_i32_1 : i32, i32, i32, i32
  }
  func.func @transform_1(%arg0: i32) -> (i32, i32, i32) {
    %c0_i32 = arith.constant 0 : i32
    %c0_i32_0 = arith.constant 0 : i32
    %c0_i32_1 = arith.constant 0 : i32
    %c0_i32_2 = arith.constant 0 : i32
    return %c0_i32, %c0_i32_0, %c0_i32_1 : i32, i32, i32
  }
  func.func @transform_2(%arg0: i32) -> (i32, i32) {
    %c0_i32 = arith.constant 0 : i32
    %c0_i32_0 = arith.constant 0 : i32
    %c0_i32_1 = arith.constant 0 : i32
    return %c0_i32, %c0_i32_0 : i32, i32
  }
  func.func @transform_3(%arg0: i32) -> (i32, i32, i32) {
    %c0_i32 = arith.constant 0 : i32
    %c0_i32_0 = arith.constant 0 : i32
    %c0_i32_1 = arith.constant 0 : i32
    %c0_i32_2 = arith.constant 0 : i32
    return %c0_i32, %c0_i32_0, %c0_i32_1 : i32, i32, i32
  }
  func.func @transform_4(%arg0: i32) -> (i32, i32) {
    %c0_i32 = arith.constant 0 : i32
    %c0_i32_0 = arith.constant 0 : i32
    %c0_i32_1 = arith.constant 0 : i32
    return %c0_i32, %c0_i32_0 : i32, i32
  }
  func.func @transform_5(%arg0: i32) -> (i32, i32, i32) {
    %c0_i32 = arith.constant 0 : i32
    %c0_i32_0 = arith.constant 0 : i32
    %c0_i32_1 = arith.constant 0 : i32
    %c0_i32_2 = arith.constant 0 : i32
    return %c0_i32, %c0_i32_0, %c0_i32_1 : i32, i32, i32
  }
  func.func @transform_6(%arg0: i32) -> (i32, i32) {
    %c0_i32 = arith.constant 0 : i32
    %c0_i32_0 = arith.constant 0 : i32
    %c0_i32_1 = arith.constant 0 : i32
    return %c0_i32, %c0_i32_0 : i32, i32
  }
  func.func @transform_7(%arg0: i32) -> (i32, i32, i32, i32) {
    %c0_i32 = arith.constant 0 : i32
    %c0_i32_0 = arith.constant 0 : i32
    %c0_i32_1 = arith.constant 0 : i32
    %c0_i32_2 = arith.constant 0 : i32
    return %arg0, %c0_i32, %c0_i32_0, %c0_i32_1 : i32, i32, i32, i32
  }
}

</mosaic_0001>

<bundles_post_ra>
// kernel: net_forward.1
= control target key start
LH: loop header
LB: loop body
LE: loop exit
PB: predicated region body
PF: predicated region fallthrough
CT: control target
= control target key end

     0   :  { %s5508_s24 = smov 0   ;;  %s7793_s0 = inlined_call_operand.vmem [shape: f32[2,18,18,8], index: 0, kind: input, shape index: {}]   ;;  %s7794_s1 = inlined_call_operand.vmem [shape: bf16[3,24,64], index: 1, kind: input, shape index: {}]   ;;  %s7795_s2 = inlined_call_operand.vmem [shape: f32[1,64], index: 2, kind: input, shape index: {}]   ;;  %s7796_s3 = inlined_call_operand.vmem [shape: bf16[3,192,64], index: 3, kind: input, shape index: {}]   ;;  %s7797_s4 = inlined_call_operand.vmem [shape: f32[1,64], index: 4, kind: input, shape index: {}]   ;;  %s7798_s5 = inlined_call_operand.vmem [shape: bf16[3,192,8], index: 5, kind: input, shape index: {}]   ;;  %s7799_s6 = inlined_call_operand.vmem [shape: f32[1,8], index: 6, kind: input, shape index: {}]   ;;  %s7800_s7 = inlined_call_operand.vmem [shape: f32[2,16,16,8], index: 7, kind: output, shape index: {}]  }
   0x1 LB: > { %s4787_s25 = sadd.s32 4294967295, %s5455_s24   ;;  %p4791_p0 = scmp.ge.s32.totalorder %s5455_s24, 1  ;;  %s5455_s24 = sphi %s5508_s24, %s17_s24  }
   0x2   : > { %p237_p1 = scmp.lt.s32.totalorder %s5455_s24, 3 }
   0x4   : > { %p238_p2 = pnand %p4791_p0, %p237_p1 }
   0x5   : > { %p269_p3 = scmp.lt.s32.totalorder (!%p238_p2), %s4787_s25, 1  ;;  %s5461_s13 = smov (!%p238_p2), 16  }
   0x6   : > { %241 = sbr.rel (%p238_p2) target bundleno = 1495 (0x5d7), region = 48  ;;  %s5462_s14 = smov (!%p238_p2), 8  }
   0x7   : > { %s6146_s28 = smov (!%p238_p2), 0  }
   0xb   : > { %s7802_s25 = smov (!%p269_p3, %s4787_s25), 1  ;;  %v5367_v0 = vld [vmem:[%s7794_s1 + $0x14] ss:$0 sps:$4 sm:$0xff]   ;;  %vm873_vm0 = vcmask 1043456   ;;  %vm659_vm1 = vcmask 1046528   ;;  %vm750_vm3 = vcmask 64512  }
   0xc   : > { %s5343_s26 = smul.u32 432, %s7802_s25  ;;  %s5124_s27 = sshll.u32 %s7802_s25, 8  ;;  %5339 = vmatprep.subr.msk.bf16.mxu0 %vm873_vm0, %v5367_v0  ;;  %5340 = vmatprep.subr.msk.bf16.mxu1 %vm873_vm0, %v5367_v0  ;;  %v875_v1 = vsel %vm873_vm0, %v5367_v0, 0  ;;  %vm370_vm2 = vsmask.f32 7424  ;;  %vm787_vm4 = vcmask 130048  }
   0xd   : > { %s5522_s9 = scalar_lea.vmem %s7800_s7, %s5124_s27  ;;  %5180 = vmatpush3.bf16.msra.mxu0 %v875_v1  ;;  %5289 = vmatpush3.bf16.msra.mxu1 %v875_v1  ;;  %vm840_vm5 = vcmask 195584   ;;  %vm1495_vm6 = vcmask 523264   ;;  %vm1498_vm7 = vcmask 517120  }
   0xe   : > { %s5527_s12 = scalar_lea.vmem %s7793_s0, %s5343_s26 }
   0xf   : > { %v310_v2 = vld [vmem:[%s5527_s12 + $0xf0] sm:$0xff]  ;;  %v311_v3 = vld [vmem:[%s5527_s12 + $0xf8] sm:$0xff]  ;;  %v312_v4 = vld [vmem:[%s5527_s12 + $0x100] sm:$0x3] }
  0x10   : > { %v5535_v5 = vpack.c.bf16 %v311_v3, %v310_v2  ;;  %v355_v6 = vpack.c.bf16 %v312_v4, %v312_v4  ;;  %v307_v7 = vld [vmem:[%s5527_s12 + $0xd8] sm:$0xff]  ;;  %v308_v8 = vld [vmem:[%s5527_s12 + $0xe0] sm:$0xff]  ;;  %v309_v9 = vld [vmem:[%s5527_s12 + $0xe8] sm:$0x3] }
  0x11   : > { %v5540_v10 = vpack.c.bf16 %v308_v8, %v307_v7  ;;  %v353_v11 = vpack.c.bf16 %v309_v9, %v309_v9  ;;  %v286_v12 = vld [vmem:[%s5527_s12 + $0x30] sm:$0xff]  ;;  %v287_v13 = vld [vmem:[%s5527_s12 + $0x38] sm:$0xff]  ;;  %v288_v14 = vld [vmem:[%s5527_s12 + $0x40] sm:$0x3] }
  0x12   : > { %v690_v15 = vrot.slane %v5535_v5, 1  ;;  %v691_v16 = vrot.slane %v355_v6, 1  ;;  %v5546_v17 = vpack.c.bf16 %v287_v13, %v286_v12  ;;  %v339_v18 = vpack.c.bf16 %v288_v14, %v288_v14  ;;  %v283_v19 = vld [vmem:[%s5527_s12 + $0x18] sm:$0xff]  ;;  %v284_v20 = vld [vmem:[%s5527_s12 + $0x20] sm:$0xff]  ;;  %v285_v21 = vld [vmem:[%s5527_s12 + $0x28] sm:$0x3] }
  0x13   : > { %v687_v22 = vrot.slane %v5540_v10, 1  ;;  %v688_v23 = vrot.slane %v353_v11, 1  ;;  %v5552_v24 = vpack.c.bf16 %v284_v20, %v283_v19  ;;  %v337_v25 = vpack.c.bf16 %v285_v21, %v285_v21  ;;  %v313_v42 = vld [vmem:[%s5527_s12 + $0x108] sm:$0xff]  ;;  %v314_v43 = vld [vmem:[%s5527_s12 + $0x110] sm:$0xff]  ;;  %v315_v48 = vld [vmem:[%s5527_s12 + $0x118] sm:$0x3] }
  0x14   : > { %v692_v26 = vsel %vm659_vm1, %v690_v15, %v691_v16  ;;  %v666_v27 = vrot.slane %v5546_v17, 1  ;;  %v667_v28 = vrot.slane %v339_v18, 1  ;;  %v480_v29 = vshrl.u32 %v5540_v10, 16  ;;  %v316_v53 = vld [vmem:[%s5527_s12 + $0x120] sm:$0xff]  ;;  %v317_v54 = vld [vmem:[%s5527_s12 + $0x128] sm:$0xff] }
  0x15   : > { %734 = vrot.lane.b32.xlu0 %v692_v26, %s5461_s13  ;;  %v689_v30 = vsel %vm659_vm1, %v687_v22, %v688_v23  ;;  %v663_v31 = vrot.slane %v5552_v24, 1  ;;  %v664_v32 = vrot.slane %v337_v25, 1  ;;  %v482_v33 = vshll.u32 %v5540_v10, 16  ;;  %v318_v63 = vld [vmem:[%s5527_s12 + $0x130] sm:$0x3]  ;;  %v289_v9 = vld [vmem:[%s5527_s12 + $0x48] sm:$0xff] }
  0x16   : > { %732 = vrot.lane.b32.xlu1 %v689_v30, %s5461_s13  ;;  %v668_v34 = vsel %vm659_vm1, %v666_v27, %v667_v28  ;;  %v487_v35 = vshll.u32 %v353_v11, 16  ;;  %v384_v36 = vshrl.u32 %v5552_v24, 16  ;;  %v386_v37 = vshll.u32 %v5552_v24, 16  ;;  %v290_v11 = vld [vmem:[%s5527_s12 + $0x50] sm:$0xff]  ;;  %v291_v16 = vld [vmem:[%s5527_s12 + $0x58] sm:$0x3] }
  0x17   : > { %v665_v38 = vsel %vm659_vm1, %v663_v31, %v664_v32  ;;  %v484_v39 = vrot.slane %v482_v33, 1  ;;  %v391_v40 = vshll.u32 %v337_v25, 16  ;;  %v492_v41 = vshrl.u32 %v5535_v5, 16  ;;  %v293_v30 = vld [vmem:[%s5527_s12 + $0x68] sm:$0xff]  ;;  %v294_v31 = vld [vmem:[%s5527_s12 + $0x70] sm:$0x3] }
  0x18   : > { %v489_v44 = vrot.slane %v487_v35, 1  ;;  %v388_v45 = vrot.slane %v386_v37, 1  ;;  %v494_v46 = vshll.u32 %v5535_v5, 16  ;;  %v499_v47 = vshll.u32 %v355_v6, 16  ;;  %v320_v37 = vld [vmem:[%s5527_s12 + $0x140] sm:$0xff] }
  0x19   : > { %716 = vrot.lane.b32.xlu0 %v665_v38, %s5461_s13  ;;  %v485_v49 = vor.u32 %v484_v39, %v480_v29  ;;  %v393_v50 = vrot.slane %v391_v40, 1  ;;  %v396_v51 = vshrl.u32 %v5546_v17, 16  ;;  %v398_v52 = vshll.u32 %v5546_v17, 16  ;;  %v292_v29 = vld [vmem:[%s5527_s12 + $0x60] sm:$0xff] }
  0x1a   : > { %718 = vrot.lane.b32.xlu1 %v668_v34, %s5461_s13  ;;  %v389_v55 = vor.u32 %v388_v45, %v384_v36  ;;  %v496_v56 = vrot.slane %v494_v46, 1  ;;  %v501_v57 = vrot.slane %v499_v47, 1  ;;  %v403_v58 = vshll.u32 %v339_v18, 16  ;;  %v319_v36 = vld [vmem:[%s5527_s12 + $0x138] sm:$0xff]  ;;  %v321_v46 = vld [vmem:[%s5527_s12 + $0x148] sm:$0x3] }
  0x1b   : > { %v490_v59 = vsel %vm370_vm2, %v485_v49, %v489_v44  ;;  %v400_v60 = vrot.slane %v398_v52, 1  ;;  %v5578_v61 = vpack.c.bf16 %v314_v43, %v313_v42  ;;  %v357_v62 = vpack.c.bf16 %v315_v48, %v315_v48  ;;  %v5368_v42 = vld [vmem:[%s7794_s1 + $0xc] sm:$0xff]  }
  0x1c   : > { %v394_v0 = vsel %vm370_vm2, %v389_v55, %v393_v50  ;;  %v497_v1 = vor.u32 %v496_v56, %v492_v41  ;;  %v405_v2 = vrot.slane %v403_v58, 1  ;;  %v5582_v3 = vpack.c.bf16 %v317_v54, %v316_v53  ;;  %5181 = vmatprep.subr.bf16.mxu0 %v5368_v42  ;;  %v322_v55 = vld [vmem:[%s5527_s12 + $0x150] sm:$0xff]  ;;  %v323_v56 = vld [vmem:[%s5527_s12 + $0x158] sm:$0xff]  ;;  %5288 = vmatprep.subr.bf16.mxu1 %v5368_v42 }
  0x1d   : > { %605 = vrot.lane.b32.xlu0 %v490_v59, %s5462_s14  ;;  %v401_v4 = vor.u32 %v400_v60, %v396_v51  ;;  %v504_v6 = vshrl.u32 %v5578_v61, 16  ;;  %v506_v7 = vshll.u32 %v5578_v61, 16  ;;  %v511_v8 = vshll.u32 %v357_v62, 16  ;;  %5182 = vmatpush3.bf16.msra.mxu0 %v5368_v42 }
  0x1e   : > { %589 = vrot.lane.b32.xlu1 %v394_v0, %s5462_s14  ;;  %v502_v12 = vsel %vm370_vm2, %v497_v1, %v501_v57  ;;  %v359_v13 = vpack.c.bf16 %v318_v63, %v318_v63  ;;  %v516_v14 = vshrl.u32 %v5582_v3, 16  ;;  %v518_v15 = vshll.u32 %v5582_v3, 16  ;;  %5290 = vmatpush3.bf16.msra.mxu1 %v5368_v42 }
  0x1f   : > { %v406_v18 = vsel %vm370_vm2, %v401_v4, %v405_v2  ;;  %v508_v19 = vrot.slane %v506_v7, 1  ;;  %v513_v20 = vrot.slane %v511_v8, 1  ;;  %v5595_v23 = vpack.c.bf16 %v290_v11, %v289_v9  ;;  %v295_v9 = vld [vmem:[%s5527_s12 + $0x78] sm:$0xff]  ;;  %v296_v11 = vld [vmem:[%s5527_s12 + $0x80] sm:$0xff] }
  0x20   : > { %v520_v21 = vrot.slane %v518_v15, 1  ;;  %v523_v22 = vshll.u32 %v359_v13, 16  ;;  %v693_v26 = vrot.slane %v5578_v61, 1  ;;  %v694_v27 = vrot.slane %v357_v62, 1  ;;  %v324_v62 = vld [vmem:[%s5527_s12 + $0x160] sm:$0x3] }
  0x21   : > { %607 = vrot.lane.b32.xlu0 %v502_v12, %s5462_s14  ;;  %v509_v25 = vor.u32 %v508_v19, %v504_v6  ;;  %v5599_v28 = vpack.c.bf16 %v291_v16, %v291_v16  ;;  %v696_v34 = vrot.slane %v5582_v3, 1  ;;  %v697_v35 = vrot.slane %v359_v13, 1  ;;  %v5646_v12 = vld [vmem:[%s7794_s1 + $0x8] ss:$0 sps:$4 sm:$0xff]  }
  0x22   : > { %591 = vrot.lane.b32.xlu1 %v406_v18, %s5462_s14  ;;  %v521_v32 = vor.u32 %v520_v21, %v516_v14  ;;  %v525_v33 = vrot.slane %v523_v22, 1  ;;  %v408_v39 = vshrl.u32 %v5595_v23, 16  ;;  %v410_v40 = vshll.u32 %v5595_v23, 16  ;;  %v297_v18 = vld [vmem:[%s5527_s12 + $0x88] sm:$0x3]  ;;  %5341 = vmatprep.subr.msk.bf16.mxu1 %vm873_vm0, %v5646_v12 }
  0x23   : > { %v514_v38 = vsel %vm370_vm2, %v509_v25, %v513_v20  ;;  %v415_v41 = vshll.u32 %v5599_v28, 16  ;;  %v5616_v44 = vpack.c.bf16 %v293_v30, %v292_v29  ;;  %v343_v45 = vpack.c.bf16 %v294_v31, %v294_v31 }
  0x24   : > { %v526_v43 = vsel %vm370_vm2, %v521_v32, %v525_v33  ;;  %v695_v47 = vsel %vm659_vm1, %v693_v26, %v694_v27  ;;  %v412_v48 = vrot.slane %v410_v40, 1  ;;  %v5621_v50 = vpack.c.bf16 %v320_v37, %v319_v36  ;;  %v298_v26 = vld [vmem:[%s5527_s12 + $0x90] sm:$0xff]  ;;  %v299_v27 = vld [vmem:[%s5527_s12 + $0x98] sm:$0xff]  ;;  %v300_v32 = vld [vmem:[%s5527_s12 + $0xa0] sm:$0x3] }
  0x25   : > { %609 = vrot.lane.b32.xlu0 %v514_v38, %s5462_s14  ;;  %v417_v49 = vrot.slane %v415_v41, 1  ;;  %v698_v51 = vsel %vm659_vm1, %v696_v34, %v697_v35  ;;  %v420_v52 = vshrl.u32 %v5616_v44, 16  ;;  %v422_v53 = vshll.u32 %v5616_v44, 16  ;;  %v5672_v33 = vld [vmem:[%s7794_s1 + $0x20] ss:$0 sps:$4 sm:$0xff]  }
  0x26   : > { %611 = vrot.lane.b32.xlu1 %v526_v43, %s5462_s14  ;;  %v427_v54 = vshll.u32 %v343_v45, 16  ;;  %v413_v57 = vor.u32 %v412_v48, %v408_v39  ;;  %v669_v58 = vrot.slane %v5595_v23, 1  ;;  %v670_v59 = vrot.slane %v5599_v28, 1  ;;  %5342 = vmatprep.subr.msk.bf16.mxu0 %vm873_vm0, %v5672_v33 }
  0x27   : > { %v5631_v60 = vpack.c.bf16 %v321_v46, %v321_v46  ;;  %v424_v63 = vrot.slane %v422_v53, 1  ;;  %v672_v1 = vrot.slane %v5616_v44, 1  ;;  %v530_v2 = vshll.u32 %v5621_v50, 16  ;;  %v326_v46 = vld [vmem:[%s5527_s12 + $0x170] sm:$0xff] }
  0x28   : > { %v429_v0 = vrot.slane %v427_v54, 1  ;;  %v418_v4 = vsel %vm370_vm2, %v413_v57, %v417_v49  ;;  %v673_v6 = vrot.slane %v343_v45, 1  ;;  %v528_v7 = vshrl.u32 %v5621_v50, 16  ;;  %v325_v45 = vld [vmem:[%s5527_s12 + $0x168] sm:$0xff]  ;;  %v327_v49 = vld [vmem:[%s5527_s12 + $0x178] sm:$0x3] }
  0x29   : > { %736 = vrot.lane.b32.xlu0 %v695_v47, %s5461_s13  ;;  %v5639_v8 = vpack.c.bf16 %v323_v56, %v322_v55  ;;  %v425_v13 = vor.u32 %v424_v63, %v420_v52  ;;  %v532_v14 = vrot.slane %v530_v2, 1  ;;  %v535_v15 = vshll.u32 %v5631_v60, 16  ;;  %v329_v52 = vld [vmem:[%s5527_s12 + $0x188] sm:$0xff] }
  0x2a   : > { %593 = vrot.lane.b32.xlu1 %v418_v4, %s5462_s14  ;;  %v5650_v16 = vpack.c.bf16 %v324_v62, %v324_v62  ;;  %v5659_v25 = vpack.c.bf16 %v296_v11, %v295_v9  ;;  %v671_v28 = vsel %vm659_vm1, %v669_v58, %v670_v59  ;;  %v674_v29 = vsel %vm659_vm1, %v672_v1, %v673_v6  ;;  %v330_v62 = vld [vmem:[%s5527_s12 + $0x190] sm:$0x3]  ;;  %v301_v6 = vld [vmem:[%s5527_s12 + $0xa8] sm:$0xff] }
  0x2b   : > { %v540_v19 = vshrl.u32 %v5639_v8, 16  ;;  %v542_v20 = vshll.u32 %v5639_v8, 16  ;;  %v430_v21 = vsel %vm370_vm2, %v425_v13, %v429_v0  ;;  %v5666_v31 = vpack.c.bf16 %v297_v18, %v297_v18 }
  0x2c   : > { %v547_v22 = vshll.u32 %v5650_v16, 16  ;;  %v533_v34 = vor.u32 %v532_v14, %v528_v7  ;;  %v537_v35 = vrot.slane %v535_v15, 1  ;;  %v434_v37 = vshll.u32 %v5659_v25, 16  ;;  %v302_v7 = vld [vmem:[%s5527_s12 + $0xb0] sm:$0xff] }
  0x2d   : > { %738 = vrot.lane.b32.xlu0 %v698_v51, %s5461_s13  ;;  %v544_v30 = vrot.slane %v542_v20, 1  ;;  %v432_v39 = vshrl.u32 %v5659_v25, 16  ;;  %v439_v40 = vshll.u32 %v5666_v31, 16  ;;  %v5678_v41 = vpack.c.bf16 %v299_v27, %v298_v26  ;;  %v328_v51 = vld [vmem:[%s5527_s12 + $0x180] sm:$0xff]  ;;  %v303_v20 = vld [vmem:[%s5527_s12 + $0xb8] sm:$0x3] }
  0x2e   : > { %595 = vrot.lane.b32.xlu1 %v430_v21, %s5462_s14  ;;  %v549_v36 = vrot.slane %v547_v22, 1  ;;  %v436_v42 = vrot.slane %v434_v37, 1  ;;  %v5682_v43 = vpack.c.bf16 %v300_v32, %v300_v32  ;;  %v699_v47 = vrot.slane %v5621_v50, 1 }
  0x2f   : > { %v545_v38 = vor.u32 %v544_v30, %v540_v19  ;;  %v700_v48 = vrot.slane %v5631_v60, 1  ;;  %v538_v53 = vsel %vm370_vm2, %v533_v34, %v537_v35  ;;  %v441_v55 = vrot.slane %v439_v40, 1 }
  0x30   : > { %v446_v56 = vshll.u32 %v5678_v41, 16  ;;  %v437_v57 = vor.u32 %v436_v42, %v432_v39  ;;  %v444_v58 = vshrl.u32 %v5678_v41, 16  ;;  %v451_v59 = vshll.u32 %v5682_v43, 16 }
  0x31   : > { %720 = vrot.lane.b32.xlu0 %v671_v28, %s5461_s13  ;;  %v550_v54 = vsel %vm370_vm2, %v545_v38, %v549_v36  ;;  %v5698_v60 = vpack.c.bf16 %v326_v46, %v325_v45  ;;  %v5701_v0 = vpack.c.bf16 %v327_v49, %v327_v49  ;;  %v5703_v1 = vpack.c.bf16 %v329_v52, %v328_v51  ;;  %v304_v28 = vld [vmem:[%s5527_s12 + $0xc0] sm:$0xff]  ;;  %v306_v46 = vld [vmem:[%s5527_s12 + $0xd0] sm:$0x3] }
  0x32   : > { %722 = vrot.lane.b32.xlu1 %v674_v29, %s5461_s13  ;;  %v448_v63 = vrot.slane %v446_v56, 1  ;;  %v701_v2 = vsel %vm659_vm1, %v699_v47, %v700_v48  ;;  %v702_v9 = vrot.slane %v5639_v8, 1  ;;  %v703_v11 = vrot.slane %v5650_v16, 1  ;;  %v305_v16 = vld [vmem:[%s5527_s12 + $0xc8] sm:$0xff] }
  0x33   : > { %v554_v4 = vshll.u32 %v5698_v60, 16  ;;  %v5713_v13 = vpack.c.bf16 %v330_v62, %v330_v62  ;;  %v566_v14 = vshll.u32 %v5703_v1, 16  ;;  %v442_v15 = vsel %vm370_vm2, %v437_v57, %v441_v55  ;;  %v280_v57 = vld [vmem:[%s5527_s12] sm:$0xff] }
  0x34   : > { %v449_v18 = vor.u32 %v448_v63, %v444_v58  ;;  %v453_v19 = vrot.slane %v451_v59, 1  ;;  %v675_v21 = vrot.slane %v5659_v25, 1  ;;  %v552_v22 = vshrl.u32 %v5698_v60, 16  ;;  %v281_v58 = vld [vmem:[%s5527_s12 + $0x8] sm:$0xff]  ;;  %v331_v63 = vld [vmem:[%s5527_s12 + $0x198] sm:$0xff] }
  0x35   : > { %613 = vrot.lane.b32.xlu0 %v538_v53, %s5462_s14  ;;  %v559_v26 = vshll.u32 %v5701_v0, 16  ;;  %v5721_v27 = vpack.c.bf16 %v302_v7, %v301_v6  ;;  %v556_v29 = vrot.slane %v554_v4, 1  ;;  %v564_v30 = vshrl.u32 %v5703_v1, 16  ;;  %v333_v4 = vld [vmem:[%s5527_s12 + $0x1a8] sm:$0x3] }
  0x36   : > { %615 = vrot.lane.b32.xlu1 %v550_v54, %s5462_s14  ;;  %v568_v32 = vrot.slane %v566_v14, 1  ;;  %v571_v34 = vshll.u32 %v5713_v13, 16  ;;  %v704_v35 = vsel %vm659_vm1, %v702_v9, %v703_v11  ;;  %v676_v36 = vrot.slane %v5666_v31, 1 }
  0x37   : > { %v5731_v37 = vpack.c.bf16 %v303_v20, %v303_v20  ;;  %v458_v38 = vshll.u32 %v5721_v27, 16  ;;  %v454_v39 = vsel %vm370_vm2, %v449_v18, %v453_v19  ;;  %v678_v40 = vrot.slane %v5678_v41, 1 }
  0x38   : > { %v679_v42 = vrot.slane %v5682_v43, 1  ;;  %v5737_v45 = vpack.c.bf16 %v305_v16, %v304_v28  ;;  %v557_v47 = vor.u32 %v556_v29, %v552_v22  ;;  %v561_v31 = vrot.slane %v559_v26, 1 }
  0x39   : > { %740 = vrot.lane.b32.xlu0 %v701_v2, %s5461_s13  ;;  %v569_v48 = vor.u32 %v568_v32, %v564_v30  ;;  %v573_v49 = vrot.slane %v571_v34, 1  ;;  %v677_v51 = vsel %vm659_vm1, %v675_v21, %v676_v36  ;;  %v456_v43 = vshrl.u32 %v5721_v27, 16  ;;  %v332_v2 = vld [vmem:[%s5527_s12 + $0x1a0] sm:$0xff] }
  0x3a   : > { %597 = vrot.lane.b32.xlu1 %v442_v15, %s5462_s14  ;;  %v460_v52 = vrot.slane %v458_v38, 1  ;;  %v463_v53 = vshll.u32 %v5731_v37, 16  ;;  %v680_v54 = vsel %vm659_vm1, %v678_v40, %v679_v42  ;;  %v351_v55 = vpack.c.bf16 %v306_v46, %v306_v46 }
  0x3b   : > { %v470_v56 = vshll.u32 %v5737_v45, 16  ;;  %v705_v59 = vrot.slane %v5698_v60, 1  ;;  %v706_v62 = vrot.slane %v5701_v0, 1  ;;  %v562_v6 = vsel %vm370_vm2, %v557_v47, %v561_v31  ;;  %v282_v0 = vld [vmem:[%s5527_s12 + $0x10] sm:$0x3] }
  0x3c   : > { %v574_v7 = vsel %vm370_vm2, %v569_v48, %v573_v49  ;;  %v461_v9 = vor.u32 %v460_v52, %v456_v43  ;;  %v465_v11 = vrot.slane %v463_v53, 1  ;;  %v468_v14 = vshrl.u32 %v5737_v45, 16 }
  0x3d   : > { %742 = vrot.lane.b32.xlu0 %v704_v35, %s5461_s13  ;;  %v5759_v15 = vpack.c.bf16 %v281_v58, %v280_v57  ;;  %v472_v18 = vrot.slane %v470_v56, 1  ;;  %v475_v19 = vshll.u32 %v351_v55, 16  ;;  %v5762_v20 = vpack.c.bf16 %v332_v2, %v331_v63 }
  0x3e   : > { %599 = vrot.lane.b32.xlu1 %v454_v39, %s5462_s14  ;;  %v369_v21 = vpack.c.bf16 %v333_v4, %v333_v4  ;;  %v707_v22 = vsel %vm659_vm1, %v705_v59, %v706_v62  ;;  %v708_v26 = vrot.slane %v5703_v1, 1  ;;  %v709_v28 = vrot.slane %v5713_v13, 1 }
  0x3f   : > { %v711_v16 = vrot.slane %v5762_v20, 1  ;;  %v335_v30 = vpack.c.bf16 %v282_v0, %v282_v0  ;;  %v374_v32 = vshll.u32 %v5759_v15, 16  ;;  %v5773_v34 = vsel %vm873_vm0, %v5646_v12, 0 }
  0x40   : > { %v712_v29 = vrot.slane %v369_v21, 1  ;;  %v5777_v35 = vsel %vm873_vm0, %v5672_v33, 0  ;;  %v466_v36 = vsel %vm370_vm2, %v461_v9, %v465_v11  ;;  %v473_v38 = vor.u32 %v472_v18, %v468_v14 }
  0x41   : > { %724 = vrot.lane.b32.xlu0 %v677_v51, %s5461_s13  ;;  %v477_v13 = vrot.slane %v475_v19, 1  ;;  %v710_v40 = vsel %vm659_vm1, %v708_v26, %v709_v28  ;;  %v681_v42 = vrot.slane %v5721_v27, 1  ;;  %v682_v46 = vrot.slane %v5731_v37, 1 }
  0x42   : > { %726 = vrot.lane.b32.xlu1 %v680_v54, %s5461_s13  ;;  %v713_v39 = vsel %vm659_vm1, %v711_v16, %v712_v29  ;;  %v372_v12 = vshrl.u32 %v5759_v15, 16  ;;  %v376_v33 = vrot.slane %v374_v32, 1  ;;  %v379_v47 = vshll.u32 %v335_v30, 16 }
  0x43   : > { %v578_v31 = vshll.u32 %v5762_v20, 16  ;;  %v478_v48 = vsel %vm370_vm2, %v473_v38, %v477_v13  ;;  %v684_v49 = vrot.slane %v5737_v45, 1  ;;  %v685_v51 = vrot.slane %v351_v55, 1 }
  0x44   : > { %v683_v43 = vsel %vm659_vm1, %v681_v42, %v682_v46  ;;  %v576_v52 = vshrl.u32 %v5762_v20, 16  ;;  %v377_v37 = vor.u32 %v376_v33, %v372_v12  ;;  %v381_v53 = vrot.slane %v379_v47, 1 }
  0x45   : > { %617 = vrot.lane.b32.xlu0 %v562_v6, %s5462_s14  ;;  %v580_v54 = vrot.slane %v578_v31, 1  ;;  %v583_v56 = vshll.u32 %v369_v21, 16  ;;  %v686_v57 = vsel %vm659_vm1, %v684_v49, %v685_v51  ;;  %v660_v58 = vrot.slane %v5759_v15, 1 }
  0x46   : > { %619 = vrot.lane.b32.xlu1 %v574_v7, %s5462_s14  ;;  %v661_v59 = vrot.slane %v335_v30, 1  ;;  %v382_v55 = vsel %vm370_vm2, %v377_v37, %v381_v53  ;;  %v5372_v30 = vld [vmem:[%s7794_s1 + $0x18] sm:$0xff]  }
  0x47   : > { %v581_v62 = vor.u32 %v580_v54, %v576_v52  ;;  %v585_v63 = vrot.slane %v583_v56, 1 }
  0x48   : > { %v662_v2 = vsel %vm659_vm1, %v660_v58, %v661_v59 }
  0x49   : > { %744 = vrot.lane.b32.xlu0 %v707_v22, %s5461_s13  ;;  %v586_v4 = vsel %vm370_vm2, %v581_v62, %v585_v63 }
  0x4a   : > { %601 = vrot.lane.b32.xlu1 %v466_v36, %s5462_s14 }
  0x4d   : > { %746 = vrot.lane.b32.xlu0 %v710_v40, %s5461_s13 }
  0x4e   : > { %603 = vrot.lane.b32.xlu1 %v478_v48, %s5462_s14 }
  0x51   : > { %728 = vrot.lane.b32.xlu0 %v683_v43, %s5461_s13 }
  0x52   : > { %730 = vrot.lane.b32.xlu1 %v686_v57, %s5461_s13 }
  0x55   : > { %587 = vrot.lane.b32.xlu0 %v382_v55, %s5462_s14 }
  0x56   : > { %714 = vrot.lane.b32.xlu1 %v662_v2, %s5461_s13 }
  0x59   : > { %621 = vrot.lane.b32.xlu0 %v586_v4, %s5462_s14 }
  0x5a   : > { %748 = vrot.lane.b32.xlu1 %v713_v39, %s5461_s13 }
  0x87   : > { %v735_v6 = vpop.permute.xlu0 %734 }
  0x88   : > { %v733_v7 = vpop.permute.xlu1 %732 }
  0x8b   : > { %v717_v9 = vpop.permute.xlu0 %716 }
  0x8c   : > { %v719_v11 = vpop.permute.xlu1 %718 }
  0x8f   : > { %v606_v14 = vpop.permute.xlu0 %605 }
  0x90   : > { %v770_v18 = vsel %vm750_vm3, %v5540_v10, %v606_v14  ;;  %v590_v19 = vpop.permute.xlu1 %589 }
  0x91   : > { %v754_v0 = vsel %vm750_vm3, %v5552_v24, %v590_v19  ;;  %v5810_v21 = vsel %vm787_vm4, %v770_v18, %v733_v7  ;;  %v5371_v24 = vld [vmem:[%s7794_s1] sm:$0xff]  }
  0x92   : > { %v5813_v22 = vsel %vm787_vm4, %v754_v0, %v717_v9  ;;  %5199 = vmatprep.mubr.msk.bf16.mxu1 %vm840_vm5, %v5810_v21 }
  0x93   : > { %5183 = vmatprep.mubr.msk.bf16.mxu0 %vm840_vm5, %v5813_v22  ;;  %v608_v26 = vpop.permute.xlu0 %607 }
  0x94   : > { %v772_v10 = vsel %vm750_vm3, %v5535_v5, %v608_v26  ;;  %v592_v28 = vpop.permute.xlu1 %591 }
  0x95   : > { %v756_v16 = vsel %vm750_vm3, %v5546_v17, %v592_v28  ;;  %v5827_v29 = vsel %vm787_vm4, %v772_v10, %v735_v6 }
  0x96   : > { %v5833_v32 = vsel %vm787_vm4, %v756_v16, %v719_v11  ;;  %5200 = vmatmul.mubr.msk.bf16.vlgmr.msra.gmra.mxu1 %vm840_vm5, %v5827_v29 }
  0x97   : > { %5184 = vmatmul.mubr.msk.bf16.vlgmr.msra.gmra.mxu0 %vm840_vm5, %v5833_v32  ;;  %v610_v5 = vpop.permute.xlu0 %609  ;;  %5216 = vmatpush3.bf16.msra.mxu1 %v5773_v34 }
  0x98   : > { %v612_v17 = vpop.permute.xlu1 %611  ;;  %5252 = vmatpush3.bf16.msra.mxu0 %v5777_v35  ;;  %5217 = vmatprep.subr.bf16.mxu1 %v5371_v24  ;;  %v774_v36 = vsel %vm750_vm3, %v5578_v61, %v610_v5 }
  0x99   : > { %5253 = vmatprep.subr.bf16.mxu0 %v5372_v30  ;;  %v776_v34 = vsel %vm750_vm3, %v5582_v3, %v612_v17 }
  0x9b   : > { %v737_v38 = vpop.permute.xlu0 %736  ;;  %5218 = vmatpush3.bf16.msra.mxu1 %v5371_v24 }
  0x9c   : > { %v5844_v13 = vsel %vm787_vm4, %v774_v36, %v737_v38  ;;  %v594_v39 = vpop.permute.xlu1 %593  ;;  %5254 = vmatpush3.bf16.msra.mxu0 %v5372_v30 }
  0x9d   : > { %5203 = vmatprep.mubr.msk.bf16.mxu1 %vm840_vm5, %v5844_v13  ;;  %v758_v61 = vsel %vm750_vm3, %v5595_v23, %v594_v39 }
  0x9f   : > { %v739_v40 = vpop.permute.xlu0 %738 }
  0xa0   : > { %v5851_v35 = vsel %vm787_vm4, %v776_v34, %v739_v40  ;;  %v596_v42 = vpop.permute.xlu1 %595 }
  0xa1   : > { %5204 = vmatmul.mubr.msk.bf16.gmra.mxu1 %vm840_vm5, %v5851_v35  ;;  %v760_v12 = vsel %vm750_vm3, %v5616_v44, %v596_v42 }
  0xa3   : > { %v721_v46 = vpop.permute.xlu0 %720 }
  0xa4   : > { %v795_v33 = vsel %vm787_vm4, %v758_v61, %v721_v46  ;;  %v723_v47 = vpop.permute.xlu1 %722 }
  0xa5   : > { %v797_v3 = vsel %vm787_vm4, %v760_v12, %v723_v47  ;;  %5187 = vmatprep.mubr.msk.bf16.mxu0 %vm840_vm5, %v795_v33 }
  0xa6   : > { %5188 = vmatmul.mubr.msk.bf16.gmra.mxu0 %vm840_vm5, %v797_v3 }
  0xa7   : > { %v614_v31 = vpop.permute.xlu0 %613 }
  0xa8   : > { %v616_v48 = vpop.permute.xlu1 %615  ;;  %v778_v49 = vsel %vm750_vm3, %v5621_v50, %v614_v31 }
  0xa9   : > { %v780_v44 = vsel %vm750_vm3, %v5639_v8, %v616_v48 }
  0xab   : > { %v741_v51 = vpop.permute.xlu0 %740 }
  0xac   : > { %v5866_v23 = vsel %vm787_vm4, %v778_v49, %v741_v51  ;;  %v598_v43 = vpop.permute.xlu1 %597 }
  0xad   : > { %5207 = vmatprep.mubr.msk.bf16.mxu1 %vm840_vm5, %v5866_v23  ;;  %v762_v50 = vsel %vm750_vm3, %v5659_v25, %v598_v43 }
  0xaf   : > { %v743_v52 = vpop.permute.xlu0 %742 }
  0xb0   : > { %v5873_v37 = vsel %vm787_vm4, %v780_v44, %v743_v52  ;;  %v600_v53 = vpop.permute.xlu1 %599 }
  0xb1   : > { %5208 = vmatmul.mubr.msk.bf16.gmra.mxu1 %vm840_vm5, %v5873_v37  ;;  %v764_v56 = vsel %vm750_vm3, %v5678_v41, %v600_v53 }
  0xb3   : > { %v725_v54 = vpop.permute.xlu0 %724 }
  0xb4   : > { %v799_v57 = vsel %vm787_vm4, %v762_v50, %v725_v54  ;;  %v727_v58 = vpop.permute.xlu1 %726 }
  0xb5   : > { %v801_v8 = vsel %vm787_vm4, %v764_v56, %v727_v58  ;;  %5191 = vmatprep.mubr.msk.bf16.mxu0 %vm840_vm5, %v799_v57  ;;  %v6057_v58 = vld [vmem:[%s7795_s2] ss:$0 sm:$0xff] }
  0xb6   : > { %5192 = vmatmul.mubr.msk.bf16.gmra.mxu0 %vm840_vm5, %v801_v8 }
  0xb7   : > { %v618_v59 = vpop.permute.xlu0 %617 }
  0xb8   : > { %v620_v55 = vpop.permute.xlu1 %619  ;;  %v782_v62 = vsel %vm750_vm3, %v5698_v60, %v618_v59 }
  0xb9   : > { %v784_v41 = vsel %vm750_vm3, %v5703_v1, %v620_v55 }
  0xbb   : > { %v745_v63 = vpop.permute.xlu0 %744 }
  0xbc   : > { %v819_v25 = vsel %vm787_vm4, %v782_v62, %v745_v63  ;;  %v602_v2 = vpop.permute.xlu1 %601 }
  0xbd   : > { %5211 = vmatprep.mubr.msk.bf16.mxu1 %vm840_vm5, %v819_v25  ;;  %v766_v9 = vsel %vm750_vm3, %v5721_v27, %v602_v2 }
  0xbf   : > { %v747_v4 = vpop.permute.xlu0 %746 }
  0xc0   : > { %v821_v6 = vsel %vm787_vm4, %v784_v41, %v747_v4  ;;  %v604_v7 = vpop.permute.xlu1 %603 }
  0xc1   : > { %5212 = vmatmul.mubr.msk.bf16.gmra.mxu1 %vm840_vm5, %v821_v6  ;;  %v768_v60 = vsel %vm750_vm3, %v5737_v45, %v604_v7 }
  0xc3   : > { %v729_v11 = vpop.permute.xlu0 %728 }
  0xc4   : > { %v803_v14 = vsel %vm787_vm4, %v766_v9, %v729_v11  ;;  %v731_v18 = vpop.permute.xlu1 %730 }
  0xc5   : > { %v805_v19 = vsel %vm787_vm4, %v768_v60, %v731_v18  ;;  %5195 = vmatprep.mubr.msk.bf16.mxu0 %vm840_vm5, %v803_v14 }
  0xc6   : > { %5196 = vmatmul.mubr.msk.bf16.gmra.mxu0 %vm840_vm5, %v805_v19 }
  0xc7   : > { %5255 = vmatprep.mubr.msk.bf16.mxu0 %vm840_vm5, %v5833_v32  ;;  %v588_v1 = vpop.permute.xlu0 %587 }
  0xc8   : > { %v752_v27 = vsel %vm750_vm3, %v5759_v15, %v588_v1  ;;  %v715_v0 = vpop.permute.xlu1 %714  ;;  %v5463_v15 = vmov 0.0  }
  0xc9   : > { %v789_v26 = vsel %vm787_vm4, %v752_v27, %v715_v0  ;;  %1503 = vst.msk [vmem:[#allocation2 + $0x30] sm:$0xff] %vm1495_vm6, %v5463_v15  ;;  %1504 = vst.msk [vmem:[#allocation2 + $0x38] sm:$0xff] %vm1495_vm6, %v5463_v15 }
  0xca   : > { %5219 = vmatprep.mubr.msk.bf16.mxu1 %vm840_vm5, %v789_v26  ;;  %1496 = vst.msk [vmem:[#allocation2] sm:$0xff] %vm1495_vm6, %v5463_v15  ;;  %1497 = vst.msk [vmem:[#allocation2 + $0x8] sm:$0xff] %vm1495_vm6, %v5463_v15 }
  0xcb   : > { %5220 = vmatmul.mubr.msk.bf16.vlgmr.msra.gmra.mxu1 %vm840_vm5, %v5813_v22  ;;  %v622_v45 = vpop.permute.xlu0 %621  ;;  %1500 = vst.msk [vmem:[#allocation2 + $0x18] sm:$0xff] %vm1495_vm6, %v5463_v15  ;;  %1501 = vst.msk [vmem:[#allocation2 + $0x20] sm:$0xff] %vm1495_vm6, %v5463_v15 }
  0xcc   : > { %5223 = vmatprep.mubr.msk.bf16.mxu1 %vm840_vm5, %v5833_v32  ;;  %v786_v10 = vsel %vm750_vm3, %v5762_v20, %v622_v45  ;;  %v749_v28 = vpop.permute.xlu1 %748  ;;  %1506 = vst.msk [vmem:[#allocation2 + $0x48] sm:$0xff] %vm1495_vm6, %v5463_v15  ;;  %1507 = vst.msk [vmem:[#allocation2 + $0x50] sm:$0xff] %vm1495_vm6, %v5463_v15 }
  0xcd   : > { %v823_v24 = vsel %vm787_vm4, %v786_v10, %v749_v28  ;;  %1509 = vst.msk [vmem:[#allocation2 + $0x60] sm:$0xff] %vm1495_vm6, %v5463_v15  ;;  %1510 = vst.msk [vmem:[#allocation2 + $0x68] sm:$0xff] %vm1495_vm6, %v5463_v15 }
  0xce   : > { %5256 = vmatmul.mubr.msk.bf16.vlgmr.msra.gmra.mxu0 %vm840_vm5, %v795_v33  ;;  %1512 = vst.msk [vmem:[#allocation2 + $0x78] sm:$0xff] %vm1495_vm6, %v5463_v15  ;;  %1513 = vst.msk [vmem:[#allocation2 + $0x80] sm:$0xff] %vm1495_vm6, %v5463_v15 }
  0xcf   : > { %5259 = vmatprep.mubr.msk.bf16.mxu0 %vm840_vm5, %v797_v3  ;;  %1515 = vst.msk [vmem:[#allocation2 + $0x90] sm:$0xff] %vm1495_vm6, %v5463_v15  ;;  %1516 = vst.msk [vmem:[#allocation2 + $0x98] sm:$0xff] %vm1495_vm6, %v5463_v15 }
  0xd0   : > { %1518 = vst.msk [vmem:[#allocation2 + $0xa8] sm:$0xff] %vm1495_vm6, %v5463_v15  ;;  %1519 = vst.msk [vmem:[#allocation2 + $0xb0] sm:$0xff] %vm1495_vm6, %v5463_v15 }
  0xd1   : > { %1521 = vst.msk [vmem:[#allocation2 + $0xc0] sm:$0xff] %vm1495_vm6, %v5463_v15  ;;  %1522 = vst.msk [vmem:[#allocation2 + $0xc8] sm:$0xff] %vm1495_vm6, %v5463_v15 }
  0xd2   : > { %1524 = vst.msk [vmem:[#allocation2 + $0xd8] sm:$0xff] %vm1495_vm6, %v5463_v15  ;;  %1525 = vst.msk [vmem:[#allocation2 + $0xe0] sm:$0xff] %vm1495_vm6, %v5463_v15 }
  0xd3   : > { %5224 = vmatmul.mubr.msk.bf16.gmra.mxu1 %vm840_vm5, %v795_v33  ;;  %1527 = vst.msk [vmem:[#allocation2 + $0xf0] sm:$0xff] %vm1495_vm6, %v5463_v15  ;;  %1528 = vst.msk [vmem:[#allocation2 + $0xf8] sm:$0xff] %vm1495_vm6, %v5463_v15 }
  0xd4   : > { %5227 = vmatprep.mubr.msk.bf16.mxu1 %vm840_vm5, %v797_v3  ;;  %1530 = vst.msk [vmem:[#allocation2 + $0x108] sm:$0xff] %vm1495_vm6, %v5463_v15  ;;  %1531 = vst.msk [vmem:[#allocation2 + $0x110] sm:$0xff] %vm1495_vm6, %v5463_v15 }
  0xd5   : > { %1533 = vst.msk [vmem:[#allocation2 + $0x120] sm:$0xff] %vm1495_vm6, %v5463_v15  ;;  %1534 = vst.msk [vmem:[#allocation2 + $0x128] sm:$0xff] %vm1495_vm6, %v5463_v15 }
  0xd6   : > { %5260 = vmatmul.mubr.msk.bf16.gmra.mxu0 %vm840_vm5, %v799_v57  ;;  %1536 = vst.msk [vmem:[#allocation2 + $0x138] sm:$0xff] %vm1495_vm6, %v5463_v15  ;;  %1537 = vst.msk [vmem:[#allocation2 + $0x140] sm:$0xff] %vm1495_vm6, %v5463_v15 }
  0xd7   : > { %5263 = vmatprep.mubr.msk.bf16.mxu0 %vm840_vm5, %v801_v8  ;;  %1539 = vst.msk [vmem:[#allocation2 + $0x150] sm:$0xff] %vm1495_vm6, %v5463_v15  ;;  %1540 = vst.msk [vmem:[#allocation2 + $0x158] sm:$0xff] %vm1495_vm6, %v5463_v15 }
  0xd8   : > { %1542 = vst.msk [vmem:[#allocation2 + $0x168] sm:$0xff] %vm1495_vm6, %v5463_v15  ;;  %1543 = vst.msk [vmem:[#allocation2 + $0x170] sm:$0xff] %vm1495_vm6, %v5463_v15 }
  0xd9   : > { %1545 = vst.msk [vmem:[#allocation2 + $0x180] sm:$0xff] %vm1495_vm6, %v5463_v15  ;;  %1546 = vst.msk [vmem:[#allocation2 + $0x188] sm:$0xff] %vm1495_vm6, %v5463_v15 }
  0xda   : > { %1548 = vst.msk [vmem:[#allocation2 + $0x198] sm:$0xff] %vm1495_vm6, %v5463_v15  ;;  %1549 = vst.msk [vmem:[#allocation2 + $0x1a0] sm:$0xff] %vm1495_vm6, %v5463_v15 }
  0xdb   : > { %5228 = vmatmul.mubr.msk.bf16.gmra.mxu1 %vm840_vm5, %v799_v57  ;;  %1499 = vst.msk [vmem:[#allocation2 + $0x10] sm:$0x3] %vm1498_vm7, %v5463_v15  ;;  %1505 = vst.msk [vmem:[#allocation2 + $0x40] sm:$0x3] %vm1498_vm7, %v5463_v15 }
  0xdc   : > { %5231 = vmatprep.mubr.msk.bf16.mxu1 %vm840_vm5, %v801_v8  ;;  %1550 = vst.msk [vmem:[#allocation2 + $0x1a8] sm:$0x3] %vm1498_vm7, %v5463_v15  ;;  %1502 = vst.msk [vmem:[#allocation2 + $0x28] sm:$0x3] %vm1498_vm7, %v5463_v15 }
  0xdd   : > { %1508 = vst.msk [vmem:[#allocation2 + $0x58] sm:$0x3] %vm1498_vm7, %v5463_v15  ;;  %1511 = vst.msk [vmem:[#allocation2 + $0x70] sm:$0x3] %vm1498_vm7, %v5463_v15 }
  0xde   : > { %5264 = vmatmul.mubr.msk.bf16.gmra.mxu0 %vm840_vm5, %v803_v14  ;;  %1514 = vst.msk [vmem:[#allocation2 + $0x88] sm:$0x3] %vm1498_vm7, %v5463_v15  ;;  %1517 = vst.msk [vmem:[#allocation2 + $0xa0] sm:$0x3] %vm1498_vm7, %v5463_v15 }
  0xdf   : > { %5267 = vmatprep.mubr.msk.bf16.mxu0 %vm840_vm5, %v805_v19  ;;  %1520 = vst.msk [vmem:[#allocation2 + $0xb8] sm:$0x3] %vm1498_vm7, %v5463_v15  ;;  %1523 = vst.msk [vmem:[#allocation2 + $0xd0] sm:$0x3] %vm1498_vm7, %v5463_v15 }
  0xe0   : > { %1526 = vst.msk [vmem:[#allocation2 + $0xe8] sm:$0x3] %vm1498_vm7, %v5463_v15  ;;  %1529 = vst.msk [vmem:[#allocation2 + $0x100] sm:$0x3] %vm1498_vm7, %v5463_v15 }
  0xe1   : > { %1532 = vst.msk [vmem:[#allocation2 + $0x118] sm:$0x3] %vm1498_vm7, %v5463_v15  ;;  %1535 = vst.msk [vmem:[#allocation2 + $0x130] sm:$0x3] %vm1498_vm7, %v5463_v15 }
  0xe2   : > { %1538 = vst.msk [vmem:[#allocation2 + $0x148] sm:$0x3] %vm1498_vm7, %v5463_v15  ;;  %1541 = vst.msk [vmem:[#allocation2 + $0x160] sm:$0x3] %vm1498_vm7, %v5463_v15 }
  0xe3   : > { %5232 = vmatmul.mubr.msk.bf16.gmra.mxu1 %vm840_vm5, %v803_v14  ;;  %1544 = vst.msk [vmem:[#allocation2 + $0x178] sm:$0x3] %vm1498_vm7, %v5463_v15  ;;  %1547 = vst.msk [vmem:[#allocation2 + $0x190] sm:$0x3] %vm1498_vm7, %v5463_v15 }
  0xe4   : > { %5235 = vmatprep.mubr.msk.bf16.mxu1 %vm840_vm5, %v805_v19 }
  0xe6   : > { %5268 = vmatmul.mubr.msk.bf16.gmra.mxu0 %vm840_vm5, %v5810_v21 }
  0xe7   : > { %5271 = vmatprep.mubr.msk.bf16.mxu0 %vm840_vm5, %v5827_v29 }
  0xeb   : > { %5236 = vmatmul.mubr.msk.bf16.gmra.mxu1 %vm840_vm5, %v5810_v21 }
  0xec   : > { %5239 = vmatprep.mubr.msk.bf16.mxu1 %vm840_vm5, %v5827_v29 }
  0xee   : > { %5272 = vmatmul.mubr.msk.bf16.gmra.mxu0 %vm840_vm5, %v5844_v13 }
  0xef   : > { %5275 = vmatprep.mubr.msk.bf16.mxu0 %vm840_vm5, %v5851_v35 }
  0xf3   : > { %5240 = vmatmul.mubr.msk.bf16.gmra.mxu1 %vm840_vm5, %v5844_v13 }
  0xf4   : > { %5243 = vmatprep.mubr.msk.bf16.mxu1 %vm840_vm5, %v5851_v35 }
  0xf6   : > { %5276 = vmatmul.mubr.msk.bf16.gmra.mxu0 %vm840_vm5, %v5866_v23 }
  0xf7   : > { %5279 = vmatprep.mubr.msk.bf16.mxu0 %vm840_vm5, %v5873_v37 }
  0xfb   : > { %5244 = vmatmul.mubr.msk.bf16.gmra.mxu1 %vm840_vm5, %v5866_v23 }
  0xfc   : > { %5247 = vmatprep.mubr.msk.bf16.mxu1 %vm840_vm5, %v5873_v37 }
  0xfe   : > { %5280 = vmatmul.mubr.msk.bf16.gmra.mxu0 %vm840_vm5, %v819_v25 }
  0xff   : > { %5283 = vmatprep.mubr.msk.bf16.mxu0 %vm840_vm5, %v821_v6 }
 0x103   : > { %5248 = vmatmul.mubr.msk.bf16.gmra.mxu1 %vm840_vm5, %v819_v25 }
 0x106   : > { %5284 = vmatmul.mubr.msk.bf16.gmra.mxu0 %vm840_vm5, %v823_v24 }
 0x156   : > { %v6008_v20 = vpop.f32.mrf.mxu1 }
 0x157   : > { %v5185_v22 = vpop.f32.mrf.mxu0 }
 0x158   : > { %v6010_v21 = vpop.f32.mrf.mxu1 }
 0x159   : > { %v911_v29 = vpop.f32.mrf.mxu0 }
 0x15a   : > { %v6012_v16 = vpop.f32.mrf.mxu1 }
 0x15b   : > { %v5186_v32 = vpop.f32.mrf.mxu0 }
 0x15c   : > { %v6014_v30 = vpop.f32.mrf.mxu1 }
 0x15d   : > { %v914_v17 = vpop.f32.mrf.mxu0 }
 0x161   : > { %v6016_v5 = vpop.f32.mrf.mxu1 }
 0x163   : > { %v6018_v36 = vpop.f32.mrf.mxu1 }
 0x165   : > { %v6020_v13 = vpop.f32.mrf.mxu1 }
 0x166   : > { %v5189_v38 = vpop.f32.mrf.mxu0 }
 0x167   : > { %v6022_v34 = vpop.f32.mrf.mxu1 }
 0x168   : > { %v927_v39 = vpop.f32.mrf.mxu0 }
 0x16a   : > { %v5190_v40 = vpop.f32.mrf.mxu0 }
 0x16c   : > { %v930_v42 = vpop.f32.mrf.mxu0 }
 0x171   : > { %v6024_v35 = vpop.f32.mrf.mxu1 }
 0x173   : > { %v6026_v61 = vpop.f32.mrf.mxu1 }
 0x175   : > { %v6028_v12 = vpop.f32.mrf.mxu1 }
 0x176   : > { %v5193_v46 = vpop.f32.mrf.mxu0 }
 0x177   : > { %v6032_v47 = vpop.f32.mrf.mxu1 }
 0x178   : > { %v6030_v33 = vpop.f32.mrf.mxu0 }
 0x17a   : > { %v6034_v3 = vpop.f32.mrf.mxu0 }
 0x17c   : > { %v6040_v49 = vpop.f32.mrf.mxu0 }
 0x181   : > { %v6036_v31 = vpop.f32.mrf.mxu1 }
 0x183   : > { %v6038_v48 = vpop.f32.mrf.mxu1 }
 0x185   : > { %v6042_v51 = vpop.f32.mrf.mxu1 }
 0x186   : > { %v6044_v23 = vpop.f32.mrf.mxu0 }
 0x187   : > { %v6048_v44 = vpop.f32.mrf.mxu1 }
 0x188   : > { %v6046_v43 = vpop.f32.mrf.mxu0 }
 0x18a   : > { %v6050_v52 = vpop.f32.mrf.mxu0 }
 0x18b   : > { %v5221_v37 = vpop.f32.mrf.mxu1 }
 0x18c   : > { %v1095_v53 = vadd.f32 %v5221_v37, %v5185_v22  ;;  %v6052_v50 = vpop.f32.mrf.mxu0 }
 0x18d   : > { %v1086_v54 = vpop.f32.mrf.mxu1 }
 0x18e   : > { %v1087_v56 = vadd.f32 %v1086_v54, %v911_v29  ;;  %v5257_v57 = vpop.f32.mrf.mxu0 }
 0x18f   : > { %v1394_v8 = vadd.f32 %v5257_v57, %v1095_v53  ;;  %v5222_v59 = vpop.f32.mrf.mxu1 }
 0x190   : > { %v1098_v55 = vadd.f32 %v5222_v59, %v5186_v32  ;;  %v1265_v62 = vpop.f32.mrf.mxu0 }
 0x191   : > { %v1433_v63 = vadd.f32 %v6057_v58, %v1394_v8  ;;  %v1392_v25 = vadd.f32 %v1265_v62, %v1087_v56  ;;  %v1089_v2 = vpop.f32.mrf.mxu1 }
 0x192   : > { %v1090_v41 = vadd.f32 %v1089_v2, %v914_v17  ;;  %v5258_v4 = vpop.f32.mrf.mxu0 }
 0x193   : > { %v1465_v6 = vmax.f32 %v1433_v63, 0.0  ;;  %v1431_v7 = vadd.f32 %v6057_v58, %v1392_v25  ;;  %v1395_v9 = vadd.f32 %v5258_v4, %v1098_v55  ;;  %v5225_v11 = vpop.f32.mrf.mxu1 }
 0x194   : > { %v1111_v60 = vadd.f32 %v5225_v11, %v5189_v38  ;;  %v1268_v14 = vpop.f32.mrf.mxu0 }
 0x195   : > { %1554 = vst.msk [vmem:[#allocation2 + $0x31] sm:$0xff] %vm1495_vm6, %v1465_v6  ;;  %v1463_v18 = vmax.f32 %v1431_v7, 0.0  ;;  %v1434_v19 = vadd.f32 %v6057_v58, %v1395_v9  ;;  %v1393_v1 = vadd.f32 %v1268_v14, %v1090_v41  ;;  %v1102_v27 = vpop.f32.mrf.mxu1 }
 0x196   : > { %v1103_v0 = vadd.f32 %v1102_v27, %v927_v39  ;;  %v5261_v26 = vpop.f32.mrf.mxu0 }
 0x197   : > { %1552 = vst.msk [vmem:[#allocation2 + $0x19] sm:$0xff] %vm1495_vm6, %v1463_v18  ;;  %v1466_v45 = vmax.f32 %v1434_v19, 0.0  ;;  %v1432_v10 = vadd.f32 %v6057_v58, %v1393_v1  ;;  %v1398_v28 = vadd.f32 %v5261_v26, %v1111_v60  ;;  %v5226_v24 = vpop.f32.mrf.mxu1 }
 0x198   : > { %v1114_v15 = vadd.f32 %v5226_v24, %v5190_v40  ;;  %v1281_v22 = vpop.f32.mrf.mxu0 }
 0x199   : > { %1555 = vst.msk [vmem:[#allocation2 + $0x39] sm:$0xff] %vm1495_vm6, %v1466_v45  ;;  %v1464_v29 = vmax.f32 %v1432_v10, 0.0  ;;  %v1437_v32 = vadd.f32 %v6057_v58, %v1398_v28  ;;  %v1396_v17 = vadd.f32 %v1281_v22, %v1103_v0  ;;  %v1105_v38 = vpop.f32.mrf.mxu1 }
 0x19a   : > { %v1106_v37 = vadd.f32 %v1105_v38, %v930_v42  ;;  %v5262_v53 = vpop.f32.mrf.mxu0 }
 0x19b   : > { %1553 = vst.msk [vmem:[#allocation2 + $0x21] sm:$0xff] %vm1495_vm6, %v1464_v29  ;;  %v1469_v39 = vmax.f32 %v1437_v32, 0.0  ;;  %v1435_v54 = vadd.f32 %v6057_v58, %v1396_v17  ;;  %v1399_v56 = vadd.f32 %v5262_v53, %v1114_v15  ;;  %v5229_v57 = vpop.f32.mrf.mxu1 }
 0x19c   : > { %v1127_v8 = vadd.f32 %v5229_v57, %v5193_v46  ;;  %v1284_v59 = vpop.f32.mrf.mxu0 }
 0x19d   : > { %1558 = vst.msk [vmem:[#allocation2 + $0x61] sm:$0xff] %vm1495_vm6, %v1469_v39  ;;  %v1467_v40 = vmax.f32 %v1435_v54, 0.0  ;;  %v1438_v55 = vadd.f32 %v6057_v58, %v1399_v56  ;;  %v1397_v62 = vadd.f32 %v1284_v59, %v1106_v37  ;;  %v1118_v63 = vpop.f32.mrf.mxu1 }
 0x19e   : > { %v1119_v25 = vadd.f32 %v1118_v63, %v6030_v33  ;;  %v5265_v42 = vpop.f32.mrf.mxu0 }
 0x19f   : > { %1556 = vst.msk [vmem:[#allocation2 + $0x49] sm:$0xff] %vm1495_vm6, %v1467_v40  ;;  %v1470_v2 = vmax.f32 %v1438_v55, 0.0  ;;  %v1436_v41 = vadd.f32 %v6057_v58, %v1397_v62  ;;  %v1402_v4 = vadd.f32 %v5265_v42, %v1127_v8  ;;  %v5230_v6 = vpop.f32.mrf.mxu1 }
 0x1a0   : > { %v1130_v46 = vadd.f32 %v5230_v6, %v6034_v3  ;;  %v1297_v7 = vpop.f32.mrf.mxu0 }
 0x1a1   : > { %1559 = vst.msk [vmem:[#allocation2 + $0x69] sm:$0xff] %vm1495_vm6, %v1470_v2  ;;  %v1468_v9 = vmax.f32 %v1436_v41, 0.0  ;;  %v1441_v11 = vadd.f32 %v6057_v58, %v1402_v4  ;;  %v1400_v60 = vadd.f32 %v1297_v7, %v1119_v25  ;;  %v1121_v14 = vpop.f32.mrf.mxu1 }
 0x1a2   : > { %v1122_v33 = vadd.f32 %v1121_v14, %v6040_v49  ;;  %v5266_v18 = vpop.f32.mrf.mxu0 }
 0x1a3   : > { %1557 = vst.msk [vmem:[#allocation2 + $0x51] sm:$0xff] %vm1495_vm6, %v1468_v9  ;;  %v1473_v19 = vmax.f32 %v1441_v11, 0.0  ;;  %v1439_v1 = vadd.f32 %v6057_v58, %v1400_v60  ;;  %v1403_v27 = vadd.f32 %v5266_v18, %v1130_v46  ;;  %v5233_v0 = vpop.f32.mrf.mxu1 }
 0x1a4   : > { %v1143_v3 = vadd.f32 %v5233_v0, %v6044_v23  ;;  %v1300_v26 = vpop.f32.mrf.mxu0 }
 0x1a5   : > { %1562 = vst.msk [vmem:[#allocation2 + $0x91] sm:$0xff] %vm1495_vm6, %v1473_v19  ;;  %v1471_v45 = vmax.f32 %v1439_v1, 0.0  ;;  %v1442_v10 = vadd.f32 %v6057_v58, %v1403_v27  ;;  %v1401_v28 = vadd.f32 %v1300_v26, %v1122_v33  ;;  %v1134_v24 = vpop.f32.mrf.mxu1 }
 0x1a6   : > { %v1135_v49 = vadd.f32 %v1134_v24, %v6046_v43  ;;  %v5269_v15 = vpop.f32.mrf.mxu0 }
 0x1a7   : > { %1560 = vst.msk [vmem:[#allocation2 + $0x79] sm:$0xff] %vm1495_vm6, %v1471_v45  ;;  %v1474_v22 = vmax.f32 %v1442_v10, 0.0  ;;  %v1440_v29 = vadd.f32 %v6057_v58, %v1401_v28  ;;  %v1406_v32 = vadd.f32 %v5269_v15, %v1143_v3  ;;  %v5234_v17 = vpop.f32.mrf.mxu1 }
 0x1a8   : > { %v1146_v23 = vadd.f32 %v5234_v17, %v6050_v52  ;;  %v1313_v38 = vpop.f32.mrf.mxu0 }
 0x1a9   : > { %1563 = vst.msk [vmem:[#allocation2 + $0x99] sm:$0xff] %vm1495_vm6, %v1474_v22  ;;  %v1472_v37 = vmax.f32 %v1440_v29, 0.0  ;;  %v1445_v53 = vadd.f32 %v6057_v58, %v1406_v32  ;;  %v1404_v39 = vadd.f32 %v1313_v38, %v1135_v49  ;;  %v1137_v54 = vpop.f32.mrf.mxu1 }
 0x1aa   : > { %v1138_v43 = vadd.f32 %v1137_v54, %v6052_v50  ;;  %v5270_v56 = vpop.f32.mrf.mxu0 }
 0x1ab   : > { %1561 = vst.msk [vmem:[#allocation2 + $0x81] sm:$0xff] %vm1495_vm6, %v1472_v37  ;;  %v1477_v57 = vmax.f32 %v1445_v53, 0.0  ;;  %v1443_v8 = vadd.f32 %v6057_v58, %v1404_v39  ;;  %v1407_v59 = vadd.f32 %v5270_v56, %v1146_v23  ;;  %v5237_v40 = vpop.f32.mrf.mxu1 }
 0x1ac   : > { %v1159_v52 = vadd.f32 %v5237_v40, %v6008_v20  ;;  %v1316_v55 = vpop.f32.mrf.mxu0 }
 0x1ad   : > { %1566 = vst.msk [vmem:[#allocation2 + $0xc1] sm:$0xff] %vm1495_vm6, %v1477_v57  ;;  %v1475_v62 = vmax.f32 %v1443_v8, 0.0  ;;  %v1446_v63 = vadd.f32 %v6057_v58, %v1407_v59  ;;  %v1405_v25 = vadd.f32 %v1316_v55, %v1138_v43  ;;  %v1150_v42 = vpop.f32.mrf.mxu1 }
 0x1ae   : > { %v1151_v50 = vadd.f32 %v1150_v42, %v6010_v21  ;;  %v5273_v2 = vpop.f32.mrf.mxu0 }
 0x1af   : > { %1564 = vst.msk [vmem:[#allocation2 + $0xa9] sm:$0xff] %vm1495_vm6, %v1475_v62  ;;  %v1478_v41 = vmax.f32 %v1446_v63, 0.0  ;;  %v1444_v4 = vadd.f32 %v6057_v58, %v1405_v25  ;;  %v1410_v6 = vadd.f32 %v5273_v2, %v1159_v52  ;;  %v5238_v46 = vpop.f32.mrf.mxu1 }
 0x1b0   : > { %v1162_v20 = vadd.f32 %v5238_v46, %v6012_v16  ;;  %v1329_v7 = vpop.f32.mrf.mxu0 }
 0x1b1   : > { %1567 = vst.msk [vmem:[#allocation2 + $0xc9] sm:$0xff] %vm1495_vm6, %v1478_v41  ;;  %v1476_v9 = vmax.f32 %v1444_v4, 0.0  ;;  %v1449_v11 = vadd.f32 %v6057_v58, %v1410_v6  ;;  %v1408_v60 = vadd.f32 %v1329_v7, %v1151_v50  ;;  %v1153_v14 = vpop.f32.mrf.mxu1 }
 0x1b2   : > { %v1154_v21 = vadd.f32 %v1153_v14, %v6014_v30  ;;  %v5274_v33 = vpop.f32.mrf.mxu0 }
 0x1b3   : > { %1565 = vst.msk [vmem:[#allocation2 + $0xb1] sm:$0xff] %vm1495_vm6, %v1476_v9  ;;  %v1481_v18 = vmax.f32 %v1449_v11, 0.0  ;;  %v1447_v19 = vadd.f32 %v6057_v58, %v1408_v60  ;;  %v1411_v1 = vadd.f32 %v5274_v33, %v1162_v20  ;;  %v5241_v27 = vpop.f32.mrf.mxu1 }
 0x1b4   : > { %v1175_v16 = vadd.f32 %v5241_v27, %v6016_v5  ;;  %v1332_v0 = vpop.f32.mrf.mxu0 }
 0x1b5   : > { %1570 = vst.msk [vmem:[#allocation2 + $0xf1] sm:$0xff] %vm1495_vm6, %v1481_v18  ;;  %v1479_v3 = vmax.f32 %v1447_v19, 0.0  ;;  %v1450_v26 = vadd.f32 %v6057_v58, %v1411_v1  ;;  %v1409_v45 = vadd.f32 %v1332_v0, %v1154_v21  ;;  %v1166_v10 = vpop.f32.mrf.mxu1 }
 0x1b6   : > { %v1167_v30 = vadd.f32 %v1166_v10, %v6018_v36  ;;  %v5277_v28 = vpop.f32.mrf.mxu0 }
 0x1b7   : > { %1568 = vst.msk [vmem:[#allocation2 + $0xd9] sm:$0xff] %vm1495_vm6, %v1479_v3  ;;  %v1482_v24 = vmax.f32 %v1450_v26, 0.0  ;;  %v1448_v49 = vadd.f32 %v6057_v58, %v1409_v45  ;;  %v1414_v15 = vadd.f32 %v5277_v28, %v1175_v16  ;;  %v5242_v22 = vpop.f32.mrf.mxu1 }
 0x1b8   : > { %v1178_v5 = vadd.f32 %v5242_v22, %v6020_v13  ;;  %v1345_v29 = vpop.f32.mrf.mxu0 }
 0x1b9   : > { %1571 = vst.msk [vmem:[#allocation2 + $0xf9] sm:$0xff] %vm1495_vm6, %v1482_v24  ;;  %v1480_v32 = vmax.f32 %v1448_v49, 0.0  ;;  %v1453_v17 = vadd.f32 %v6057_v58, %v1414_v15  ;;  %v1412_v23 = vadd.f32 %v1345_v29, %v1167_v30  ;;  %v1169_v38 = vpop.f32.mrf.mxu1 }
 0x1ba   : > { %v1170_v36 = vadd.f32 %v1169_v38, %v6022_v34  ;;  %v5278_v37 = vpop.f32.mrf.mxu0 }
 0x1bb   : > { %1569 = vst.msk [vmem:[#allocation2 + $0xe1] sm:$0xff] %vm1495_vm6, %v1480_v32  ;;  %v1485_v53 = vmax.f32 %v1453_v17, 0.0  ;;  %v1451_v39 = vadd.f32 %v6057_v58, %v1412_v23  ;;  %v1415_v54 = vadd.f32 %v5278_v37, %v1178_v5  ;;  %v5245_v43 = vpop.f32.mrf.mxu1 }
 0x1bc   : > { %v1191_v13 = vadd.f32 %v5245_v43, %v6024_v35  ;;  %v1348_v56 = vpop.f32.mrf.mxu0 }
 0x1bd   : > { %1574 = vst.msk [vmem:[#allocation2 + $0x121] sm:$0xff] %vm1495_vm6, %v1485_v53  ;;  %v1483_v57 = vmax.f32 %v1451_v39, 0.0  ;;  %v1454_v8 = vadd.f32 %v6057_v58, %v1415_v54  ;;  %v1413_v59 = vadd.f32 %v1348_v56, %v1170_v36  ;;  %v1182_v40 = vpop.f32.mrf.mxu1 }
 0x1be   : > { %v1183_v34 = vadd.f32 %v1182_v40, %v6026_v61  ;;  %v5281_v52 = vpop.f32.mrf.mxu0 }
 0x1bf   : > { %1572 = vst.msk [vmem:[#allocation2 + $0x109] sm:$0xff] %vm1495_vm6, %v1483_v57  ;;  %v1486_v55 = vmax.f32 %v1454_v8, 0.0  ;;  %v1452_v62 = vadd.f32 %v6057_v58, %v1413_v59  ;;  %v1418_v63 = vadd.f32 %v5281_v52, %v1191_v13  ;;  %v5246_v25 = vpop.f32.mrf.mxu1 }
 0x1c0   : > { %v1194_v35 = vadd.f32 %v5246_v25, %v6028_v12  ;;  %v1361_v42 = vpop.f32.mrf.mxu0 }
 0x1c1   : > { %1575 = vst.msk [vmem:[#allocation2 + $0x129] sm:$0xff] %vm1495_vm6, %v1486_v55  ;;  %v1484_v50 = vmax.f32 %v1452_v62, 0.0  ;;  %v1457_v2 = vadd.f32 %v6057_v58, %v1418_v63  ;;  %v1416_v41 = vadd.f32 %v1361_v42, %v1183_v34  ;;  %v1185_v4 = vpop.f32.mrf.mxu1 }
 0x1c2   : > { %v1186_v61 = vadd.f32 %v1185_v4, %v6032_v47  ;;  %v5282_v6 = vpop.f32.mrf.mxu0 }
 0x1c3   : > { %1573 = vst.msk [vmem:[#allocation2 + $0x111] sm:$0xff] %vm1495_vm6, %v1484_v50  ;;  %v1489_v46 = vmax.f32 %v1457_v2, 0.0  ;;  %v1455_v20 = vadd.f32 %v6057_v58, %v1416_v41  ;;  %v1419_v7 = vadd.f32 %v5282_v6, %v1194_v35  ;;  %v5249_v9 = vpop.f32.mrf.mxu1 }
 0x1c4   : > { %v1207_v12 = vadd.f32 %v5249_v9, %v6036_v31  ;;  %v1364_v11 = vpop.f32.mrf.mxu0 }
 0x1c5   : > { %1578 = vst.msk [vmem:[#allocation2 + $0x151] sm:$0xff] %vm1495_vm6, %v1489_v46  ;;  %v1487_v60 = vmax.f32 %v1455_v20, 0.0  ;;  %v1458_v14 = vadd.f32 %v6057_v58, %v1419_v7  ;;  %v1417_v21 = vadd.f32 %v1364_v11, %v1186_v61  ;;  %v1198_v33 = vpop.f32.mrf.mxu1 }
 0x1c6   : > { %v1199_v47 = vadd.f32 %v1198_v33, %v6038_v48  ;;  %v5285_v18 = vpop.f32.mrf.mxu0 }
 0x1c7   : > { %1576 = vst.msk [vmem:[#allocation2 + $0x139] sm:$0xff] %vm1495_vm6, %v1487_v60  ;;  %v1490_v19 = vmax.f32 %v1458_v14, 0.0  ;;  %v1456_v1 = vadd.f32 %v6057_v58, %v1417_v21  ;;  %v1422_v27 = vadd.f32 %v5285_v18, %v1207_v12  ;;  %v5250_v16 = vpop.f32.mrf.mxu1 }
 0x1c8   : > { %v1210_v31 = vadd.f32 %v5250_v16, %v6042_v51  ;;  %v1377_v0 = vpop.f32.mrf.mxu0 }
 0x1c9   : > { %1579 = vst.msk [vmem:[#allocation2 + $0x159] sm:$0xff] %vm1495_vm6, %v1490_v19  ;;  %v1488_v3 = vmax.f32 %v1456_v1, 0.0  ;;  %v1461_v26 = vadd.f32 %v6057_v58, %v1422_v27  ;;  %v1420_v45 = vadd.f32 %v1377_v0, %v1199_v47  ;;  %v1201_v10 = vpop.f32.mrf.mxu1 }
 0x1ca   : > { %v1202_v48 = vadd.f32 %v1201_v10, %v6048_v44  ;;  %v5286_v30 = vpop.f32.mrf.mxu0 }
 0x1cb   : > { %1577 = vst.msk [vmem:[#allocation2 + $0x141] sm:$0xff] %vm1495_vm6, %v1488_v3  ;;  %v1493_v28 = vmax.f32 %v1461_v26, 0.0  ;;  %v1459_v24 = vadd.f32 %v6057_v58, %v1420_v45  ;;  %v1423_v49 = vadd.f32 %v5286_v30, %v1210_v31 }
 0x1cc   : > { %v1380_v15 = vpop.f32.mrf.mxu0 }
 0x1cd   : > { %1582 = vst.msk [vmem:[#allocation2 + $0x181] sm:$0xff] %vm1495_vm6, %v1493_v28  ;;  %v1491_v51 = vmax.f32 %v1459_v24, 0.0  ;;  %v1462_v22 = vadd.f32 %v6057_v58, %v1423_v49  ;;  %v1421_v5 = vadd.f32 %v1380_v15, %v1202_v48 }
 0x1cf   : > { %1580 = vst.msk [vmem:[#allocation2 + $0x169] sm:$0xff] %vm1495_vm6, %v1491_v51  ;;  %v1494_v29 = vmax.f32 %v1462_v22, 0.0  ;;  %v1460_v32 = vadd.f32 %v6057_v58, %v1421_v5 }
 0x1d1   : > { %1583 = vst.msk [vmem:[#allocation2 + $0x189] sm:$0xff] %vm1495_vm6, %v1494_v29  ;;  %v1492_v44 = vmax.f32 %v1460_v32, 0.0 }
 0x1d3   : > { %1581 = vst.msk [vmem:[#allocation2 + $0x171] sm:$0xff] %vm1495_vm6, %v1492_v44 }
 0x1d4 LB: >> { %v1617_v17 = vld [vmem:[#allocation2 + $0xd8] sm:$0xff]  ;;  %v1618_v23 = vld [vmem:[#allocation2 + $0xe0] sm:$0xff]  ;;  %v1619_v38 = vld [vmem:[#allocation2 + $0xe8] sm:$0x3]  ;;  %v5464_v54 = vmov 0   ;;  %s5465_s29 = smov 64   ;;  %s5459_s28 = sphi %s6146_s28, %s1589_s28  }
 0x1d5   : >> { %v6151_v36 = vpack.c.bf16 %v1618_v23, %v1617_v17  ;;  %v6153_v37 = vpack.c.bf16 %v1619_v38, %v1619_v38  ;;  %v1593_v58 = vld [vmem:[#allocation2 + $0x18] sm:$0xff]  ;;  %v1594_v53 = vld [vmem:[#allocation2 + $0x20] sm:$0xff]  ;;  %v1595_v39 = vld [vmem:[#allocation2 + $0x28] sm:$0x3]  ;;  %5291 = vmatprep.subr.bf16.mxu1 %v5464_v54  ;;  %2245 = vmatprep.subr.bf16.mxu0 %v5464_v54  ;;  %s1589_s28 = sadd.s32 1, %s5459_s28  }
 0x1d6   : >> { %v6157_v43 = vpack.c.bf16 %v1594_v53, %v1593_v58  ;;  %v6159_v13 = vpack.c.bf16 %v1595_v39, %v1595_v39  ;;  %v1620_v56 = vld [vmem:[#allocation2 + $0xf0] sm:$0xff]  ;;  %v1621_v57 = vld [vmem:[#allocation2 + $0xf8] sm:$0xff]  ;;  %v1622_v8 = vld [vmem:[#allocation2 + $0x100] sm:$0x3]  ;;  %p1586_p4 = scmp.ge.s32.totalorder %s1589_s28, 19  }
 0x1d7   : >> { %v1789_v59 = vshrl.u32 %v6151_v36, 16  ;;  %v1791_v40 = vshll.u32 %v6151_v36, 16  ;;  %v1796_v34 = vshll.u32 %v6153_v37, 16  ;;  %v6164_v52 = vpack.c.bf16 %v1621_v57, %v1620_v56  ;;  %v1596_v55 = vld [vmem:[#allocation2 + $0x30] sm:$0xff]  ;;  %v1597_v62 = vld [vmem:[#allocation2 + $0x38] sm:$0xff]  ;;  %v1623_v63 = vld [vmem:[#allocation2 + $0x108] sm:$0xff] }
 0x1d8   : >> { %v1693_v25 = vshrl.u32 %v6157_v43, 16  ;;  %v1695_v35 = vshll.u32 %v6157_v43, 16  ;;  %v1700_v42 = vshll.u32 %v6159_v13, 16  ;;  %v6169_v50 = vpack.c.bf16 %v1622_v8, %v1622_v8  ;;  %v1598_v2 = vld [vmem:[#allocation2 + $0x40] sm:$0x3]  ;;  %v1624_v41 = vld [vmem:[#allocation2 + $0x110] sm:$0xff] }
 0x1d9   : >> { %v1793_v4 = vrot.slane %v1791_v40, 1  ;;  %v1798_v61 = vrot.slane %v1796_v34, 1  ;;  %v1801_v6 = vshrl.u32 %v6164_v52, 16  ;;  %v1803_v46 = vshll.u32 %v6164_v52, 16  ;;  %v1625_v11 = vld [vmem:[#allocation2 + $0x118] sm:$0x3] }
 0x1da   : >> { %v1697_v20 = vrot.slane %v1695_v35, 1  ;;  %v1702_v7 = vrot.slane %v1700_v42, 1  ;;  %v1808_v9 = vshll.u32 %v6169_v50, 16  ;;  %v6174_v12 = vpack.c.bf16 %v1597_v62, %v1596_v55  ;;  %v1599_v27 = vld [vmem:[#allocation2 + $0x48] sm:$0xff]  ;;  %v1600_v16 = vld [vmem:[#allocation2 + $0x50] sm:$0xff]  ;;  %v1626_v10 = vld [vmem:[#allocation2 + $0x120] sm:$0xff] }
 0x1db   : >> { %v1794_v60 = vor.u32 %v1793_v4, %v1789_v59  ;;  %v1805_v14 = vrot.slane %v1803_v46, 1  ;;  %v6176_v21 = vpack.c.bf16 %v1598_v2, %v1598_v2  ;;  %v6178_v33 = vpack.c.bf16 %v1624_v41, %v1623_v63  ;;  %v1601_v45 = vld [vmem:[#allocation2 + $0x58] sm:$0x3]  ;;  %v1627_v48 = vld [vmem:[#allocation2 + $0x128] sm:$0xff]  ;;  %v1628_v15 = vld [vmem:[#allocation2 + $0x130] sm:$0x3] }
 0x1dc   : >> { %v1698_v47 = vor.u32 %v1697_v20, %v1693_v25  ;;  %v1810_v18 = vrot.slane %v1808_v9, 1  ;;  %v1705_v19 = vshrl.u32 %v6174_v12, 16  ;;  %v1707_v1 = vshll.u32 %v6174_v12, 16  ;;  %v1602_v38 = vld [vmem:[#allocation2 + $0x60] sm:$0xff]  ;;  %v1603_v58 = vld [vmem:[#allocation2 + $0x68] sm:$0xff]  ;;  %v1629_v53 = vld [vmem:[#allocation2 + $0x138] sm:$0xff] }
 0x1dd   : >> { %v1799_v31 = vsel %vm370_vm2, %v1794_v60, %v1798_v61  ;;  %v1806_v0 = vor.u32 %v1805_v14, %v1801_v6  ;;  %v1712_v3 = vshll.u32 %v6176_v21, 16  ;;  %v6184_v26 = vpack.c.bf16 %v1625_v11, %v1625_v11  ;;  %v1604_v59 = vld [vmem:[#allocation2 + $0x70] sm:$0x3]  ;;  %v1630_v40 = vld [vmem:[#allocation2 + $0x140] sm:$0xff]  ;;  %v1631_v41 = vld [vmem:[#allocation2 + $0x148] sm:$0x3] }
 0x1de   : >> { %1914 = vrot.lane.b32.xlu0 %v1799_v31, %s5465_s29  ;;  %v1703_v30 = vsel %vm370_vm2, %v1698_v47, %v1702_v7  ;;  %v1709_v28 = vrot.slane %v1707_v1, 1  ;;  %v1813_v24 = vshrl.u32 %v6178_v33, 16  ;;  %v1815_v49 = vshll.u32 %v6178_v33, 16  ;;  %v1605_v20 = vld [vmem:[#allocation2 + $0x78] sm:$0xff]  ;;  %v1606_v7 = vld [vmem:[#allocation2 + $0x80] sm:$0xff]  ;;  %s5467_s28 = smov (%p1586_p4), 64  }
 0x1df   : >> { %v1811_v51 = vsel %vm370_vm2, %v1806_v0, %v1810_v18  ;;  %v1714_v22 = vrot.slane %v1712_v3, 1  ;;  %v1820_v5 = vshll.u32 %v6184_v26, 16  ;;  %v6192_v29 = vpack.c.bf16 %v1600_v16, %v1599_v27  ;;  %v1607_v47 = vld [vmem:[#allocation2 + $0x88] sm:$0x3]  ;;  %v1632_v18 = vld [vmem:[#allocation2 + $0x150] sm:$0xff] }
 0x1e0   : >> { %1916 = vrot.lane.b32.xlu1 %v1811_v51, %s5465_s29  ;;  %v1710_v32 = vor.u32 %v1709_v28, %v1705_v19  ;;  %v1817_v44 = vrot.slane %v1815_v49, 1  ;;  %v6195_v17 = vpack.c.bf16 %v1601_v45, %v1601_v45  ;;  %v6197_v23 = vpack.c.bf16 %v1627_v48, %v1626_v10  ;;  %v1633_v19 = vld [vmem:[#allocation2 + $0x158] sm:$0xff]  ;;  %v1634_v0 = vld [vmem:[#allocation2 + $0x160] sm:$0x3]  ;;  %v1608_v3 = vld [vmem:[#allocation2 + $0x90] sm:$0xff] }
 0x1e1   : >> { %v1822_v39 = vrot.slane %v1820_v5, 1  ;;  %v1717_v56 = vshrl.u32 %v6192_v29, 16  ;;  %v1719_v57 = vshll.u32 %v6192_v29, 16  ;;  %v6201_v8 = vpack.c.bf16 %v1628_v15, %v1628_v15  ;;  %v5373_v28 = vld [vmem:[%s7796_s3 + $0x98] sm:$0xff]   ;;  %v1610_v5 = vld [vmem:[#allocation2 + $0xa0] sm:$0x3] }
 0x1e2   : >> { %1898 = vrot.lane.b32.xlu0 %v1703_v30, %s5465_s29  ;;  %v1715_v34 = vsel %vm370_vm2, %v1710_v32, %v1714_v22  ;;  %v1818_v55 = vor.u32 %v1817_v44, %v1813_v24  ;;  %v1724_v62 = vshll.u32 %v6195_v17, 16  ;;  %v1825_v63 = vshrl.u32 %v6197_v23, 16  ;;  %v1609_v22 = vld [vmem:[#allocation2 + $0x98] sm:$0xff]  ;;  %5303 = vmatpush1.bf16.msra.mxu1 %v5373_v28 }
 0x1e3   : >> { %v1721_v25 = vrot.slane %v1719_v57, 1  ;;  %v1827_v35 = vshll.u32 %v6197_v23, 16  ;;  %v1832_v42 = vshll.u32 %v6201_v8, 16  ;;  %v6209_v2 = vpack.c.bf16 %v1603_v58, %v1602_v38  ;;  %2246 = vmatpush1.bf16.msra.mxu0 %v5373_v28  ;;  %5292 = vmatprep.subr.bf16.mxu1 %v5464_v54 }
 0x1e4   : >> { %1900 = vrot.lane.b32.xlu1 %v1715_v34, %s5465_s29  ;;  %v1823_v4 = vsel %vm370_vm2, %v1818_v55, %v1822_v39  ;;  %v1726_v61 = vrot.slane %v1724_v62, 1  ;;  %v6213_v6 = vpack.c.bf16 %v1604_v59, %v1604_v59  ;;  %v6215_v46 = vpack.c.bf16 %v1630_v40, %v1629_v53  ;;  %v1635_v53 = vld [vmem:[#allocation2 + $0x168] sm:$0xff]  ;;  %v5374_v39 = vld [vmem:[%s7796_s3 + $0x90] sm:$0xff]   ;;  %v1637_v34 = vld [vmem:[#allocation2 + $0x178] sm:$0x3]  ;;  %2247 = vmatprep.subr.bf16.mxu0 %v5464_v54 }
 0x1e5   : >> { %v1722_v9 = vor.u32 %v1721_v25, %v1717_v56  ;;  %v1829_v11 = vrot.slane %v1827_v35, 1  ;;  %v1834_v60 = vrot.slane %v1832_v42, 1  ;;  %v1729_v14 = vshrl.u32 %v6209_v2, 16  ;;  %v1636_v35 = vld [vmem:[#allocation2 + $0x170] sm:$0xff] }
 0x1e6   : >> { %1918 = vrot.lane.b32.xlu0 %v1823_v4, %s5465_s29  ;;  %v1731_v1 = vshll.u32 %v6209_v2, 16  ;;  %v1736_v27 = vshll.u32 %v6213_v6, 16  ;;  %v6221_v16 = vpack.c.bf16 %v1631_v41, %v1631_v41  ;;  %v1837_v31 = vshrl.u32 %v6215_v46, 16  ;;  %5304 = vmatpush1.bf16.msra.mxu1 %v5374_v39 }
 0x1e7   : >> { %v1727_v45 = vsel %vm370_vm2, %v1722_v9, %v1726_v61  ;;  %v1830_v10 = vor.u32 %v1829_v11, %v1825_v63  ;;  %v1839_v48 = vshll.u32 %v6215_v46, 16  ;;  %v6226_v30 = vpack.c.bf16 %v1606_v7, %v1605_v20  ;;  %v1611_v20 = vld [vmem:[#allocation2 + $0xa8] sm:$0xff]  ;;  %v1612_v7 = vld [vmem:[#allocation2 + $0xb0] sm:$0xff]  ;;  %v1613_v9 = vld [vmem:[#allocation2 + $0xb8] sm:$0x3]  ;;  %2248 = vmatpush1.bf16.msra.mxu0 %v5374_v39  ;;  %5293 = vmatprep.subr.bf16.mxu1 %v5464_v54 }
 0x1e8   : >> { %1902 = vrot.lane.b32.xlu1 %v1727_v45, %s5465_s29  ;;  %v1733_v24 = vrot.slane %v1731_v1, 1  ;;  %v1738_v49 = vrot.slane %v1736_v27, 1  ;;  %v1844_v15 = vshll.u32 %v6221_v16, 16  ;;  %v6233_v51 = vpack.c.bf16 %v1607_v47, %v1607_v47  ;;  %2249 = vmatprep.subr.bf16.mxu0 %v5464_v54 }
 0x1e9   : >> { %v1835_v32 = vsel %vm370_vm2, %v1830_v10, %v1834_v60  ;;  %v1841_v44 = vrot.slane %v1839_v48, 1  ;;  %v1741_v38 = vshrl.u32 %v6226_v30, 16  ;;  %v1743_v58 = vshll.u32 %v6226_v30, 16 }
 0x1ea   : >> { %1920 = vrot.lane.b32.xlu0 %v1835_v32, %s5465_s29  ;;  %v1734_v56 = vor.u32 %v1733_v24, %v1729_v14  ;;  %v1846_v57 = vrot.slane %v1844_v15, 1  ;;  %v1748_v59 = vshll.u32 %v6233_v51, 16  ;;  %v6243_v40 = vpack.c.bf16 %v1633_v19, %v1632_v18  ;;  %v1638_v18 = vld [vmem:[#allocation2 + $0x180] sm:$0xff]  ;;  %v5375_v19 = vld [vmem:[%s7796_s3 + $0x88] sm:$0xff]   ;;  %v1640_v24 = vld [vmem:[#allocation2 + $0x190] sm:$0x3] }
 0x1eb   : >> { %v1842_v55 = vor.u32 %v1841_v44, %v1837_v31  ;;  %v1745_v62 = vrot.slane %v1743_v58, 1  ;;  %v6246_v63 = vpack.c.bf16 %v1634_v0, %v1634_v0  ;;  %v6248_v25 = vpack.c.bf16 %v1609_v22, %v1608_v3  ;;  %v1639_v3 = vld [vmem:[#allocation2 + $0x188] sm:$0xff]  ;;  %v1614_v32 = vld [vmem:[#allocation2 + $0xc0] sm:$0xff]  ;;  %5305 = vmatpush1.bf16.msra.mxu1 %v5375_v19  ;;  %2250 = vmatpush1.bf16.msra.mxu0 %v5375_v19 }
 0x1ec   : >> { %v1739_v42 = vsel %vm370_vm2, %v1734_v56, %v1738_v49  ;;  %v1750_v41 = vrot.slane %v1748_v59, 1  ;;  %v1849_v4 = vshrl.u32 %v6243_v40, 16  ;;  %v1851_v61 = vshll.u32 %v6243_v40, 16  ;;  %v1615_v44 = vld [vmem:[#allocation2 + $0xc8] sm:$0xff]  ;;  %v1590_v59 = vld [vmem:[#allocation2] sm:$0xff]  ;;  %5294 = vmatprep.subr.bf16.mxu1 %v5464_v54  ;;  %2251 = vmatprep.subr.bf16.mxu0 %v5464_v54 }
 0x1ed   : >> { %1904 = vrot.lane.b32.xlu1 %v1739_v42, %s5465_s29  ;;  %v1847_v11 = vsel %vm370_vm2, %v1842_v55, %v1846_v57  ;;  %v1746_v60 = vor.u32 %v1745_v62, %v1741_v38  ;;  %v1856_v14 = vshll.u32 %v6246_v63, 16  ;;  %v6257_v47 = vpack.c.bf16 %v1610_v5, %v1610_v5  ;;  %v5376_v38 = vld [vmem:[%s7796_s3 + $0x80] sm:$0xff]   ;;  %v1616_v57 = vld [vmem:[#allocation2 + $0xd0] sm:$0x3]  ;;  %v1591_v42 = vld [vmem:[#allocation2 + $0x8] sm:$0xff] }
 0x1ee   : >> { %1922 = vrot.lane.b32.xlu0 %v1847_v11, %s5465_s29  ;;  %v1853_v1 = vrot.slane %v1851_v61, 1  ;;  %v1753_v27 = vshrl.u32 %v6248_v25, 16  ;;  %v1755_v31 = vshll.u32 %v6248_v25, 16  ;;  %v6265_v0 = vpack.c.bf16 %v1636_v35, %v1635_v53 }
 0x1ef   : >> { %v1751_v45 = vsel %vm370_vm2, %v1746_v60, %v1750_v41  ;;  %v1858_v10 = vrot.slane %v1856_v14, 1  ;;  %v1760_v48 = vshll.u32 %v6257_v47, 16  ;;  %v6269_v28 = vpack.c.bf16 %v1637_v34, %v1637_v34  ;;  %5306 = vmatpush1.bf16.msra.mxu1 %v5376_v38  ;;  %2252 = vmatpush1.bf16.msra.mxu0 %v5376_v38  ;;  %v5378_v38 = vld [vmem:[%s7796_s3 + $0x70] sm:$0xff]  }
 0x1f0   : >> { %v1854_v49 = vor.u32 %v1853_v1, %v1849_v4  ;;  %v1757_v15 = vrot.slane %v1755_v31, 1  ;;  %v1861_v22 = vshrl.u32 %v6265_v0, 16  ;;  %v1863_v5 = vshll.u32 %v6265_v0, 16  ;;  %v5377_v31 = vld [vmem:[%s7796_s3 + $0x78] sm:$0xff]   ;;  %5295 = vmatprep.subr.bf16.mxu1 %v5464_v54  ;;  %2253 = vmatprep.subr.bf16.mxu0 %v5464_v54 }
 0x1f1   : >> { %1906 = vrot.lane.b32.xlu1 %v1751_v45, %s5465_s29  ;;  %v1762_v58 = vrot.slane %v1760_v48, 1  ;;  %v1868_v53 = vshll.u32 %v6269_v28, 16  ;;  %v6280_v39 = vpack.c.bf16 %v1612_v7, %v1611_v20  ;;  %v6282_v56 = vpack.c.bf16 %v1613_v9, %v1613_v9  ;;  %v1592_v7 = vld [vmem:[#allocation2 + $0x10] sm:$0x3] }
 0x1f2   : >> { %v1859_v34 = vsel %vm370_vm2, %v1854_v49, %v1858_v10  ;;  %v1758_v55 = vor.u32 %v1757_v15, %v1753_v27  ;;  %v1865_v62 = vrot.slane %v1863_v5, 1  ;;  %v6285_v35 = vpack.c.bf16 %v1639_v3, %v1638_v18 }
 0x1f3   : >> { %1924 = vrot.lane.b32.xlu0 %v1859_v34, %s5465_s29  ;;  %v1870_v41 = vrot.slane %v1868_v53, 1  ;;  %v1765_v4 = vshrl.u32 %v6280_v39, 16  ;;  %v1767_v61 = vshll.u32 %v6280_v39, 16  ;;  %v1772_v20 = vshll.u32 %v6282_v56, 16  ;;  %5307 = vmatpush1.bf16.msra.mxu1 %v5377_v31 }
 0x1f4   : >> { %v1763_v9 = vsel %vm370_vm2, %v1758_v55, %v1762_v58  ;;  %v1866_v11 = vor.u32 %v1865_v62, %v1861_v22  ;;  %v6294_v60 = vpack.c.bf16 %v1640_v24, %v1640_v24  ;;  %v1873_v14 = vshrl.u32 %v6285_v35, 16  ;;  %2254 = vmatpush1.bf16.msra.mxu0 %v5377_v31  ;;  %5296 = vmatprep.subr.bf16.mxu1 %v5464_v54 }
 0x1f5   : >> { %1908 = vrot.lane.b32.xlu1 %v1763_v9, %s5465_s29  ;;  %v1769_v18 = vrot.slane %v1767_v61, 1  ;;  %v1774_v19 = vrot.slane %v1772_v20, 1  ;;  %v1875_v1 = vshll.u32 %v6285_v35, 16  ;;  %v6299_v27 = vpack.c.bf16 %v1615_v44, %v1614_v32  ;;  %2255 = vmatprep.subr.bf16.mxu0 %v5464_v54 }
 0x1f6   : >> { %v1871_v3 = vsel %vm370_vm2, %v1866_v11, %v1870_v41  ;;  %v1880_v45 = vshll.u32 %v6294_v60, 16  ;;  %v6306_v10 = vpack.c.bf16 %v1616_v57, %v1616_v57  ;;  %v6308_v48 = vpack.c.bf16 %v1591_v42, %v1590_v59 }
 0x1f7   : >> { %1926 = vrot.lane.b32.xlu0 %v1871_v3, %s5465_s29  ;;  %v1770_v24 = vor.u32 %v1769_v18, %v1765_v4  ;;  %v1877_v49 = vrot.slane %v1875_v1, 1  ;;  %v1777_v15 = vshrl.u32 %v6299_v27, 16  ;;  %v1779_v22 = vshll.u32 %v6299_v27, 16  ;;  %5308 = vmatpush1.bf16.msra.mxu1 %v5378_v38  ;;  %v5381_v3 = vld [vmem:[%s7796_s3 + $0xb8] sm:$0xff]  }
 0x1f8   : >> { %v1882_v5 = vrot.slane %v1880_v45, 1  ;;  %v1784_v32 = vshll.u32 %v6306_v10, 16  ;;  %v6316_v44 = vpack.c.bf16 %v1592_v7, %v1592_v7  ;;  %v1681_v58 = vshrl.u32 %v6308_v48, 16  ;;  %2256 = vmatpush1.bf16.msra.mxu0 %v5378_v38  ;;  %5297 = vmatprep.subr.bf16.mxu1 %v5464_v54  ;;  %v5382_v45 = vld [vmem:[%s7796_s3 + $0xb0] sm:$0xff]  }
 0x1f9   : >> { %v1775_v53 = vsel %vm370_vm2, %v1770_v24, %v1774_v19  ;;  %v1878_v57 = vor.u32 %v1877_v49, %v1873_v14  ;;  %v1781_v59 = vrot.slane %v1779_v22, 1  ;;  %v1683_v34 = vshll.u32 %v6308_v48, 16  ;;  %v5379_v19 = vld [vmem:[%s7796_s3 + $0x68] sm:$0xff]   ;;  %2257 = vmatprep.subr.bf16.mxu0 %v5464_v54  ;;  %v5384_v49 = vld [vmem:[%s7796_s3 + $0xa0] sm:$0xff]  }
 0x1fa   : >> { %1910 = vrot.lane.b32.xlu1 %v1775_v53, %s5465_s29  ;;  %v1786_v55 = vrot.slane %v1784_v32, 1  ;;  %v1688_v62 = vshll.u32 %v6316_v44, 16  ;;  %v1995_v42 = vrot.slane %v6151_v36, 1  ;;  %v1996_v41 = vrot.slane %v6153_v37, 1  ;;  %v5383_v24 = vld [vmem:[%s7796_s3 + $0xa8] sm:$0xff]   ;;  %v1642_v22 = vld [vmem:[#allocation2 + $0x1a0] sm:$0xff] }
 0x1fb   : >> { %v1883_v4 = vsel %vm370_vm2, %v1878_v57, %v1882_v5  ;;  %v1782_v61 = vor.u32 %v1781_v59, %v1777_v15  ;;  %v1685_v20 = vrot.slane %v1683_v34, 1  ;;  %v1971_v7 = vrot.slane %v6157_v43, 1  ;;  %5309 = vmatpush1.bf16.msra.mxu1 %v5379_v19  ;;  %v1641_v15 = vld [vmem:[#allocation2 + $0x198] sm:$0xff]  ;;  %v1643_v5 = vld [vmem:[#allocation2 + $0x1a8] sm:$0x3] }
 0x1fc   : >> { %1928 = vrot.lane.b32.xlu0 %v1883_v4, %s5465_s29  ;;  %v1690_v9 = vrot.slane %v1688_v62, 1  ;;  %v6334_v11 = vsel %vm659_vm1, %v1995_v42, %v1996_v41  ;;  %v1972_v14 = vrot.slane %v6159_v13, 1  ;;  %v5380_v13 = vld [vmem:[%s7796_s3 + $0x60] sm:$0xff]   ;;  %2258 = vmatpush1.bf16.msra.mxu0 %v5379_v19  ;;  %v6378_v32 = vpack.c.bf16 %v1642_v22, %v1641_v15  ;;  %v5385_v4 = vld [vmem:[%s7796_s3 + $0x38] sm:$0xff]   ;;  %v5390_v22 = vld [vmem:[%s7796_s3 + $0xe8] sm:$0xff]  }
 0x1fd   : >> { %v1787_v37 = vsel %vm370_vm2, %v1782_v61, %v1786_v55  ;;  %v1686_v18 = vor.u32 %v1685_v20, %v1681_v58  ;;  %4900 = vmatprep.mubr.msk.bf16.mxu1 %vm1495_vm6, %v6334_v11  ;;  %5298 = vmatprep.subr.bf16.mxu1 %v5464_v54  ;;  %v6380_v58 = vpack.c.bf16 %v1643_v5, %v1643_v5  ;;  %v1998_v42 = vrot.slane %v6164_v52, 1  ;;  %v5391_v5 = vld [vmem:[%s7796_s3 + $0x20] sm:$0xff]  }
 0x1fe   : >> { %1912 = vrot.lane.b32.xlu1 %v1787_v37, %s5465_s29  ;;  %v6345_v1 = vsel %vm659_vm1, %v1971_v7, %v1972_v14  ;;  %2259 = vmatprep.subr.bf16.mxu0 %v5464_v54  ;;  %v1885_v38 = vshrl.u32 %v6378_v32, 16  ;;  %v1887_v53 = vshll.u32 %v6378_v32, 16  ;;  %v1999_v41 = vrot.slane %v6169_v50, 1  ;;  %v5386_v50 = vld [vmem:[%s7796_s3 + $0xf8] sm:$0xff]  }
 0x1ff   : >> { %v1691_v31 = vsel %vm370_vm2, %v1686_v18, %v1690_v9  ;;  %4892 = vmatprep.mubr.msk.bf16.mxu0 %vm1495_vm6, %v6345_v1  ;;  %5310 = vmatpush1.bf16.msra.mxu1 %v5380_v13  ;;  %v1892_v57 = vshll.u32 %v6380_v58, 16  ;;  %v1974_v9 = vrot.slane %v6174_v12, 1  ;;  %v1975_v14 = vrot.slane %v6176_v21, 1 }
 0x200   : >> { %1896 = vrot.lane.b32.xlu0 %v1691_v31, %s5465_s29  ;;  %2260 = vmatpush1.bf16.msra.mxu0 %v5380_v13  ;;  %v1889_v59 = vrot.slane %v1887_v53, 1  ;;  %v6395_v20 = vsel %vm659_vm1, %v1998_v42, %v1999_v41  ;;  %v2001_v31 = vrot.slane %v6178_v33, 1  ;;  %v2002_v13 = vrot.slane %v6184_v26, 1  ;;  %v5394_v41 = vld [vmem:[%s7796_s3 + $0xd8] sm:$0xff]  }
 0x201   : >> { %5299 = vmatprep.subr.bf16.mxu1 %v5464_v54  ;;  %2269 = vmatprep.subr.bf16.mxu0 %v5464_v54  ;;  %v1894_v34 = vrot.slane %v1892_v57, 1  ;;  %v6418_v19 = vsel %vm659_vm1, %v1974_v9, %v1975_v14  ;;  %v1977_v26 = vrot.slane %v6192_v29, 1  ;;  %v2008_v9 = vrot.slane %v6221_v16, 1 }
 0x202   : >> { %v1890_v55 = vor.u32 %v1889_v59, %v1885_v38  ;;  %v5392_v59 = vld [vmem:[%s7796_s3 + $0xe0] sm:$0xff]  }
 0x203   : >> { %5311 = vmatpush2.bf16.msra.mxu1 %v5381_v3 }
 0x204   : >> { %2270 = vmatpush2.bf16.msra.mxu0 %v5381_v3  ;;  %5300 = vmatprep.subr.bf16.mxu1 %v5464_v54  ;;  %v1895_v62 = vsel %vm370_vm2, %v1890_v55, %v1894_v34  ;;  %v1980_v55 = vrot.slane %v6209_v2, 1 }
 0x205   : >> { %2271 = vmatprep.subr.bf16.mxu0 %v5464_v54  ;;  %1930 = vrot.lane.b32.xlu1 %v1895_v62, %s5465_s29  ;;  %v1981_v62 = vrot.slane %v6213_v6, 1 }
 0x207   : >> { %5312 = vmatpush2.bf16.msra.mxu1 %v5382_v45  ;;  %v6494_v6 = vsel %vm659_vm1, %v1980_v55, %v1981_v62 }
 0x208   : >> { %2272 = vmatpush2.bf16.msra.mxu0 %v5382_v45  ;;  %5301 = vmatprep.subr.bf16.mxu1 %v5464_v54  ;;  %v5389_v45 = vld [vmem:[%s7796_s3 + $0x28] sm:$0xff]  }
 0x209   : >> { %2273 = vmatprep.subr.bf16.mxu0 %v5464_v54 }
 0x20b   : >> { %5313 = vmatpush2.bf16.msra.mxu1 %v5383_v24 }
 0x20c   : >> { %2274 = vmatpush2.bf16.msra.mxu0 %v5383_v24  ;;  %5302 = vmatprep.subr.bf16.mxu1 %v5464_v54 }
 0x20d   : >> { %2275 = vmatprep.subr.bf16.mxu0 %v5464_v54 }
 0x20f   : >> { %5314 = vmatpush2.bf16.msra.mxu1 %v5384_v49 }
 0x210   : >> { %2276 = vmatpush2.bf16.msra.mxu0 %v5384_v49  ;;  %2481 = vmatprep.subr.bf16.mxu1 %v5464_v54  ;;  %v1978_v49 = vrot.slane %v6195_v17, 1  ;;  %v2004_v17 = vrot.slane %v6197_v23, 1 }
 0x211   : >> { %2742 = vmatprep.subr.bf16.mxu0 %v5464_v54 }
 0x212   : >> { %v6460_v53 = vsel %vm659_vm1, %v1977_v26, %v1978_v49 }
 0x250   : >> { %v1915_v61 = vpop.permute.xlu0 %1914 }
 0x251   : >> { %v6399_v7 = vsel %vm1495_vm6, %v6151_v36, %v1915_v61  ;;  %v5387_v36 = vld [vmem:[%s7796_s3 + $0x30] sm:$0xff]   ;;  %v2007_v61 = vrot.slane %v6215_v46, 1 }
 0x252   : >> { %2342 = vmatmul.mubr.bf16.vlgmr.msra.gmra.mxu1 %v6399_v7  ;;  %v1917_v37 = vpop.permute.xlu1 %1916 }
 0x253   : >> { %2482 = vmatpush1.bf16.msra.mxu1 %v5385_v4  ;;  %4901 = vmatprep.mubr.msk.bf16.mxu1 %vm1495_vm6, %v6395_v20  ;;  %v6425_v3 = vsel %vm1495_vm6, %v6164_v52, %v1917_v37  ;;  %v6438_v52 = vsel %vm659_vm1, %v2001_v31, %v2002_v13  ;;  %v5396_v37 = vld [vmem:[%s7796_s3 + $0xd0] sm:$0xff]   ;;  %v6514_v16 = vsel %vm659_vm1, %v2007_v61, %v2008_v9  ;;  %v5398_v13 = vld [vmem:[%s7796_s3 + $0xc8] sm:$0xff]  }
 0x254   : >> { %v1899_v18 = vpop.permute.xlu0 %1898  ;;  %2483 = vmatprep.subr.bf16.mxu1 %v5464_v54 }
 0x255   : >> { %v6415_v21 = vsel %vm1495_vm6, %v6157_v43, %v1899_v18  ;;  %v5388_v43 = vld [vmem:[%s7796_s3 + $0xf0] sm:$0xff]   ;;  %v1984_v18 = vrot.slane %v6233_v51, 1 }
 0x256   : >> { %2278 = vmatmul.mubr.bf16.vlgmr.msra.gmra.mxu0 %v6415_v21  ;;  %v1901_v24 = vpop.permute.xlu1 %1900 }
 0x257   : >> { %2743 = vmatpush1.bf16.msra.mxu0 %v5386_v50  ;;  %2484 = vmatpush1.bf16.msra.mxu1 %v5387_v36  ;;  %v6445_v15 = vsel %vm1495_vm6, %v6174_v12, %v1901_v24  ;;  %v2005_v12 = vrot.slane %v6201_v8, 1  ;;  %v1983_v36 = vrot.slane %v6226_v30, 1  ;;  %v5399_v24 = vld [vmem:[%s7796_s3] sm:$0xff]  }
 0x258   : >> { %2744 = vmatprep.subr.bf16.mxu0 %v5464_v54  ;;  %4893 = vmatprep.mubr.msk.bf16.mxu0 %vm1495_vm6, %v6418_v19  ;;  %v1919_v38 = vpop.permute.xlu0 %1918 }
 0x259   : >> { %2485 = vmatprep.subr.bf16.mxu1 %v5464_v54  ;;  %v6465_v57 = vsel %vm1495_vm6, %v6178_v33, %v1919_v38  ;;  %v6474_v8 = vsel %vm659_vm1, %v2004_v17, %v2005_v12  ;;  %v5393_v33 = vld [vmem:[%s7796_s3 + $0x18] sm:$0xff]   ;;  %v6533_v51 = vsel %vm659_vm1, %v1983_v36, %v1984_v18 }
 0x25a   : >> { %2350 = vmatmul.mubr.bf16.gmra.mxu1 %v6425_v3  ;;  %v1903_v34 = vpop.permute.xlu1 %1902  ;;  %v5401_v38 = vld [vmem:[%s7796_s3 + $0x58] sm:$0xff]  }
 0x25b   : >> { %2745 = vmatpush1.bf16.msra.mxu0 %v5388_v43  ;;  %2486 = vmatpush1.bf16.msra.mxu1 %v5389_v45  ;;  %v6485_v42 = vsel %vm1495_vm6, %v6192_v29, %v1903_v34  ;;  %v5395_v29 = vld [vmem:[%s7796_s3 + $0x10] sm:$0xff]   ;;  %v2010_v45 = vrot.slane %v6243_v40, 1  ;;  %v2013_v34 = vrot.slane %v6265_v0, 1 }
 0x25c   : >> { %2746 = vmatprep.subr.bf16.mxu0 %v5464_v54  ;;  %4902 = vmatprep.mubr.msk.bf16.mxu1 %vm1495_vm6, %v6438_v52  ;;  %v1921_v4 = vpop.permute.xlu0 %1920 }
 0x25d   : >> { %2487 = vmatprep.subr.bf16.mxu1 %v5464_v54  ;;  %v6505_v14 = vsel %vm1495_vm6, %v6197_v23, %v1921_v4  ;;  %v5397_v23 = vld [vmem:[%s7796_s3 + $0x8] sm:$0xff]   ;;  %v1989_v4 = vrot.slane %v6280_v39, 1 }
 0x25e   : >> { %2286 = vmatmul.mubr.bf16.gmra.mxu0 %v6445_v15 }
 0x25f   : >> { %2747 = vmatpush1.bf16.msra.mxu0 %v5390_v22  ;;  %2488 = vmatpush1.bf16.msra.mxu1 %v5391_v5  ;;  %v1905_v50 = vpop.permute.xlu1 %1904  ;;  %v1986_v5 = vrot.slane %v6248_v25, 1 }
 0x260   : >> { %4894 = vmatprep.mubr.msk.bf16.mxu0 %vm1495_vm6, %v6460_v53  ;;  %2748 = vmatprep.subr.bf16.mxu0 %v5464_v54  ;;  %v6525_v31 = vsel %vm1495_vm6, %v6209_v2, %v1905_v50  ;;  %v1923_v43 = vpop.permute.xlu0 %1922  ;;  %v2011_v2 = vrot.slane %v6246_v63, 1  ;;  %v5400_v63 = vld [vmem:[%s7796_s3 + $0xc0] sm:$0xff]   ;;  %v2016_v50 = vrot.slane %v6285_v35, 1 }
 0x261   : >> { %2489 = vmatprep.subr.bf16.mxu1 %v5464_v54  ;;  %v6545_v26 = vsel %vm1495_vm6, %v6215_v46, %v1923_v43  ;;  %v1987_v46 = vrot.slane %v6257_v47, 1  ;;  %v5402_v47 = vld [vmem:[%s7796_s3 + $0x118] sm:$0xff]   ;;  %v1992_v43 = vrot.slane %v6299_v27, 1 }
 0x262   : >> { %2358 = vmatmul.mubr.bf16.gmra.mxu1 %v6465_v57  ;;  %v6553_v22 = vsel %vm659_vm1, %v2010_v45, %v2011_v2  ;;  %v1993_v45 = vrot.slane %v6306_v10, 1 }
 0x263   : >> { %2749 = vmatpush1.bf16.msra.mxu0 %v5392_v59  ;;  %4903 = vmatprep.mubr.msk.bf16.mxu1 %vm1495_vm6, %v6474_v8  ;;  %v1907_v49 = vpop.permute.xlu1 %1906  ;;  %v6573_v59 = vsel %vm659_vm1, %v1986_v5, %v1987_v46 }
 0x264   : >> { %2490 = vmatpush1.bf16.msra.mxu1 %v5393_v33  ;;  %2750 = vmatprep.subr.bf16.mxu0 %v5464_v54  ;;  %v6565_v17 = vsel %vm1495_vm6, %v6226_v30, %v1907_v49  ;;  %v2014_v30 = vrot.slane %v6269_v28, 1  ;;  %v5403_v33 = vld [vmem:[%s7796_s3 + $0x50] sm:$0xff]   ;;  %v1969_v49 = vrot.slane %v6316_v44, 1 }
 0x265   : >> { %2491 = vmatprep.subr.bf16.mxu1 %v5464_v54  ;;  %v1925_v12 = vpop.permute.xlu0 %1924  ;;  %v5404_v28 = vld [vmem:[%s7796_s3 + $0x110] sm:$0xff]  }
 0x266   : >> { %2294 = vmatmul.mubr.bf16.gmra.mxu0 %v6485_v42  ;;  %v6585_v55 = vsel %vm1495_vm6, %v6243_v40, %v1925_v12  ;;  %v5405_v40 = vld [vmem:[%s7796_s3 + $0x48] sm:$0xff]  }
 0x267   : >> { %2751 = vmatpush1.bf16.msra.mxu0 %v5394_v41  ;;  %4895 = vmatprep.mubr.msk.bf16.mxu0 %vm1495_vm6, %v6494_v6  ;;  %v1909_v62 = vpop.permute.xlu1 %1908  ;;  %v6593_v41 = vsel %vm659_vm1, %v2013_v34, %v2014_v30 }
 0x268   : >> { %2492 = vmatpush1.bf16.msra.mxu1 %v5395_v29  ;;  %2752 = vmatprep.subr.bf16.mxu0 %v5464_v54  ;;  %v1990_v29 = vrot.slane %v6282_v56, 1  ;;  %v6605_v61 = vsel %vm1495_vm6, %v6248_v25, %v1909_v62  ;;  %v5406_v56 = vld [vmem:[%s7796_s3 + $0x108] sm:$0xff]   ;;  %v5407_v25 = vld [vmem:[%s7796_s3 + $0x40] sm:$0xff]  }
 0x269   : >> { %2493 = vmatprep.subr.bf16.mxu1 %v5464_v54  ;;  %v1927_v9 = vpop.permute.xlu0 %1926 }
 0x26a   : >> { %2366 = vmatmul.mubr.bf16.gmra.mxu1 %v6505_v14  ;;  %v6625_v36 = vsel %vm1495_vm6, %v6265_v0, %v1927_v9 }
 0x26b   : >> { %4904 = vmatprep.mubr.msk.bf16.mxu1 %vm1495_vm6, %v6514_v16  ;;  %2753 = vmatpush1.bf16.msra.mxu0 %v5396_v37  ;;  %v6613_v37 = vsel %vm659_vm1, %v1989_v4, %v1990_v29 }
 0x26c   : >> { %2494 = vmatpush1.bf16.msra.mxu1 %v5397_v23  ;;  %2754 = vmatprep.subr.bf16.mxu0 %v5464_v54  ;;  %v2017_v23 = vrot.slane %v6294_v60, 1  ;;  %v5408_v60 = vld [vmem:[%s7796_s3 + $0x100] sm:$0xff]   ;;  %v1911_v18 = vpop.permute.xlu1 %1910 }
 0x26d   : >> { %2495 = vmatprep.subr.bf16.mxu1 %v5464_v54  ;;  %v2044_v0 = vsel %vm1495_vm6, %v6280_v39, %v1911_v18 }
 0x26e   : >> { %2302 = vmatmul.mubr.bf16.gmra.mxu0 %v6525_v31  ;;  %v1929_v2 = vpop.permute.xlu0 %1928 }
 0x26f   : >> { %4896 = vmatprep.mubr.msk.bf16.mxu0 %vm1495_vm6, %v6533_v51  ;;  %2755 = vmatpush1.bf16.msra.mxu0 %v5398_v13  ;;  %v6633_v13 = vsel %vm659_vm1, %v2016_v50, %v2017_v23 }
 0x270   : >> { %2496 = vmatpush1.bf16.msra.mxu1 %v5399_v24  ;;  %2756 = vmatprep.subr.bf16.mxu0 %v5464_v54  ;;  %v1994_v24 = vsel %vm659_vm1, %v1992_v43, %v1993_v45  ;;  %v1913_v10 = vpop.permute.xlu1 %1912 }
 0x271   : >> { %2505 = vmatprep.subr.bf16.mxu1 %v5464_v54  ;;  %v2047_v5 = vsel %vm1495_vm6, %v6299_v27, %v1913_v10  ;;  %v2020_v27 = vrot.slane %v6380_v58, 1 }
 0x272   : >> { %2374 = vmatmul.mubr.bf16.gmra.mxu1 %v6545_v26  ;;  %v1897_v46 = vpop.permute.xlu0 %1896 }
 0x273   : >> { %4905 = vmatprep.mubr.msk.bf16.mxu1 %vm1495_vm6, %v6553_v22  ;;  %2757 = vmatpush1.bf16.msra.mxu0 %v5400_v63  ;;  %v1968_v63 = vrot.slane %v6308_v48, 1  ;;  %v2023_v44 = vsel %vm1495_vm6, %v6308_v48, %v1897_v46 }
 0x274   : >> { %2506 = vmatpush2.bf16.msra.mxu1 %v5401_v38  ;;  %2766 = vmatprep.subr.bf16.mxu0 %v5464_v54 }
 0x275   : >> { %2507 = vmatprep.subr.bf16.mxu1 %v5464_v54  ;;  %v1970_v39 = vsel %vm659_vm1, %v1968_v63, %v1969_v49 }
 0x276   : >> { %2310 = vmatmul.mubr.bf16.gmra.mxu0 %v6565_v17 }
 0x277   : >> { %4897 = vmatprep.mubr.msk.bf16.mxu0 %vm1495_vm6, %v6573_v59  ;;  %2767 = vmatpush2.bf16.msra.mxu0 %v5402_v47 }
 0x278   : >> { %2508 = vmatpush2.bf16.msra.mxu1 %v5403_v33  ;;  %2768 = vmatprep.subr.bf16.mxu0 %v5464_v54 }
 0x279   : >> { %2509 = vmatprep.subr.bf16.mxu1 %v5464_v54 }
 0x27a   : >> { %2382 = vmatmul.mubr.bf16.gmra.mxu1 %v6585_v55 }
 0x27b   : >> { %4906 = vmatprep.mubr.msk.bf16.mxu1 %vm1495_vm6, %v6593_v41  ;;  %2769 = vmatpush2.bf16.msra.mxu0 %v5404_v28 }
 0x27c   : >> { %2510 = vmatpush2.bf16.msra.mxu1 %v5405_v40  ;;  %2770 = vmatprep.subr.bf16.mxu0 %v5464_v54 }
 0x27d   : >> { %2511 = vmatprep.subr.bf16.mxu1 %v5464_v54 }
 0x27e   : >> { %2318 = vmatmul.mubr.bf16.gmra.mxu0 %v6605_v61 }
 0x27f   : >> { %4898 = vmatprep.mubr.msk.bf16.mxu0 %vm1495_vm6, %v6613_v37  ;;  %2771 = vmatpush2.bf16.msra.mxu0 %v5406_v56 }
 0x280   : >> { %2512 = vmatpush2.bf16.msra.mxu1 %v5407_v25  ;;  %2772 = vmatprep.subr.bf16.mxu0 %v5464_v54  ;;  %v6648_v54 = vsel %vm1495_vm6, %v6285_v35, %v1929_v2  ;;  %v2019_v35 = vrot.slane %v6378_v32, 1 }
 0x282   : >> { %2390 = vmatmul.mubr.bf16.gmra.mxu1 %v6625_v36  ;;  %v2021_v48 = vsel %vm659_vm1, %v2019_v35, %v2020_v27 }
 0x283   : >> { %4907 = vmatprep.mubr.msk.bf16.mxu1 %vm1495_vm6, %v6633_v13  ;;  %2773 = vmatpush2.bf16.msra.mxu0 %v5408_v60 }
 0x286   : >> { %2326 = vmatmul.mubr.bf16.gmra.mxu0 %v2044_v0 }
 0x287   : >> { %4899 = vmatprep.mubr.msk.bf16.mxu0 %vm1495_vm6, %v1994_v24 }
 0x28a   : >> { %2398 = vmatmul.mubr.bf16.gmra.mxu1 %v6648_v54 }
 0x28b   : >> { %4920 = vmatprep.mubr.msk.bf16.mxu1 %vm1495_vm6, %v1970_v39 }
 0x28e   : >> { %2334 = vmatmul.mubr.bf16.gmra.mxu0 %v2047_v5 }
 0x28f   : >> { %4972 = vmatprep.mubr.msk.bf16.mxu0 %vm1495_vm6, %v6418_v19 }
 0x292   : >> { %2514 = vmatmul.mubr.bf16.vlgmr.msra.gmra.mxu1 %v2023_v44 }
 0x293   : >> { %4921 = vmatprep.mubr.msk.bf16.mxu1 %vm1495_vm6, %v6345_v1 }
 0x296   : >> { %2775 = vmatmul.mubr.bf16.vlgmr.msra.gmra.mxu0 %v6445_v15 }
 0x297   : >> { %4973 = vmatprep.mubr.msk.bf16.mxu0 %vm1495_vm6, %v6460_v53 }
 0x29a   : >> { %2522 = vmatmul.mubr.bf16.gmra.mxu1 %v6415_v21 }
 0x29b   : >> { %4922 = vmatprep.mubr.msk.bf16.mxu1 %vm1495_vm6, %v6418_v19 }
 0x29e   : >> { %2783 = vmatmul.mubr.bf16.gmra.mxu0 %v6485_v42 }
 0x29f   : >> { %4974 = vmatprep.mubr.msk.bf16.mxu0 %vm1495_vm6, %v6494_v6 }
 0x2a2   : >> { %2530 = vmatmul.mubr.bf16.gmra.mxu1 %v6445_v15 }
 0x2a3   : >> { %4923 = vmatprep.mubr.msk.bf16.mxu1 %vm1495_vm6, %v6460_v53 }
 0x2a6   : >> { %2791 = vmatmul.mubr.bf16.gmra.mxu0 %v6525_v31 }
 0x2a7   : >> { %4975 = vmatprep.mubr.msk.bf16.mxu0 %vm1495_vm6, %v6533_v51 }
 0x2aa   : >> { %2538 = vmatmul.mubr.bf16.gmra.mxu1 %v6485_v42 }
 0x2ab   : >> { %4924 = vmatprep.mubr.msk.bf16.mxu1 %vm1495_vm6, %v6494_v6 }
 0x2ae   : >> { %2799 = vmatmul.mubr.bf16.gmra.mxu0 %v6565_v17 }
 0x2af   : >> { %4976 = vmatprep.mubr.msk.bf16.mxu0 %vm1495_vm6, %v6573_v59 }
 0x2b2   : >> { %2546 = vmatmul.mubr.bf16.gmra.mxu1 %v6525_v31 }
 0x2b3   : >> { %4925 = vmatprep.mubr.msk.bf16.mxu1 %vm1495_vm6, %v6533_v51 }
 0x2b6   : >> { %2807 = vmatmul.mubr.bf16.gmra.mxu0 %v6605_v61 }
 0x2b7   : >> { %4977 = vmatprep.mubr.msk.bf16.mxu0 %vm1495_vm6, %v6613_v37 }
 0x2ba   : >> { %2554 = vmatmul.mubr.bf16.gmra.mxu1 %v6565_v17 }
 0x2bb   : >> { %4926 = vmatprep.mubr.msk.bf16.mxu1 %vm1495_vm6, %v6573_v59 }
 0x2be   : >> { %2815 = vmatmul.mubr.bf16.gmra.mxu0 %v2044_v0 }
 0x2bf   : >> { %4978 = vmatprep.mubr.msk.bf16.mxu0 %vm1495_vm6, %v1994_v24 }
 0x2c2   : >> { %2562 = vmatmul.mubr.bf16.gmra.mxu1 %v6605_v61 }
 0x2c3   : >> { %4927 = vmatprep.mubr.msk.bf16.mxu1 %vm1495_vm6, %v6613_v37 }
 0x2c6   : >> { %2823 = vmatmul.mubr.bf16.gmra.mxu0 %v2047_v5 }
 0x2c7   : >> { %4979 = vmatprep.mubr.msk.bf16.mxu0 %vm1495_vm6, %v6334_v11 }
 0x2ca   : >> { %2570 = vmatmul.mubr.bf16.gmra.mxu1 %v2044_v0 }
 0x2cb   : >> { %4928 = vmatprep.mubr.msk.bf16.mxu1 %vm1495_vm6, %v1994_v24 }
 0x2ce   : >> { %2831 = vmatmul.mubr.bf16.gmra.mxu0 %v6399_v7 }
 0x2cf   : >> { %4980 = vmatprep.mubr.msk.bf16.mxu0 %vm1495_vm6, %v6395_v20 }
 0x2d2   : >> { %2578 = vmatmul.mubr.bf16.gmra.mxu1 %v2047_v5 }
 0x2d3   : >> { %4929 = vmatprep.mubr.msk.bf16.mxu1 %vm1495_vm6, %v6334_v11  ;;  %v1931_v11 = vpop.permute.xlu1 %1930 }
 0x2d4   : >> { %v2074_v1 = vsel %vm1495_vm6, %v6378_v32, %v1931_v11 }
 0x2d6   : >> { %2839 = vmatmul.mubr.bf16.gmra.mxu0 %v6425_v3 }
 0x2d7   : >> { %4981 = vmatprep.mubr.msk.bf16.mxu0 %vm1495_vm6, %v6438_v52 }
 0x2da   : >> { %2586 = vmatmul.mubr.bf16.gmra.mxu1 %v6399_v7 }
 0x2db   : >> { %4930 = vmatprep.mubr.msk.bf16.mxu1 %vm1495_vm6, %v6395_v20 }
 0x2de   : >> { %2847 = vmatmul.mubr.bf16.gmra.mxu0 %v6465_v57 }
 0x2df   : >> { %4982 = vmatprep.mubr.msk.bf16.mxu0 %vm1495_vm6, %v6474_v8 }
 0x2e2   : >> { %2594 = vmatmul.mubr.bf16.gmra.mxu1 %v6425_v3 }
 0x2e3   : >> { %4931 = vmatprep.mubr.msk.bf16.mxu1 %vm1495_vm6, %v6438_v52 }
 0x2e6   : >> { %2855 = vmatmul.mubr.bf16.gmra.mxu0 %v6505_v14 }
 0x2e7   : >> { %4983 = vmatprep.mubr.msk.bf16.mxu0 %vm1495_vm6, %v6514_v16 }
 0x2ea   : >> { %2602 = vmatmul.mubr.bf16.gmra.mxu1 %v6465_v57 }
 0x2eb   : >> { %4932 = vmatprep.mubr.msk.bf16.mxu1 %vm1495_vm6, %v6474_v8 }
 0x2ee   : >> { %2863 = vmatmul.mubr.bf16.gmra.mxu0 %v6545_v26 }
 0x2ef   : >> { %4984 = vmatprep.mubr.msk.bf16.mxu0 %vm1495_vm6, %v6553_v22 }
 0x2f2   : >> { %2610 = vmatmul.mubr.bf16.gmra.mxu1 %v6505_v14 }
 0x2f3   : >> { %4933 = vmatprep.mubr.msk.bf16.mxu1 %vm1495_vm6, %v6514_v16 }
 0x2f6   : >> { %2871 = vmatmul.mubr.bf16.gmra.mxu0 %v6585_v55 }
 0x2f7   : >> { %4985 = vmatprep.mubr.msk.bf16.mxu0 %vm1495_vm6, %v6593_v41 }
 0x2fa   : >> { %2618 = vmatmul.mubr.bf16.gmra.mxu1 %v6545_v26 }
 0x2fb   : >> { %4934 = vmatprep.mubr.msk.bf16.mxu1 %vm1495_vm6, %v6553_v22 }
 0x2fe   : >> { %2879 = vmatmul.mubr.bf16.gmra.mxu0 %v6625_v36 }
 0x2ff   : >> { %4986 = vmatprep.mubr.msk.bf16.mxu0 %vm1495_vm6, %v6633_v13 }
 0x302   : >> { %2626 = vmatmul.mubr.bf16.gmra.mxu1 %v6585_v55 }
 0x303   : >> { %4935 = vmatprep.mubr.msk.bf16.mxu1 %vm1495_vm6, %v6593_v41 }
 0x306   : >> { %2887 = vmatmul.mubr.bf16.gmra.mxu0 %v6648_v54 }
 0x307   : >> { %4987 = vmatprep.mubr.msk.bf16.mxu0 %vm1495_vm6, %v2021_v48 }
 0x30a   : >> { %2634 = vmatmul.mubr.bf16.gmra.mxu1 %v6625_v36 }
 0x30e   : >> { %2895 = vmatmul.mubr.bf16.gmra.mxu0 %v2074_v1 }
 0x312   : >> { %v6748_v20 = vpop.f32.mrf.mxu1 }
 0x314   : >> { %v2345_v58 = vpop.f32.mrf.mxu1 }
 0x316   : >> { %v6750_v7 = vpop.f32.mrf.mxu0  ;;  %v6752_v21 = vpop.f32.mrf.mxu1 }
 0x318   : >> { %v2281_v19 = vpop.f32.mrf.mxu0  ;;  %v2348_v3 = vpop.f32.mrf.mxu1 }
 0x31a   : >> { %v6754_v52 = vpop.f32.mrf.mxu0  ;;  %v6756_v15 = vpop.f32.mrf.mxu1 }
 0x31c   : >> { %v2284_v53 = vpop.f32.mrf.mxu0  ;;  %v2353_v57 = vpop.f32.mrf.mxu1 }
 0x31e   : >> { %v6758_v8 = vpop.f32.mrf.mxu0  ;;  %v6760_v42 = vpop.f32.mrf.mxu1 }
 0x320   : >> { %v2289_v32 = vpop.f32.mrf.mxu0  ;;  %v2356_v6 = vpop.f32.mrf.mxu1 }
 0x321   : >> { %v6816_v32 = vld [vmem:[%s7797_s4] ss:$0 sm:$0xff] }
 0x322   : >> { %v6762_v14 = vpop.f32.mrf.mxu0  ;;  %v6764_v16 = vpop.f32.mrf.mxu1 }
 0x324   : >> { %v2292_v31 = vpop.f32.mrf.mxu0  ;;  %v2361_v51 = vpop.f32.mrf.mxu1 }
 0x326   : >> { %v6766_v26 = vpop.f32.mrf.mxu0  ;;  %v6768_v22 = vpop.f32.mrf.mxu1 }
 0x328   : >> { %v2297_v38 = vpop.f32.mrf.mxu0  ;;  %v2364_v17 = vpop.f32.mrf.mxu1 }
 0x32a   : >> { %v6770_v47 = vpop.f32.mrf.mxu0  ;;  %v6772_v12 = vpop.f32.mrf.mxu1 }
 0x32c   : >> { %v2300_v59 = vpop.f32.mrf.mxu0  ;;  %v2369_v34 = vpop.f32.mrf.mxu1 }
 0x32e   : >> { %v6774_v30 = vpop.f32.mrf.mxu0  ;;  %v6776_v33 = vpop.f32.mrf.mxu1 }
 0x330   : >> { %v2305_v55 = vpop.f32.mrf.mxu0  ;;  %v2372_v28 = vpop.f32.mrf.mxu1 }
 0x332   : >> { %v6778_v62 = vpop.f32.mrf.mxu0  ;;  %v6780_v41 = vpop.f32.mrf.mxu1 }
 0x334   : >> { %v2308_v4 = vpop.f32.mrf.mxu0  ;;  %v2377_v29 = vpop.f32.mrf.mxu1 }
 0x336   : >> { %v6782_v40 = vpop.f32.mrf.mxu0  ;;  %v6784_v61 = vpop.f32.mrf.mxu1 }
 0x338   : >> { %v2313_v56 = vpop.f32.mrf.mxu0  ;;  %v2380_v9 = vpop.f32.mrf.mxu1 }
 0x33a   : >> { %v6786_v37 = vpop.f32.mrf.mxu0  ;;  %v6788_v50 = vpop.f32.mrf.mxu1 }
 0x33c   : >> { %v2316_v23 = vpop.f32.mrf.mxu0  ;;  %v2385_v25 = vpop.f32.mrf.mxu1 }
 0x33e   : >> { %v6790_v36 = vpop.f32.mrf.mxu0  ;;  %v6792_v60 = vpop.f32.mrf.mxu1 }
 0x340   : >> { %v2321_v18 = vpop.f32.mrf.mxu0  ;;  %v2388_v13 = vpop.f32.mrf.mxu1 }
 0x342   : >> { %v6794_v43 = vpop.f32.mrf.mxu0  ;;  %v6796_v45 = vpop.f32.mrf.mxu1 }
 0x344   : >> { %v2324_v0 = vpop.f32.mrf.mxu0  ;;  %v2393_v2 = vpop.f32.mrf.mxu1 }
 0x346   : >> { %v6798_v24 = vpop.f32.mrf.mxu0  ;;  %v6800_v63 = vpop.f32.mrf.mxu1 }
 0x348   : >> { %v2329_v49 = vpop.f32.mrf.mxu0  ;;  %v2396_v54 = vpop.f32.mrf.mxu1 }
 0x34a   : >> { %v6802_v10 = vpop.f32.mrf.mxu0  ;;  %v6804_v39 = vpop.f32.mrf.mxu1 }
 0x34c   : >> { %v2332_v5 = vpop.f32.mrf.mxu0  ;;  %v2401_v46 = vpop.f32.mrf.mxu1 }
 0x34e   : >> { %v6806_v44 = vpop.f32.mrf.mxu0  ;;  %v6808_v35 = vpop.f32.mrf.mxu1 }
 0x350   : >> { %v2337_v27 = vpop.f32.mrf.mxu0  ;;  %v2404_v48 = vpop.f32.mrf.mxu1 }
 0x352   : >> { %v6810_v11 = vpop.f32.mrf.mxu0  ;;  %v2515_v1 = vpop.f32.mrf.mxu1 }
 0x353   : >> { %v2516_v3 = vadd.f32 %v2515_v1, %v6750_v7 }
 0x354   : >> { %v2340_v58 = vpop.f32.mrf.mxu0  ;;  %v2517_v19 = vpop.f32.mrf.mxu1 }
 0x356   : >> { %v2518_v53 = vpop.f32.mrf.mxu1  ;;  %v2776_v57 = vpop.f32.mrf.mxu0 }
 0x357   : >> { %v2903_v6 = vadd.f32 %v2776_v57, %v2516_v3  ;;  %v2519_v38 = vadd.f32 %v2518_v53, %v6754_v52 }
 0x358   : >> { %v2520_v31 = vpop.f32.mrf.mxu1  ;;  %v2778_v51 = vpop.f32.mrf.mxu0 }
 0x359   : >> { %v2942_v17 = vadd.f32 %v6816_v32, %v2903_v6 }
 0x35a   : >> { %v2523_v59 = vpop.f32.mrf.mxu1  ;;  %v2779_v34 = vpop.f32.mrf.mxu0 }
 0x35b   : >> { %v2974_v55 = vmax.f32 %v2942_v17, 0.0  ;;  %v2904_v28 = vadd.f32 %v2779_v34, %v2519_v38  ;;  %v2524_v29 = vadd.f32 %v2523_v59, %v6758_v8 }
 0x35c   : >> { %v2525_v4 = vpop.f32.mrf.mxu1  ;;  %v2781_v7 = vpop.f32.mrf.mxu0 }
 0x35d   : >> { %3006 = vst.msk [vmem:[#allocation2 + $0x19] sm:$0xff] %vm1495_vm6, %v2974_v55  ;;  %v2943_v56 = vadd.f32 %v6816_v32, %v2904_v28 }
 0x35e   : >> { %v2526_v9 = vpop.f32.mrf.mxu1  ;;  %v2784_v23 = vpop.f32.mrf.mxu0 }
 0x35f   : >> { %v2975_v25 = vmax.f32 %v2943_v56, 0.0  ;;  %v2905_v18 = vadd.f32 %v2784_v23, %v2524_v29  ;;  %v2527_v0 = vadd.f32 %v2526_v9, %v6762_v14 }
 0x360   : >> { %v2528_v13 = vpop.f32.mrf.mxu1  ;;  %v2786_v52 = vpop.f32.mrf.mxu0 }
 0x361   : >> { %3007 = vst.msk [vmem:[#allocation2 + $0x21] sm:$0xff] %vm1495_vm6, %v2975_v25  ;;  %v2944_v2 = vadd.f32 %v6816_v32, %v2905_v18 }
 0x362   : >> { %v2531_v49 = vpop.f32.mrf.mxu1  ;;  %v2787_v54 = vpop.f32.mrf.mxu0 }
 0x363   : >> { %v2976_v5 = vmax.f32 %v2944_v2, 0.0  ;;  %v2906_v46 = vadd.f32 %v2787_v54, %v2527_v0  ;;  %v2532_v48 = vadd.f32 %v2531_v49, %v6766_v26 }
 0x364   : >> { %v2533_v27 = vpop.f32.mrf.mxu1  ;;  %v2789_v8 = vpop.f32.mrf.mxu0 }
 0x365   : >> { %3008 = vst.msk [vmem:[#allocation2 + $0x31] sm:$0xff] %vm1495_vm6, %v2976_v5  ;;  %v2945_v1 = vadd.f32 %v6816_v32, %v2906_v46 }
 0x366   : >> { %v2534_v58 = vpop.f32.mrf.mxu1  ;;  %v2792_v19 = vpop.f32.mrf.mxu0 }
 0x367   : >> { %v2977_v3 = vmax.f32 %v2945_v1, 0.0  ;;  %v2907_v53 = vadd.f32 %v2792_v19, %v2532_v48  ;;  %v2535_v6 = vadd.f32 %v2534_v58, %v6770_v47 }
 0x368   : >> { %v2536_v57 = vpop.f32.mrf.mxu1  ;;  %v2794_v14 = vpop.f32.mrf.mxu0 }
 0x369   : >> { %3009 = vst.msk [vmem:[#allocation2 + $0x39] sm:$0xff] %vm1495_vm6, %v2977_v3  ;;  %v2946_v31 = vadd.f32 %v6816_v32, %v2907_v53 }
 0x36a   : >> { %v2539_v51 = vpop.f32.mrf.mxu1  ;;  %v2795_v38 = vpop.f32.mrf.mxu0 }
 0x36b   : >> { %v2978_v17 = vmax.f32 %v2946_v31, 0.0  ;;  %v2908_v59 = vadd.f32 %v2795_v38, %v2535_v6  ;;  %v2540_v55 = vadd.f32 %v2539_v51, %v6774_v30 }
 0x36c   : >> { %v2541_v34 = vpop.f32.mrf.mxu1  ;;  %v2797_v26 = vpop.f32.mrf.mxu0 }
 0x36d   : >> { %3010 = vst.msk [vmem:[#allocation2 + $0x49] sm:$0xff] %vm1495_vm6, %v2978_v17  ;;  %v2947_v28 = vadd.f32 %v6816_v32, %v2908_v59 }
 0x36e   : >> { %v2542_v4 = vpop.f32.mrf.mxu1  ;;  %v2800_v7 = vpop.f32.mrf.mxu0 }
 0x36f   : >> { %v2979_v29 = vmax.f32 %v2947_v28, 0.0  ;;  %v2909_v56 = vadd.f32 %v2800_v7, %v2540_v55  ;;  %v2543_v23 = vadd.f32 %v2542_v4, %v6778_v62 }
 0x370   : >> { %v2544_v9 = vpop.f32.mrf.mxu1  ;;  %v2802_v47 = vpop.f32.mrf.mxu0 }
 0x371   : >> { %3011 = vst.msk [vmem:[#allocation2 + $0x51] sm:$0xff] %vm1495_vm6, %v2979_v29  ;;  %v2948_v25 = vadd.f32 %v6816_v32, %v2909_v56 }
 0x372   : >> { %v2547_v18 = vpop.f32.mrf.mxu1  ;;  %v2803_v13 = vpop.f32.mrf.mxu0 }
 0x373   : >> { %v2980_v52 = vmax.f32 %v2948_v25, 0.0  ;;  %v2910_v0 = vadd.f32 %v2803_v13, %v2543_v23  ;;  %v2548_v49 = vadd.f32 %v2547_v18, %v6782_v40 }
 0x374   : >> { %v2549_v2 = vpop.f32.mrf.mxu1  ;;  %v2805_v30 = vpop.f32.mrf.mxu0 }
 0x375   : >> { %3012 = vst.msk [vmem:[#allocation2 + $0x61] sm:$0xff] %vm1495_vm6, %v2980_v52  ;;  %v2949_v54 = vadd.f32 %v6816_v32, %v2910_v0 }
 0x376   : >> { %v2550_v5 = vpop.f32.mrf.mxu1  ;;  %v2808_v46 = vpop.f32.mrf.mxu0 }
 0x377   : >> { %v2981_v27 = vmax.f32 %v2949_v54, 0.0  ;;  %v2911_v8 = vadd.f32 %v2808_v46, %v2548_v49  ;;  %v2551_v1 = vadd.f32 %v2550_v5, %v6786_v37 }
 0x378   : >> { %v2552_v48 = vpop.f32.mrf.mxu1  ;;  %v2810_v62 = vpop.f32.mrf.mxu0 }
 0x379   : >> { %3013 = vst.msk [vmem:[#allocation2 + $0x69] sm:$0xff] %vm1495_vm6, %v2981_v27  ;;  %v2950_v58 = vadd.f32 %v6816_v32, %v2911_v8 }
 0x37a   : >> { %v2555_v19 = vpop.f32.mrf.mxu1  ;;  %v2811_v3 = vpop.f32.mrf.mxu0 }
 0x37b   : >> { %v2982_v53 = vmax.f32 %v2950_v58, 0.0  ;;  %v2912_v57 = vadd.f32 %v2811_v3, %v2551_v1  ;;  %v2556_v6 = vadd.f32 %v2555_v19, %v6790_v36 }
 0x37c   : >> { %v2557_v14 = vpop.f32.mrf.mxu1  ;;  %v2813_v40 = vpop.f32.mrf.mxu0 }
 0x37d   : >> { %3014 = vst.msk [vmem:[#allocation2 + $0x79] sm:$0xff] %vm1495_vm6, %v2982_v53  ;;  %v2951_v31 = vadd.f32 %v6816_v32, %v2912_v57 }
 0x37e   : >> { %v2558_v51 = vpop.f32.mrf.mxu1  ;;  %v2816_v38 = vpop.f32.mrf.mxu0 }
 0x37f   : >> { %v2983_v17 = vmax.f32 %v2951_v31, 0.0  ;;  %v2913_v59 = vadd.f32 %v2816_v38, %v2556_v6  ;;  %v2559_v26 = vadd.f32 %v2558_v51, %v6794_v43 }
 0x380   : >> { %v2560_v34 = vpop.f32.mrf.mxu1  ;;  %v2818_v37 = vpop.f32.mrf.mxu0 }
 0x381   : >> { %3015 = vst.msk [vmem:[#allocation2 + $0x81] sm:$0xff] %vm1495_vm6, %v2983_v17  ;;  %v2952_v55 = vadd.f32 %v6816_v32, %v2913_v59 }
 0x382   : >> { %v2563_v28 = vpop.f32.mrf.mxu1  ;;  %v2819_v4 = vpop.f32.mrf.mxu0 }
 0x383   : >> { %v2984_v7 = vmax.f32 %v2952_v55, 0.0  ;;  %v2914_v29 = vadd.f32 %v2819_v4, %v2559_v26  ;;  %v2564_v9 = vadd.f32 %v2563_v28, %v6798_v24 }
 0x384   : >> { %v2565_v56 = vpop.f32.mrf.mxu1  ;;  %v2821_v36 = vpop.f32.mrf.mxu0 }
 0x385   : >> { %3016 = vst.msk [vmem:[#allocation2 + $0x91] sm:$0xff] %vm1495_vm6, %v2984_v7  ;;  %v2953_v47 = vadd.f32 %v6816_v32, %v2914_v29 }
 0x386   : >> { %v2566_v23 = vpop.f32.mrf.mxu1  ;;  %v2824_v25 = vpop.f32.mrf.mxu0 }
 0x387   : >> { %v2985_v18 = vmax.f32 %v2953_v47, 0.0  ;;  %v2915_v13 = vadd.f32 %v2824_v25, %v2564_v9  ;;  %v2567_v0 = vadd.f32 %v2566_v23, %v6802_v10 }
 0x388   : >> { %v2568_v52 = vpop.f32.mrf.mxu1  ;;  %v2826_v43 = vpop.f32.mrf.mxu0 }
 0x389   : >> { %3017 = vst.msk [vmem:[#allocation2 + $0x99] sm:$0xff] %vm1495_vm6, %v2985_v18  ;;  %v2954_v2 = vadd.f32 %v6816_v32, %v2915_v13 }
 0x38a   : >> { %v2571_v30 = vpop.f32.mrf.mxu1  ;;  %v2827_v49 = vpop.f32.mrf.mxu0 }
 0x38b   : >> { %v2986_v54 = vmax.f32 %v2954_v2, 0.0  ;;  %v2916_v5 = vadd.f32 %v2827_v49, %v2567_v0  ;;  %v2572_v27 = vadd.f32 %v2571_v30, %v6806_v44 }
 0x38c   : >> { %v2573_v46 = vpop.f32.mrf.mxu1  ;;  %v2829_v24 = vpop.f32.mrf.mxu0 }
 0x38d   : >> { %3018 = vst.msk [vmem:[#allocation2 + $0xa9] sm:$0xff] %vm1495_vm6, %v2986_v54  ;;  %v2955_v8 = vadd.f32 %v6816_v32, %v2916_v5 }
 0x38e   : >> { %v2574_v48 = vpop.f32.mrf.mxu1  ;;  %v2832_v62 = vpop.f32.mrf.mxu0 }
 0x38f   : >> { %v2987_v1 = vmax.f32 %v2955_v8, 0.0  ;;  %v2917_v58 = vadd.f32 %v2832_v62, %v2572_v27  ;;  %v2575_v3 = vadd.f32 %v2574_v48, %v6810_v11 }
 0x390   : >> { %v2576_v19 = vpop.f32.mrf.mxu1  ;;  %v2834_v10 = vpop.f32.mrf.mxu0 }
 0x391   : >> { %3019 = vst.msk [vmem:[#allocation2 + $0xb1] sm:$0xff] %vm1495_vm6, %v2987_v1  ;;  %v2956_v53 = vadd.f32 %v6816_v32, %v2917_v58 }
 0x392   : >> { %v2579_v57 = vpop.f32.mrf.mxu1  ;;  %v2835_v14 = vpop.f32.mrf.mxu0 }
 0x393   : >> { %v2988_v40 = vmax.f32 %v2956_v53, 0.0  ;;  %v2918_v6 = vadd.f32 %v2835_v14, %v2575_v3  ;;  %v2580_v51 = vadd.f32 %v2579_v57, %v6748_v20 }
 0x394   : >> { %v2581_v31 = vpop.f32.mrf.mxu1  ;;  %v2837_v44 = vpop.f32.mrf.mxu0 }
 0x395   : >> { %3020 = vst.msk [vmem:[#allocation2 + $0xc1] sm:$0xff] %vm1495_vm6, %v2988_v40  ;;  %v2957_v38 = vadd.f32 %v6816_v32, %v2918_v6 }
 0x396   : >> { %v2582_v17 = vpop.f32.mrf.mxu1  ;;  %v2840_v59 = vpop.f32.mrf.mxu0 }
 0x397   : >> { %v2989_v34 = vmax.f32 %v2957_v38, 0.0  ;;  %v2919_v37 = vadd.f32 %v2840_v59, %v2580_v51  ;;  %v2583_v55 = vadd.f32 %v2582_v17, %v6752_v21 }
 0x398   : >> { %v2584_v26 = vpop.f32.mrf.mxu1  ;;  %v2842_v11 = vpop.f32.mrf.mxu0 }
 0x399   : >> { %3021 = vst.msk [vmem:[#allocation2 + $0xc9] sm:$0xff] %vm1495_vm6, %v2989_v34  ;;  %v2958_v28 = vadd.f32 %v6816_v32, %v2919_v37 }
 0x39a   : >> { %v2587_v4 = vpop.f32.mrf.mxu1  ;;  %v2843_v7 = vpop.f32.mrf.mxu0 }
 0x39b   : >> { %v2990_v29 = vmax.f32 %v2958_v28, 0.0  ;;  %v2920_v56 = vadd.f32 %v2843_v7, %v2583_v55  ;;  %v2588_v9 = vadd.f32 %v2587_v4, %v6756_v15 }
 0x39c   : >> { %v2589_v36 = vpop.f32.mrf.mxu1  ;;  %v2845_v20 = vpop.f32.mrf.mxu0 }
 0x39d   : >> { %3022 = vst.msk [vmem:[#allocation2 + $0xd9] sm:$0xff] %vm1495_vm6, %v2990_v29  ;;  %v2959_v47 = vadd.f32 %v6816_v32, %v2920_v56 }
 0x39e   : >> { %v2590_v23 = vpop.f32.mrf.mxu1  ;;  %v2848_v25 = vpop.f32.mrf.mxu0 }
 0x39f   : >> { %v2991_v18 = vmax.f32 %v2959_v47, 0.0  ;;  %v2921_v13 = vadd.f32 %v2848_v25, %v2588_v9  ;;  %v2591_v43 = vadd.f32 %v2590_v23, %v6760_v42 }
 0x3a0   : >> { %v2592_v52 = vpop.f32.mrf.mxu1  ;;  %v2850_v21 = vpop.f32.mrf.mxu0 }
 0x3a1   : >> { %3023 = vst.msk [vmem:[#allocation2 + $0xe1] sm:$0xff] %vm1495_vm6, %v2991_v18  ;;  %v2960_v0 = vadd.f32 %v6816_v32, %v2921_v13 }
 0x3a2   : >> { %v2595_v2 = vpop.f32.mrf.mxu1  ;;  %v2851_v30 = vpop.f32.mrf.mxu0 }
 0x3a3   : >> { %v2992_v49 = vmax.f32 %v2960_v0, 0.0  ;;  %v2922_v54 = vadd.f32 %v2851_v30, %v2591_v43  ;;  %v2596_v46 = vadd.f32 %v2595_v2, %v6764_v16 }
 0x3a4   : >> { %v2597_v5 = vpop.f32.mrf.mxu1  ;;  %v2853_v15 = vpop.f32.mrf.mxu0 }
 0x3a5   : >> { %3024 = vst.msk [vmem:[#allocation2 + $0xf1] sm:$0xff] %vm1495_vm6, %v2992_v49  ;;  %v2961_v24 = vadd.f32 %v6816_v32, %v2922_v54 }
 0x3a6   : >> { %v2598_v27 = vpop.f32.mrf.mxu1  ;;  %v2856_v8 = vpop.f32.mrf.mxu0 }
 0x3a7   : >> { %v2993_v48 = vmax.f32 %v2961_v24, 0.0  ;;  %v2923_v62 = vadd.f32 %v2856_v8, %v2596_v46  ;;  %v2599_v58 = vadd.f32 %v2598_v27, %v6768_v22 }
 0x3a8   : >> { %v2600_v1 = vpop.f32.mrf.mxu1  ;;  %v2858_v42 = vpop.f32.mrf.mxu0 }
 0x3a9   : >> { %3025 = vst.msk [vmem:[#allocation2 + $0xf9] sm:$0xff] %vm1495_vm6, %v2993_v48  ;;  %v2962_v19 = vadd.f32 %v6816_v32, %v2923_v62 }
 0x3aa   : >> { %v2603_v10 = vpop.f32.mrf.mxu1  ;;  %v2859_v3 = vpop.f32.mrf.mxu0 }
 0x3ab   : >> { %v2994_v53 = vmax.f32 %v2962_v19, 0.0  ;;  %v2924_v57 = vadd.f32 %v2859_v3, %v2599_v58  ;;  %v2604_v40 = vadd.f32 %v2603_v10, %v6772_v12 }
 0x3ac   : >> { %v2605_v14 = vpop.f32.mrf.mxu1  ;;  %v2861_v16 = vpop.f32.mrf.mxu0 }
 0x3ad   : >> { %3026 = vst.msk [vmem:[#allocation2 + $0x109] sm:$0xff] %vm1495_vm6, %v2994_v53  ;;  %v2963_v6 = vadd.f32 %v6816_v32, %v2924_v57 }
 0x3ae   : >> { %v2606_v31 = vpop.f32.mrf.mxu1  ;;  %v2864_v44 = vpop.f32.mrf.mxu0 }
 0x3af   : >> { %v2995_v51 = vmax.f32 %v2963_v6, 0.0  ;;  %v2925_v38 = vadd.f32 %v2864_v44, %v2604_v40  ;;  %v2607_v59 = vadd.f32 %v2606_v31, %v6776_v33 }
 0x3b0   : >> { %v2608_v17 = vpop.f32.mrf.mxu1  ;;  %v2866_v22 = vpop.f32.mrf.mxu0 }
 0x3b1   : >> { %3027 = vst.msk [vmem:[#allocation2 + $0x111] sm:$0xff] %vm1495_vm6, %v2995_v51  ;;  %v2964_v34 = vadd.f32 %v6816_v32, %v2925_v38 }
 0x3b2   : >> { %v2611_v37 = vpop.f32.mrf.mxu1  ;;  %v2867_v26 = vpop.f32.mrf.mxu0 }
 0x3b3   : >> { %v2996_v11 = vmax.f32 %v2964_v34, 0.0  ;;  %v2926_v55 = vadd.f32 %v2867_v26, %v2607_v59  ;;  %v2612_v4 = vadd.f32 %v2611_v37, %v6780_v41 }
 0x3b4   : >> { %v2613_v28 = vpop.f32.mrf.mxu1  ;;  %v2869_v12 = vpop.f32.mrf.mxu0 }
 0x3b5   : >> { %3028 = vst.msk [vmem:[#allocation2 + $0x121] sm:$0xff] %vm1495_vm6, %v2996_v11  ;;  %v2965_v7 = vadd.f32 %v6816_v32, %v2926_v55 }
 0x3b6   : >> { %v2614_v29 = vpop.f32.mrf.mxu1  ;;  %v2872_v56 = vpop.f32.mrf.mxu0 }
 0x3b7   : >> { %v2997_v36 = vmax.f32 %v2965_v7, 0.0  ;;  %v2927_v20 = vadd.f32 %v2872_v56, %v2612_v4  ;;  %v2615_v47 = vadd.f32 %v2614_v29, %v6784_v61  ;;  %v3066_v29 = vld [vmem:[#allocation2 + $0xe0] sm:$0xff] (%p1586_p4)  ;;  %v3067_v56 = vld [vmem:[#allocation2 + $0xe8] sm:$0x3] (%p1586_p4) }
 0x3b8   : >> { %v2616_v9 = vpop.f32.mrf.mxu1  ;;  %v2874_v33 = vpop.f32.mrf.mxu0 }
 0x3b9   : >> { %3029 = vst.msk [vmem:[#allocation2 + $0x129] sm:$0xff] %vm1495_vm6, %v2997_v36  ;;  %v2966_v23 = vadd.f32 %v6816_v32, %v2927_v20  ;;  %v6918_v20 = vpack.c.bf16 (%p1586_p4), %v3067_v56, %v3067_v56  ;;  %v3041_v9 = vld [vmem:[#allocation2 + $0x18] sm:$0xff] (%p1586_p4)  ;;  %v3042_v33 = vld [vmem:[#allocation2 + $0x20] sm:$0xff] (%p1586_p4) }
 0x3ba   : >> { %v2619_v25 = vpop.f32.mrf.mxu1  ;;  %v2875_v18 = vpop.f32.mrf.mxu0  ;;  %v3050_v56 = vld [vmem:[#allocation2 + $0x60] sm:$0xff] (%p1586_p4) }
 0x3bb   : >> { %v2998_v13 = vmax.f32 %v2966_v23, 0.0  ;;  %v2928_v52 = vadd.f32 %v2875_v18, %v2615_v47  ;;  %v2620_v43 = vadd.f32 %v2619_v25, %v6788_v50  ;;  %v3043_v47 = vld [vmem:[#allocation2 + $0x28] sm:$0x3] (%p1586_p4)  ;;  %v6922_v23 = vpack.c.bf16 (%p1586_p4), %v3042_v33, %v3041_v9  ;;  %v3068_v18 = vld [vmem:[#allocation2 + $0xf0] sm:$0xff] (%p1586_p4) }
 0x3bc   : >> { %v2621_v21 = vpop.f32.mrf.mxu1  ;;  %v2877_v41 = vpop.f32.mrf.mxu0  ;;  %v6924_v25 = vpack.c.bf16 (%p1586_p4), %v3043_v47, %v3043_v47  ;;  %v3051_v9 = vld [vmem:[#allocation2 + $0x68] sm:$0xff] (%p1586_p4) }
 0x3bd   : >> { %3030 = vst.msk [vmem:[#allocation2 + $0x139] sm:$0xff] %vm1495_vm6, %v2998_v13  ;;  %v2967_v0 = vadd.f32 %v6816_v32, %v2928_v52  ;;  %v3069_v13 = vld [vmem:[#allocation2 + $0xf8] sm:$0xff] (%p1586_p4)  ;;  %v3070_v52 = vld [vmem:[#allocation2 + $0x100] sm:$0x3] (%p1586_p4) }
 0x3be   : >> { %v2622_v2 = vpop.f32.mrf.mxu1  ;;  %v2880_v30 = vpop.f32.mrf.mxu0 }
 0x3bf   : >> { %v2999_v49 = vmax.f32 %v2967_v0, 0.0  ;;  %v2929_v54 = vadd.f32 %v2880_v30, %v2620_v43  ;;  %v2623_v15 = vadd.f32 %v2622_v2, %v6792_v60  ;;  %v3244_v43 = vshll.u32 (%p1586_p4), %v6918_v20, 16  ;;  %v3044_v2 = vld [vmem:[#allocation2 + $0x30] sm:$0xff] (%p1586_p4)  ;;  %v3045_v30 = vld [vmem:[#allocation2 + $0x38] sm:$0xff] (%p1586_p4) }
 0x3c0   : >> { %v2624_v5 = vpop.f32.mrf.mxu1  ;;  %v2882_v61 = vpop.f32.mrf.mxu0  ;;  %v6929_v0 = vpack.c.bf16 (%p1586_p4), %v3069_v13, %v3068_v18 }
 0x3c1   : >> { %3031 = vst.msk [vmem:[#allocation2 + $0x141] sm:$0xff] %vm1495_vm6, %v2999_v49  ;;  %v2968_v46 = vadd.f32 %v6816_v32, %v2929_v54  ;;  %v3071_v49 = vld [vmem:[#allocation2 + $0x108] sm:$0xff] (%p1586_p4)  ;;  %v3141_v54 = vshrl.u32 (%p1586_p4), %v6922_v23, 16  ;;  %v3143_v5 = vshll.u32 (%p1586_p4), %v6922_v23, 16  ;;  %v3148_v61 = vshll.u32 (%p1586_p4), %v6924_v25, 16 }
 0x3c2   : >> { %v2627_v24 = vpop.f32.mrf.mxu1  ;;  %v2883_v27 = vpop.f32.mrf.mxu0 }
 0x3c3   : >> { %v3000_v8 = vmax.f32 %v2968_v46, 0.0  ;;  %v2930_v48 = vadd.f32 %v2883_v27, %v2623_v15  ;;  %v2628_v1 = vadd.f32 %v2627_v24, %v6796_v45  ;;  %v6934_v15 = vpack.c.bf16 (%p1586_p4), %v3070_v52, %v3070_v52  ;;  %v3046_v46 = vld [vmem:[#allocation2 + $0x40] sm:$0x3] (%p1586_p4)  ;;  %v3072_v24 = vld [vmem:[#allocation2 + $0x110] sm:$0xff] (%p1586_p4) }
 0x3c4   : >> { %v2629_v62 = vpop.f32.mrf.mxu1  ;;  %v2885_v50 = vpop.f32.mrf.mxu0  ;;  %v3077_v33 = vld [vmem:[#allocation2 + $0x138] sm:$0xff] (%p1586_p4) }
 0x3c5   : >> { %3032 = vst.msk [vmem:[#allocation2 + $0x151] sm:$0xff] %vm1495_vm6, %v3000_v8  ;;  %v2969_v42 = vadd.f32 %v6816_v32, %v2930_v48  ;;  %v3246_v8 = vrot.slane (%p1586_p4), %v3244_v43, 1  ;;  %v3249_v48 = vshrl.u32 (%p1586_p4), %v6929_v0, 16  ;;  %v3251_v62 = vshll.u32 (%p1586_p4), %v6929_v0, 16 }
 0x3c6   : >> { %v2630_v58 = vpop.f32.mrf.mxu1  ;;  %v2888_v19 = vpop.f32.mrf.mxu0  ;;  %v3145_v50 = vrot.slane (%p1586_p4), %v3143_v5, 1 }
 0x3c7   : >> { %v3001_v10 = vmax.f32 %v2969_v42, 0.0  ;;  %v2931_v3 = vadd.f32 %v2888_v19, %v2628_v1  ;;  %v2631_v57 = vadd.f32 %v2630_v58, %v6800_v63  ;;  %v3150_v1 = vrot.slane (%p1586_p4), %v3148_v61, 1  ;;  %v3073_v19 = vld [vmem:[#allocation2 + $0x118] sm:$0x3] (%p1586_p4) }
 0x3c8   : >> { %v2632_v53 = vpop.f32.mrf.mxu1  ;;  %v2890_v60 = vpop.f32.mrf.mxu0  ;;  %v3256_v42 = vshll.u32 (%p1586_p4), %v6934_v15, 16  ;;  %v6939_v58 = vpack.c.bf16 (%p1586_p4), %v3045_v30, %v3044_v2 }
 0x3c9   : >> { %3033 = vst.msk [vmem:[#allocation2 + $0x159] sm:$0xff] %vm1495_vm6, %v3001_v10  ;;  %v2970_v14 = vadd.f32 %v6816_v32, %v2931_v3  ;;  %v3253_v3 = vrot.slane (%p1586_p4), %v3251_v62, 1  ;;  %v6941_v53 = vpack.c.bf16 (%p1586_p4), %v3046_v46, %v3046_v46  ;;  %v6943_v60 = vpack.c.bf16 (%p1586_p4), %v3072_v24, %v3071_v49  ;;  %v3079_v24 = vld [vmem:[#allocation2 + $0x148] sm:$0x3] (%p1586_p4) }
 0x3ca   : >> { %v2635_v16 = vpop.f32.mrf.mxu1  ;;  %v2891_v40 = vpop.f32.mrf.mxu0  ;;  %v6974_v46 = vpack.c.bf16 (%p1586_p4), %v3051_v9, %v3050_v56 }
 0x3cb   : >> { %v3002_v6 = vmax.f32 %v2970_v14, 0.0  ;;  %v2932_v31 = vadd.f32 %v2891_v40, %v2631_v57  ;;  %v2636_v51 = vadd.f32 %v2635_v16, %v6804_v39  ;;  %v3146_v57 = vor.u32 (%p1586_p4), %v3145_v50, %v3141_v54  ;;  %v3053_v50 = vld [vmem:[#allocation2 + $0x78] sm:$0xff] (%p1586_p4) }
 0x3cc   : >> { %v2637_v44 = vpop.f32.mrf.mxu1  ;;  %v2893_v45 = vpop.f32.mrf.mxu0  ;;  %v3258_v14 = vrot.slane (%p1586_p4), %v3256_v42, 1  ;;  %v3153_v16 = vshrl.u32 (%p1586_p4), %v6939_v58, 16  ;;  %v3155_v40 = vshll.u32 (%p1586_p4), %v6939_v58, 16 }
 0x3cd   : >> { %3034 = vst.msk [vmem:[#allocation2 + $0x169] sm:$0xff] %vm1495_vm6, %v3002_v6  ;;  %v2971_v38 = vadd.f32 %v6816_v32, %v2932_v31  ;;  %v3047_v6 = vld [vmem:[#allocation2 + $0x48] sm:$0xff] (%p1586_p4)  ;;  %v3048_v31 = vld [vmem:[#allocation2 + $0x50] sm:$0xff] (%p1586_p4)  ;;  %v3254_v45 = vor.u32 (%p1586_p4), %v3253_v3, %v3249_v48  ;;  %v3177_v3 = vshrl.u32 (%p1586_p4), %v6974_v46, 16 }
 0x3ce   : >> { %v2638_v17 = vpop.f32.mrf.mxu1  ;;  %v2896_v22 = vpop.f32.mrf.mxu0 }
 0x3cf   : >> { %v3003_v59 = vmax.f32 %v2971_v38, 0.0  ;;  %v2933_v34 = vadd.f32 %v2896_v22, %v2636_v51  ;;  %v2639_v26 = vadd.f32 %v2638_v17, %v6808_v35  ;;  %v3065_v35 = vld [vmem:[#allocation2 + $0xd8] sm:$0xff] (%p1586_p4)  ;;  %v3160_v51 = vshll.u32 (%p1586_p4), %v6941_v53, 16  ;;  %v3074_v22 = vld [vmem:[#allocation2 + $0x120] sm:$0xff] (%p1586_p4) }
 0x3d0   : >> { %v2640_v37 = vpop.f32.mrf.mxu1  ;;  %v2898_v63 = vpop.f32.mrf.mxu0  ;;  %v6916_v36 = vpack.c.bf16 (%p1586_p4), %v3066_v29, %v3065_v35  ;;  %v6949_v38 = vpack.c.bf16 (%p1586_p4), %v3073_v19, %v3073_v19  ;;  %v3049_v17 = vld [vmem:[#allocation2 + $0x58] sm:$0x3] (%p1586_p4) }
 0x3d1   : >> { %3035 = vst.msk [vmem:[#allocation2 + $0x171] sm:$0xff] %vm1495_vm6, %v3003_v59  ;;  %v2972_v11 = vadd.f32 %v6816_v32, %v2933_v34  ;;  %v3075_v59 = vld [vmem:[#allocation2 + $0x128] sm:$0xff] (%p1586_p4)  ;;  %v3151_v34 = vsel (%p1586_p4), %vm370_vm2, %v3146_v57, %v3150_v1  ;;  %v3157_v37 = vrot.slane (%p1586_p4), %v3155_v40, 1  ;;  %v3261_v63 = vshrl.u32 (%p1586_p4), %v6943_v60, 16  ;;  %v3054_v1 = vld [vmem:[#allocation2 + $0x80] sm:$0xff] (%p1586_p4) }
 0x3d2   : >> { %v2899_v55 = vpop.f32.mrf.mxu0  ;;  %v3237_v21 = vshrl.u32 (%p1586_p4), %v6916_v36, 16  ;;  %v3239_v41 = vshll.u32 (%p1586_p4), %v6916_v36, 16  ;;  %v6960_v35 = vpack.c.bf16 (%p1586_p4), %v3049_v17, %v3049_v17  ;;  %v6962_v29 = vpack.c.bf16 (%p1586_p4), %v3075_v59, %v3074_v22  ;;  %v3055_v57 = vld [vmem:[#allocation2 + $0x88] sm:$0x3] (%p1586_p4) }
 0x3d3   : >> { %v3004_v28 = vmax.f32 %v2972_v11, 0.0  ;;  %v2934_v12 = vadd.f32 %v2899_v55, %v2639_v26  ;;  %v3263_v26 = vshll.u32 (%p1586_p4), %v6943_v60, 16  ;;  %v3076_v11 = vld [vmem:[#allocation2 + $0x130] sm:$0x3] (%p1586_p4)  ;;  %v3259_v55 = vsel (%p1586_p4), %vm370_vm2, %v3254_v45, %v3258_v14  ;;  %v3082_v45 = vld [vmem:[#allocation2 + $0x160] sm:$0x3] (%p1586_p4) }
 0x3d4   : >> { %v2901_v4 = vpop.f32.mrf.mxu0  ;;  %v3241_v27 = vrot.slane (%p1586_p4), %v3239_v41, 1  ;;  %3364 = vrot.lane.b32.xlu1 (%p1586_p4), %v3259_v55, %s5467_s28  ;;  %v6966_v52 = vpack.c.bf16 (%p1586_p4), %v3076_v11, %v3076_v11  ;;  %v3078_v41 = vld [vmem:[#allocation2 + $0x140] sm:$0xff] (%p1586_p4)  ;;  %v3172_v30 = vshll.u32 (%p1586_p4), %v6960_v35, 16  ;;  %v3273_v49 = vshrl.u32 (%p1586_p4), %v6962_v29, 16  ;;  %v3080_v14 = vld [vmem:[#allocation2 + $0x150] sm:$0xff] (%p1586_p4) }
 0x3d5   : >> { %3036 = vst.msk [vmem:[#allocation2 + $0x181] sm:$0xff] %vm1495_vm6, %v3004_v28  ;;  %v2973_v39 = vadd.f32 %v6816_v32, %v2934_v12  ;;  %1588 = sbr.rel (!%p1586_p4) target bundleno = 468 (0x1d4), region = 92  ;;  %v5466_v32 = vmov (%p1586_p4), 0   ;;  %v3162_v28 = vrot.slane (%p1586_p4), %v3160_v51, 1  ;;  %v3268_v12 = vshll.u32 (%p1586_p4), %v6949_v38, 16  ;;  %v3056_v51 = vld [vmem:[#allocation2 + $0x90] sm:$0xff] (%p1586_p4) }
 0x3d6   : > { %5315 = vmatprep.subr.bf16.mxu1 (%p1586_p4), %v5466_v32  ;;  %3693 = vmatprep.subr.bf16.mxu0 (%p1586_p4), %v5466_v32  ;;  %v3242_v10 = vor.u32 (%p1586_p4), %v3241_v27, %v3237_v21  ;;  %v6957_v4 = vpack.c.bf16 (%p1586_p4), %v3048_v31, %v3047_v6  ;;  %v3052_v21 = vld [vmem:[#allocation2 + $0x70] sm:$0x3] (%p1586_p4)  ;;  %v3275_v5 = vshll.u32 (%p1586_p4), %v6962_v29, 16  ;;  %v3280_v61 = vshll.u32 (%p1586_p4), %v6966_v52, 16 }
 0x3d7   : >> { %v3005_v7 = vmax.f32 %v2973_v39, 0.0  ;;  %v3158_v39 = vor.u32 (%p1586_p4), %v3157_v37, %v3153_v16  ;;  %v3270_v47 = vrot.slane (%p1586_p4), %v3268_v12, 1  ;;  %v6978_v48 = vpack.c.bf16 (%p1586_p4), %v3052_v21, %v3052_v21  ;;  %v3081_v16 = vld [vmem:[#allocation2 + $0x158] sm:$0xff] (%p1586_p4)  ;;  %v3058_v12 = vld [vmem:[#allocation2 + $0xa0] sm:$0x3] (%p1586_p4) }
 0x3d8   : > { %v3247_v44 = vsel (%p1586_p4), %vm370_vm2, %v3242_v10, %v3246_v8  ;;  %v3165_v18 = vshrl.u32 (%p1586_p4), %v6957_v4, 16  ;;  %v3167_v13 = vshll.u32 (%p1586_p4), %v6957_v4, 16  ;;  %v3174_v8 = vrot.slane (%p1586_p4), %v3172_v30, 1  ;;  %v5409_v37 = vld [vmem:[%s7798_s5 + $0x98] sm:$0xff] (%p1586_p4)  }
 0x3d9   : >> { %3037 = vst.msk [vmem:[#allocation2 + $0x189] sm:$0xff] %vm1495_vm6, %v3005_v7  ;;  %3362 = vrot.lane.b32.xlu0 (%p1586_p4), %v3247_v44, %s5467_s28  ;;  %v3265_v7 = vrot.slane (%p1586_p4), %v3263_v26, 1  ;;  %v3163_v43 = vsel (%p1586_p4), %vm370_vm2, %v3158_v39, %v3162_v28  ;;  %v6980_v62 = vpack.c.bf16 (%p1586_p4), %v3078_v41, %v3077_v33  ;;  %v3277_v19 = vrot.slane (%p1586_p4), %v3275_v5, 1  ;;  %v3057_v28 = vld [vmem:[#allocation2 + $0x98] sm:$0xff] (%p1586_p4)  ;;  %v3083_v33 = vld [vmem:[#allocation2 + $0x168] sm:$0xff] (%p1586_p4)  ;;  %5327 = vmatpush1.bf16.msra.mxu1 (%p1586_p4), %v5409_v37  ;;  %v3084_v5 = vld [vmem:[#allocation2 + $0x170] sm:$0xff] (%p1586_p4) }
 0x3da   : > { %v3169_v54 = vrot.slane %v3167_v13, 1  ;;  %3348 = vrot.lane.b32.xlu1 %v3163_v43, %s5467_s28  ;;  %v3282_v10 = vrot.slane %v3280_v61, 1  ;;  %v3179_v40 = vshll.u32 %v6974_v46, 16  ;;  %v3184_v6 = vshll.u32 %v6978_v48, 16  ;;  %3694 = vmatpush1.bf16.msra.mxu0 %v5409_v37  ;;  %v3085_v43 = vld [vmem:[#allocation2 + $0x178] sm:$0x3] }
 0x3db   : > { %v3266_v2 = vor.u32 %v3265_v7, %v3261_v63  ;;  %v6986_v31 = vpack.c.bf16 %v3079_v24, %v3079_v24  ;;  %v3285_v44 = vshrl.u32 %v6980_v62, 16  ;;  %v3278_v22 = vor.u32 %v3277_v19, %v3273_v49  ;;  %5316 = vmatprep.subr.bf16.mxu1 %v5466_v32  ;;  %3695 = vmatprep.subr.bf16.mxu0 %v5466_v32 }
 0x3dc   : > { %v3170_v42 = vor.u32 %v3169_v54, %v3165_v18  ;;  %v3287_v59 = vshll.u32 %v6980_v62, 16  ;;  %v3181_v63 = vrot.slane %v3179_v40, 1  ;;  %v3186_v26 = vrot.slane %v3184_v6, 1 }
 0x3dd   : > { %3346 = vrot.lane.b32.xlu0 %v3151_v34, %s5467_s28  ;;  %v3271_v27 = vsel %vm370_vm2, %v3266_v2, %v3270_v47  ;;  %v6991_v34 = vpack.c.bf16 %v3054_v1, %v3053_v50  ;;  %v3292_v11 = vshll.u32 %v6986_v31, 16  ;;  %v6998_v55 = vpack.c.bf16 %v3055_v57, %v3055_v57  ;;  %v5410_v47 = vld [vmem:[%s7798_s5 + $0x90] sm:$0xff]   ;;  %v3059_v50 = vld [vmem:[#allocation2 + $0xa8] sm:$0xff] }
 0x3de   : > { %v3175_v17 = vsel %vm370_vm2, %v3170_v42, %v3174_v8  ;;  %v3283_v39 = vsel %vm370_vm2, %v3278_v22, %v3282_v10  ;;  %v3289_v7 = vrot.slane %v3287_v59, 1  ;;  %v3182_v18 = vor.u32 %v3181_v63, %v3177_v3  ;;  %v3060_v1 = vld [vmem:[#allocation2 + $0xb0] sm:$0xff]  ;;  %v3061_v42 = vld [vmem:[#allocation2 + $0xb8] sm:$0x3]  ;;  %5328 = vmatpush1.bf16.msra.mxu1 %v5410_v47  ;;  %3696 = vmatpush1.bf16.msra.mxu0 %v5410_v47 }
 0x3df   : > { %3350 = vrot.lane.b32.xlu1 %v3175_v17, %s5467_s28  ;;  %v3189_v56 = vshrl.u32 %v6991_v34, 16  ;;  %v3191_v9 = vshll.u32 %v6991_v34, 16  ;;  %v3294_v13 = vrot.slane %v3292_v11, 1  ;;  %v3196_v21 = vshll.u32 %v6998_v55, 16  ;;  %5317 = vmatprep.subr.bf16.mxu1 %v5466_v32 }
 0x3e0   : > { %v7008_v41 = vpack.c.bf16 %v3081_v16, %v3080_v14  ;;  %v3290_v2 = vor.u32 %v3289_v7, %v3285_v44  ;;  %v7011_v49 = vpack.c.bf16 %v3082_v45, %v3082_v45  ;;  %v7013_v54 = vpack.c.bf16 %v3057_v28, %v3056_v51  ;;  %v3086_v14 = vld [vmem:[#allocation2 + $0x180] sm:$0xff]  ;;  %v5411_v16 = vld [vmem:[%s7798_s5 + $0x88] sm:$0xff]   ;;  %v3088_v63 = vld [vmem:[#allocation2 + $0x190] sm:$0x3]  ;;  %3697 = vmatprep.subr.bf16.mxu0 %v5466_v32 }
 0x3e1   : > { %3366 = vrot.lane.b32.xlu0 %v3271_v27, %s5467_s28  ;;  %v3193_v30 = vrot.slane %v3191_v9, 1  ;;  %v3187_v61 = vsel %vm370_vm2, %v3182_v18, %v3186_v26  ;;  %v3198_v24 = vrot.slane %v3196_v21, 1  ;;  %v7022_v57 = vpack.c.bf16 %v3058_v12, %v3058_v12  ;;  %v3087_v51 = vld [vmem:[#allocation2 + $0x188] sm:$0xff]  ;;  %v3038_v21 = vld [vmem:[#allocation2] sm:$0xff] }
 0x3e2   : > { %v3297_v27 = vshrl.u32 %v7008_v41, 16  ;;  %v3299_v8 = vshll.u32 %v7008_v41, 16  ;;  %v3295_v19 = vsel %vm370_vm2, %v3290_v2, %v3294_v13  ;;  %v3304_v3 = vshll.u32 %v7011_v49, 16  ;;  %v3063_v7 = vld [vmem:[#allocation2 + $0xc8] sm:$0xff]  ;;  %v3064_v13 = vld [vmem:[#allocation2 + $0xd0] sm:$0x3]  ;;  %5329 = vmatpush1.bf16.msra.mxu1 %v5411_v16  ;;  %3698 = vmatpush1.bf16.msra.mxu0 %v5411_v16 }
 0x3e3   : > { %3352 = vrot.lane.b32.xlu1 %v3187_v61, %s5467_s28  ;;  %v3194_v10 = vor.u32 %v3193_v30, %v3189_v56  ;;  %v3201_v6 = vshrl.u32 %v7013_v54, 16  ;;  %v3203_v44 = vshll.u32 %v7013_v54, 16  ;;  %v7030_v45 = vpack.c.bf16 %v3084_v5, %v3083_v33  ;;  %v5412_v56 = vld [vmem:[%s7798_s5 + $0x80] sm:$0xff]   ;;  %v3039_v61 = vld [vmem:[#allocation2 + $0x8] sm:$0xff]  ;;  %5318 = vmatprep.subr.bf16.mxu1 %v5466_v32 }
 0x3e4   : > { %v3301_v40 = vrot.slane %v3299_v8, 1  ;;  %v3306_v22 = vrot.slane %v3304_v3, 1  ;;  %v3208_v59 = vshll.u32 %v7022_v57, 16  ;;  %v7034_v37 = vpack.c.bf16 %v3085_v43, %v3085_v43  ;;  %3699 = vmatprep.subr.bf16.mxu0 %v5466_v32 }
 0x3e5   : > { %3368 = vrot.lane.b32.xlu0 %v3283_v39, %s5467_s28  ;;  %v3199_v17 = vsel %vm370_vm2, %v3194_v10, %v3198_v24  ;;  %v3205_v11 = vrot.slane %v3203_v44, 1  ;;  %v3309_v28 = vshrl.u32 %v7030_v45, 16  ;;  %v3311_v12 = vshll.u32 %v7030_v45, 16  ;;  %v3062_v39 = vld [vmem:[#allocation2 + $0xc0] sm:$0xff]  ;;  %v5413_v44 = vld [vmem:[%s7798_s5 + $0x78] sm:$0xff]  }
 0x3e6   : > { %v3302_v26 = vor.u32 %v3301_v40, %v3297_v27  ;;  %v3210_v9 = vrot.slane %v3208_v59, 1  ;;  %v3316_v33 = vshll.u32 %v7034_v37, 16  ;;  %v7045_v47 = vpack.c.bf16 %v3060_v1, %v3059_v50  ;;  %v3040_v1 = vld [vmem:[#allocation2 + $0x10] sm:$0x3]  ;;  %5330 = vmatpush1.bf16.msra.mxu1 %v5412_v56  ;;  %3700 = vmatpush1.bf16.msra.mxu0 %v5412_v56 }
 0x3e7   : > { %3354 = vrot.lane.b32.xlu1 %v3199_v17, %s5467_s28  ;;  %v7047_v18 = vpack.c.bf16 %v3061_v42, %v3061_v42  ;;  %v3206_v2 = vor.u32 %v3205_v11, %v3201_v6  ;;  %v3313_v30 = vrot.slane %v3311_v12, 1  ;;  %v7050_v5 = vpack.c.bf16 %v3087_v51, %v3086_v14  ;;  %5319 = vmatprep.subr.bf16.mxu1 %v5466_v32  ;;  %v5414_v56 = vld [vmem:[%s7798_s5 + $0x70] sm:$0xff]  }
 0x3e8   : > { %v3307_v43 = vsel %vm370_vm2, %v3302_v26, %v3306_v22  ;;  %v3318_v24 = vrot.slane %v3316_v33, 1  ;;  %v3213_v27 = vshrl.u32 %v7045_v47, 16  ;;  %v3215_v8 = vshll.u32 %v7045_v47, 16  ;;  %3701 = vmatprep.subr.bf16.mxu0 %v5466_v32 }
 0x3e9   : > { %3370 = vrot.lane.b32.xlu0 %v3295_v19, %s5467_s28  ;;  %v3220_v50 = vshll.u32 %v7047_v18, 16  ;;  %v3211_v42 = vsel %vm370_vm2, %v3206_v2, %v3210_v9  ;;  %v3314_v19 = vor.u32 %v3313_v30, %v3309_v28  ;;  %v7059_v10 = vpack.c.bf16 %v3088_v63, %v3088_v63 }
 0x3ea   : > { %v3321_v3 = vshrl.u32 %v7050_v5, 16  ;;  %v3217_v14 = vrot.slane %v3215_v8, 1  ;;  %v3323_v40 = vshll.u32 %v7050_v5, 16  ;;  %v7064_v6 = vpack.c.bf16 %v3063_v7, %v3062_v39  ;;  %5331 = vmatpush1.bf16.msra.mxu1 %v5413_v44  ;;  %3702 = vmatpush1.bf16.msra.mxu0 %v5413_v44 }
 0x3eb   : > { %3356 = vrot.lane.b32.xlu1 %v3211_v42, %s5467_s28  ;;  %v3222_v16 = vrot.slane %v3220_v50, 1  ;;  %v3319_v51 = vsel %vm370_vm2, %v3314_v19, %v3318_v24  ;;  %v3328_v17 = vshll.u32 %v7059_v10, 16  ;;  %v7071_v22 = vpack.c.bf16 %v3064_v13, %v3064_v13  ;;  %5320 = vmatprep.subr.bf16.mxu1 %v5466_v32 }
 0x3ec   : > { %v7073_v59 = vpack.c.bf16 %v3039_v61, %v3038_v21  ;;  %v3218_v63 = vor.u32 %v3217_v14, %v3213_v27  ;;  %v3325_v26 = vrot.slane %v3323_v40, 1  ;;  %v3225_v11 = vshrl.u32 %v7064_v6, 16  ;;  %3703 = vmatprep.subr.bf16.mxu0 %v5466_v32 }
 0x3ed   : > { %3372 = vrot.lane.b32.xlu0 %v3307_v43, %s5467_s28  ;;  %v3227_v28 = vshll.u32 %v7064_v6, 16  ;;  %v3330_v12 = vrot.slane %v3328_v17, 1  ;;  %v3232_v39 = vshll.u32 %v7071_v22, 16  ;;  %v7081_v7 = vpack.c.bf16 %v3040_v1, %v3040_v1  ;;  %v5418_v17 = vld [vmem:[%s7798_s5 + $0xb0] sm:$0xff]  }
 0x3ee   : > { %v3129_v9 = vshrl.u32 %v7073_v59, 16  ;;  %v3223_v33 = vsel %vm370_vm2, %v3218_v63, %v3222_v16  ;;  %v3326_v13 = vor.u32 %v3325_v26, %v3321_v3  ;;  %v3131_v43 = vshll.u32 %v7073_v59, 16  ;;  %5332 = vmatpush1.bf16.msra.mxu1 %v5414_v56  ;;  %v5415_v16 = vld [vmem:[%s7798_s5 + $0x68] sm:$0xff]   ;;  %3704 = vmatpush1.bf16.msra.mxu0 %v5414_v56  ;;  %v5420_v26 = vld [vmem:[%s7798_s5 + $0xa0] sm:$0xff]  }
 0x3ef   : > { %v3229_v21 = vrot.slane %v3227_v28, 1  ;;  %3358 = vrot.lane.b32.xlu1 %v3223_v33, %s5467_s28  ;;  %v3234_v2 = vrot.slane %v3232_v39, 1  ;;  %v3136_v30 = vshll.u32 %v7081_v7, 16  ;;  %v3443_v61 = vrot.slane %v6916_v36, 1  ;;  %5321 = vmatprep.subr.bf16.mxu1 %v5466_v32  ;;  %v5419_v63 = vld [vmem:[%s7798_s5 + $0xa8] sm:$0xff]   ;;  %v3090_v28 = vld [vmem:[#allocation2 + $0x1a0] sm:$0xff] }
 0x3f0   : > { %v3444_v24 = vrot.slane %v6918_v20, 1  ;;  %v3331_v27 = vsel %vm370_vm2, %v3326_v13, %v3330_v12  ;;  %v3133_v50 = vrot.slane %v3131_v43, 1  ;;  %v3419_v1 = vrot.slane %v6922_v23, 1  ;;  %3705 = vmatprep.subr.bf16.mxu0 %v5466_v32  ;;  %v3091_v12 = vld [vmem:[#allocation2 + $0x1a8] sm:$0x3] }
 0x3f1   : > { %3374 = vrot.lane.b32.xlu0 %v3319_v51, %s5467_s28  ;;  %v3230_v8 = vor.u32 %v3229_v21, %v3225_v11  ;;  %v3138_v42 = vrot.slane %v3136_v30, 1  ;;  %v3420_v3 = vrot.slane %v6924_v25, 1  ;;  %v5416_v25 = vld [vmem:[%s7798_s5 + $0x60] sm:$0xff]   ;;  %v5417_v51 = vld [vmem:[%s7798_s5 + $0xb8] sm:$0xff]  }
 0x3f2   : > { %v7099_v19 = vsel %vm659_vm1, %v3443_v61, %v3444_v24  ;;  %v3134_v14 = vor.u32 %v3133_v50, %v3129_v9  ;;  %5333 = vmatpush1.bf16.msra.mxu1 %v5415_v16  ;;  %3706 = vmatpush1.bf16.msra.mxu0 %v5415_v16  ;;  %v3089_v11 = vld [vmem:[#allocation2 + $0x198] sm:$0xff]  ;;  %v7145_v9 = vpack.c.bf16 %v3091_v12, %v3091_v12  ;;  %v3446_v61 = vrot.slane %v6929_v0, 1  ;;  %v5427_v12 = vld [vmem:[%s7798_s5 + $0x20] sm:$0xff]  }
 0x3f3   : > { %v3235_v20 = vsel %vm370_vm2, %v3230_v8, %v3234_v2  ;;  %5033 = vmatprep.mubr.msk.bf16.mxu1 %vm1495_vm6, %v7099_v19  ;;  %v7110_v40 = vsel %vm659_vm1, %v3419_v1, %v3420_v3  ;;  %5322 = vmatprep.subr.bf16.mxu1 %v5466_v32  ;;  %v7143_v39 = vpack.c.bf16 %v3090_v28, %v3089_v11  ;;  %v3447_v24 = vrot.slane %v6934_v15, 1  ;;  %v5422_v15 = vld [vmem:[%s7798_s5 + $0xf8] sm:$0xff]   ;;  %v5426_v28 = vld [vmem:[%s7798_s5 + $0xe8] sm:$0xff]  }
 0x3f4   : > { %3360 = vrot.lane.b32.xlu1 %v3235_v20, %s5467_s28  ;;  %v3139_v44 = vsel %vm370_vm2, %v3134_v14, %v3138_v42  ;;  %5025 = vmatprep.mubr.msk.bf16.mxu0 %vm1495_vm6, %v7110_v40  ;;  %v3340_v13 = vshll.u32 %v7145_v9, 16  ;;  %v3422_v42 = vrot.slane %v6939_v58, 1  ;;  %v3423_v3 = vrot.slane %v6941_v53, 1 }
 0x3f5   : > { %3376 = vrot.lane.b32.xlu0 %v3331_v27, %s5467_s28  ;;  %3707 = vmatprep.subr.bf16.mxu0 %v5466_v32  ;;  %v3333_v56 = vshrl.u32 %v7143_v39, 16  ;;  %v3335_v33 = vshll.u32 %v7143_v39, 16  ;;  %v5421_v27 = vld [vmem:[%s7798_s5 + $0x38] sm:$0xff]   ;;  %v7160_v50 = vsel %vm659_vm1, %v3446_v61, %v3447_v24 }
 0x3f6   : > { %5334 = vmatpush1.bf16.msra.mxu1 %v5416_v25  ;;  %3708 = vmatpush1.bf16.msra.mxu0 %v5416_v25  ;;  %v3342_v43 = vrot.slane %v3340_v13, 1  ;;  %v7183_v16 = vsel %vm659_vm1, %v3422_v42, %v3423_v3  ;;  %v3450_v25 = vrot.slane %v6949_v38, 1  ;;  %v3425_v38 = vrot.slane %v6957_v4, 1  ;;  %v5430_v24 = vld [vmem:[%s7798_s5 + $0xd8] sm:$0xff]  }
 0x3f7   : > { %5323 = vmatprep.subr.bf16.mxu1 %v5466_v32  ;;  %3717 = vmatprep.subr.bf16.mxu0 %v5466_v32  ;;  %v3337_v21 = vrot.slane %v3335_v33, 1  ;;  %v3456_v42 = vrot.slane %v6986_v31, 1 }
 0x3f9   : > { %3344 = vrot.lane.b32.xlu0 %v3139_v44, %s5467_s28  ;;  %v3338_v2 = vor.u32 %v3337_v21, %v3333_v56  ;;  %v3449_v44 = vrot.slane %v6943_v60, 1  ;;  %v5428_v21 = vld [vmem:[%s7798_s5 + $0xe0] sm:$0xff]  }
 0x3fa   : > { %5335 = vmatpush2.bf16.msra.mxu1 %v5417_v51  ;;  %3718 = vmatpush2.bf16.msra.mxu0 %v5417_v51 }
 0x3fb   : > { %5324 = vmatprep.subr.bf16.mxu1 %v5466_v32  ;;  %3719 = vmatprep.subr.bf16.mxu0 %v5466_v32  ;;  %v3343_v30 = vsel %vm370_vm2, %v3338_v2, %v3342_v43  ;;  %v3428_v2 = vrot.slane %v6974_v46, 1 }
 0x3fc   : > { %3378 = vrot.lane.b32.xlu1 %v3343_v30, %s5467_s28  ;;  %v3429_v30 = vrot.slane %v6978_v48, 1 }
 0x3fe   : > { %5336 = vmatpush2.bf16.msra.mxu1 %v5418_v17  ;;  %3720 = vmatpush2.bf16.msra.mxu0 %v5418_v17  ;;  %v5425_v17 = vld [vmem:[%s7798_s5 + $0x28] sm:$0xff]   ;;  %v7259_v48 = vsel %vm659_vm1, %v3428_v2, %v3429_v30 }
 0x3ff   : > { %5325 = vmatprep.subr.bf16.mxu1 %v5466_v32  ;;  %3721 = vmatprep.subr.bf16.mxu0 %v5466_v32 }
 0x402   : > { %5337 = vmatpush2.bf16.msra.mxu1 %v5419_v63  ;;  %3722 = vmatpush2.bf16.msra.mxu0 %v5419_v63 }
 0x403   : > { %5326 = vmatprep.subr.bf16.mxu1 %v5466_v32  ;;  %3723 = vmatprep.subr.bf16.mxu0 %v5466_v32 }
 0x406   : > { %5338 = vmatpush2.bf16.msra.mxu1 %v5420_v26  ;;  %3724 = vmatpush2.bf16.msra.mxu0 %v5420_v26  ;;  %v3426_v26 = vrot.slane %v6960_v35, 1  ;;  %v3452_v35 = vrot.slane %v6962_v29, 1 }
 0x407   : > { %3929 = vmatprep.subr.bf16.mxu1 %v5466_v32  ;;  %4190 = vmatprep.subr.bf16.mxu0 %v5466_v32 }
 0x408   : > { %v7225_v33 = vsel %vm659_vm1, %v3425_v38, %v3426_v26 }
 0x446   : > { %v3365_v20 = vpop.permute.xlu1 %3364 }
 0x447   : > { %v7190_v51 = vsel %vm1495_vm6, %v6929_v0, %v3365_v20  ;;  %v7203_v0 = vsel %vm659_vm1, %v3449_v44, %v3450_v25  ;;  %v5432_v20 = vld [vmem:[%s7798_s5 + $0xd0] sm:$0xff]   ;;  %v5434_v25 = vld [vmem:[%s7798_s5 + $0xc8] sm:$0xff]  }
 0x44b   : > { %v3363_v8 = vpop.permute.xlu0 %3362 }
 0x44c   : > { %v7164_v1 = vsel %vm1495_vm6, %v6916_v36, %v3363_v8  ;;  %v5423_v36 = vld [vmem:[%s7798_s5 + $0x30] sm:$0xff]   ;;  %v3349_v63 = vpop.permute.xlu1 %3348  ;;  %v3455_v8 = vrot.slane %v6980_v62, 1 }
 0x44d   : > { %3790 = vmatmul.mubr.bf16.vlgmr.msra.gmra.mxu1 %v7164_v1  ;;  %v7210_v11 = vsel %vm1495_vm6, %v6939_v58, %v3349_v63  ;;  %v3453_v58 = vrot.slane %v6966_v52, 1  ;;  %v5435_v63 = vld [vmem:[%s7798_s5] sm:$0xff]  }
 0x44e   : > { %3930 = vmatpush1.bf16.msra.mxu1 %v5421_v27  ;;  %5034 = vmatprep.mubr.msk.bf16.mxu1 %vm1495_vm6, %v7160_v50  ;;  %v7279_v31 = vsel %vm659_vm1, %v3455_v8, %v3456_v42 }
 0x44f   : > { %v3347_v14 = vpop.permute.xlu0 %3346  ;;  %3931 = vmatprep.subr.bf16.mxu1 %v5466_v32  ;;  %v7239_v52 = vsel %vm659_vm1, %v3452_v35, %v3453_v58 }
 0x450   : > { %v7180_v53 = vsel %vm1495_vm6, %v6922_v23, %v3347_v14  ;;  %v5424_v23 = vld [vmem:[%s7798_s5 + $0xf0] sm:$0xff]   ;;  %v3432_v14 = vrot.slane %v6998_v55, 1 }
 0x451   : > { %3726 = vmatmul.mubr.bf16.vlgmr.msra.gmra.mxu0 %v7180_v53  ;;  %v3351_v43 = vpop.permute.xlu1 %3350 }
 0x452   : > { %4191 = vmatpush1.bf16.msra.mxu0 %v5422_v15  ;;  %3932 = vmatpush1.bf16.msra.mxu1 %v5423_v36  ;;  %v7250_v61 = vsel %vm1495_vm6, %v6957_v4, %v3351_v43  ;;  %v5431_v4 = vld [vmem:[%s7798_s5 + $0x10] sm:$0xff]   ;;  %v3431_v36 = vrot.slane %v6991_v34, 1  ;;  %v3461_v43 = vrot.slane %v7030_v45, 1 }
 0x453   : > { %4192 = vmatprep.subr.bf16.mxu0 %v5466_v32  ;;  %5026 = vmatprep.mubr.msk.bf16.mxu0 %vm1495_vm6, %v7183_v16  ;;  %v3367_v56 = vpop.permute.xlu0 %3366 }
 0x454   : > { %3933 = vmatprep.subr.bf16.mxu1 %v5466_v32  ;;  %v7230_v13 = vsel %vm1495_vm6, %v6943_v60, %v3367_v56  ;;  %v5429_v60 = vld [vmem:[%s7798_s5 + $0x18] sm:$0xff]   ;;  %v7298_v55 = vsel %vm659_vm1, %v3431_v36, %v3432_v14 }
 0x455   : > { %3798 = vmatmul.mubr.bf16.gmra.mxu1 %v7190_v51  ;;  %v3353_v15 = vpop.permute.xlu1 %3352  ;;  %v5437_v56 = vld [vmem:[%s7798_s5 + $0x58] sm:$0xff]  }
 0x456   : > { %4193 = vmatpush1.bf16.msra.mxu0 %v5424_v23  ;;  %3934 = vmatpush1.bf16.msra.mxu1 %v5425_v17  ;;  %v7290_v44 = vsel %vm1495_vm6, %v6974_v46, %v3353_v15  ;;  %v3458_v17 = vrot.slane %v7008_v41, 1  ;;  %v3459_v46 = vrot.slane %v7011_v49, 1  ;;  %v5436_v49 = vld [vmem:[%s7798_s5 + $0xc0] sm:$0xff]   ;;  %v3464_v15 = vrot.slane %v7050_v5, 1 }
 0x457   : > { %4194 = vmatprep.subr.bf16.mxu0 %v5466_v32  ;;  %5035 = vmatprep.mubr.msk.bf16.mxu1 %vm1495_vm6, %v7203_v0  ;;  %v3369_v27 = vpop.permute.xlu0 %3368 }
 0x458   : > { %3935 = vmatprep.subr.bf16.mxu1 %v5466_v32  ;;  %v7270_v3 = vsel %vm1495_vm6, %v6962_v29, %v3369_v27  ;;  %v5433_v29 = vld [vmem:[%s7798_s5 + $0x8] sm:$0xff]   ;;  %v3437_v27 = vrot.slane %v7045_v47, 1 }
 0x459   : > { %3734 = vmatmul.mubr.bf16.gmra.mxu0 %v7210_v11  ;;  %v3355_v26 = vpop.permute.xlu1 %3354 }
 0x45a   : > { %4195 = vmatpush1.bf16.msra.mxu0 %v5426_v28  ;;  %3936 = vmatpush1.bf16.msra.mxu1 %v5427_v12  ;;  %v7318_v28 = vsel %vm659_vm1, %v3458_v17, %v3459_v46  ;;  %v3434_v12 = vrot.slane %v7013_v54, 1  ;;  %v7330_v35 = vsel %vm1495_vm6, %v6991_v34, %v3355_v26  ;;  %v3462_v34 = vrot.slane %v7034_v37, 1  ;;  %v5440_v37 = vld [vmem:[%s7798_s5 + $0x110] sm:$0xff]  }
 0x45b   : > { %5027 = vmatprep.mubr.msk.bf16.mxu0 %vm1495_vm6, %v7225_v33  ;;  %4196 = vmatprep.subr.bf16.mxu0 %v5466_v32  ;;  %v3371_v23 = vpop.permute.xlu0 %3370  ;;  %v3441_v17 = vrot.slane %v7071_v22, 1  ;;  %v3417_v26 = vrot.slane %v7081_v7, 1 }
 0x45c   : > { %3937 = vmatprep.subr.bf16.mxu1 %v5466_v32  ;;  %v7310_v38 = vsel %vm1495_vm6, %v6980_v62, %v3371_v23  ;;  %v3435_v62 = vrot.slane %v7022_v57, 1  ;;  %v5438_v57 = vld [vmem:[%s7798_s5 + $0x118] sm:$0xff]   ;;  %v3440_v23 = vrot.slane %v7064_v6, 1 }
 0x45d   : > { %3806 = vmatmul.mubr.bf16.gmra.mxu1 %v7230_v13  ;;  %v3357_v30 = vpop.permute.xlu1 %3356 }
 0x45e   : > { %4197 = vmatpush1.bf16.msra.mxu0 %v5428_v21  ;;  %5036 = vmatprep.mubr.msk.bf16.mxu1 %vm1495_vm6, %v7239_v52  ;;  %v7338_v21 = vsel %vm659_vm1, %v3434_v12, %v3435_v62  ;;  %v7370_v8 = vsel %vm1495_vm6, %v7013_v54, %v3357_v30  ;;  %v5443_v54 = vld [vmem:[%s7798_s5 + $0x40] sm:$0xff]  }
 0x45f   : > { %3938 = vmatpush1.bf16.msra.mxu1 %v5429_v60  ;;  %4198 = vmatprep.subr.bf16.mxu0 %v5466_v32  ;;  %v3373_v58 = vpop.permute.xlu0 %3372  ;;  %v5439_v60 = vld [vmem:[%s7798_s5 + $0x50] sm:$0xff]  }
 0x460   : > { %3939 = vmatprep.subr.bf16.mxu1 %v5466_v32  ;;  %v7350_v2 = vsel %vm1495_vm6, %v7008_v41, %v3373_v58  ;;  %v5441_v41 = vld [vmem:[%s7798_s5 + $0x48] sm:$0xff]  }
 0x461   : > { %3742 = vmatmul.mubr.bf16.gmra.mxu0 %v7250_v61  ;;  %v3359_v14 = vpop.permute.xlu1 %3358 }
 0x462   : > { %4199 = vmatpush1.bf16.msra.mxu0 %v5430_v24  ;;  %5028 = vmatprep.mubr.msk.bf16.mxu0 %vm1495_vm6, %v7259_v48  ;;  %v7358_v24 = vsel %vm659_vm1, %v3461_v43, %v3462_v34 }
 0x463   : > { %3940 = vmatpush1.bf16.msra.mxu1 %v5431_v4  ;;  %4200 = vmatprep.subr.bf16.mxu0 %v5466_v32  ;;  %v3438_v4 = vrot.slane %v7047_v18, 1  ;;  %v5442_v18 = vld [vmem:[%s7798_s5 + $0x108] sm:$0xff]   ;;  %v3375_v42 = vpop.permute.xlu0 %3374 }
 0x464   : > { %3941 = vmatprep.subr.bf16.mxu1 %v5466_v32  ;;  %v7390_v36 = vsel %vm1495_vm6, %v7030_v45, %v3375_v42  ;;  %v3492_v45 = vsel %vm1495_vm6, %v7045_v47, %v3359_v14 }
 0x465   : > { %3814 = vmatmul.mubr.bf16.gmra.mxu1 %v7270_v3 }
 0x466   : > { %5037 = vmatprep.mubr.msk.bf16.mxu1 %vm1495_vm6, %v7279_v31  ;;  %4201 = vmatpush1.bf16.msra.mxu0 %v5432_v20  ;;  %v7378_v20 = vsel %vm659_vm1, %v3437_v27, %v3438_v4  ;;  %v3361_v22 = vpop.permute.xlu1 %3360 }
 0x467   : > { %3942 = vmatpush1.bf16.msra.mxu1 %v5433_v29  ;;  %4202 = vmatprep.subr.bf16.mxu0 %v5466_v32  ;;  %v3465_v29 = vrot.slane %v7059_v10, 1  ;;  %v5444_v10 = vld [vmem:[%s7798_s5 + $0x100] sm:$0xff]   ;;  %v3377_v46 = vpop.permute.xlu0 %3376  ;;  %v3495_v12 = vsel %vm1495_vm6, %v7064_v6, %v3361_v22  ;;  %v3468_v6 = vrot.slane %v7145_v9, 1 }
 0x468   : > { %3943 = vmatprep.subr.bf16.mxu1 %v5466_v32 }
 0x469   : > { %3750 = vmatmul.mubr.bf16.gmra.mxu0 %v7290_v44 }
 0x46a   : > { %5029 = vmatprep.mubr.msk.bf16.mxu0 %vm1495_vm6, %v7298_v55  ;;  %4203 = vmatpush1.bf16.msra.mxu0 %v5434_v25  ;;  %v7398_v25 = vsel %vm659_vm1, %v3464_v15, %v3465_v29 }
 0x46b   : > { %3944 = vmatpush1.bf16.msra.mxu1 %v5435_v63  ;;  %4204 = vmatprep.subr.bf16.mxu0 %v5466_v32  ;;  %v3442_v63 = vsel %vm659_vm1, %v3440_v23, %v3441_v17  ;;  %v3345_v62 = vpop.permute.xlu0 %3344 }
 0x46c   : > { %3953 = vmatprep.subr.bf16.mxu1 %v5466_v32  ;;  %v3471_v7 = vsel %vm1495_vm6, %v7073_v59, %v3345_v62 }
 0x46d   : > { %3822 = vmatmul.mubr.bf16.gmra.mxu1 %v7310_v38 }
 0x46e   : > { %5038 = vmatprep.mubr.msk.bf16.mxu1 %vm1495_vm6, %v7318_v28  ;;  %4205 = vmatpush1.bf16.msra.mxu0 %v5436_v49  ;;  %v3416_v49 = vrot.slane %v7073_v59, 1 }
 0x46f   : > { %3954 = vmatpush2.bf16.msra.mxu1 %v5437_v56  ;;  %4214 = vmatprep.subr.bf16.mxu0 %v5466_v32 }
 0x470   : > { %3955 = vmatprep.subr.bf16.mxu1 %v5466_v32  ;;  %v3418_v47 = vsel %vm659_vm1, %v3416_v49, %v3417_v26 }
 0x471   : > { %3758 = vmatmul.mubr.bf16.gmra.mxu0 %v7330_v35 }
 0x472   : > { %5030 = vmatprep.mubr.msk.bf16.mxu0 %vm1495_vm6, %v7338_v21  ;;  %4215 = vmatpush2.bf16.msra.mxu0 %v5438_v57 }
 0x473   : > { %3956 = vmatpush2.bf16.msra.mxu1 %v5439_v60  ;;  %4216 = vmatprep.subr.bf16.mxu0 %v5466_v32 }
 0x474   : > { %3957 = vmatprep.subr.bf16.mxu1 %v5466_v32 }
 0x475   : > { %3830 = vmatmul.mubr.bf16.gmra.mxu1 %v7350_v2 }
 0x476   : > { %5039 = vmatprep.mubr.msk.bf16.mxu1 %vm1495_vm6, %v7358_v24  ;;  %4217 = vmatpush2.bf16.msra.mxu0 %v5440_v37 }
 0x477   : > { %3958 = vmatpush2.bf16.msra.mxu1 %v5441_v41  ;;  %4218 = vmatprep.subr.bf16.mxu0 %v5466_v32 }
 0x478   : > { %3959 = vmatprep.subr.bf16.mxu1 %v5466_v32 }
 0x479   : > { %3766 = vmatmul.mubr.bf16.gmra.mxu0 %v7370_v8 }
 0x47a   : > { %5031 = vmatprep.mubr.msk.bf16.mxu0 %vm1495_vm6, %v7378_v20  ;;  %4219 = vmatpush2.bf16.msra.mxu0 %v5442_v18 }
 0x47b   : > { %3960 = vmatpush2.bf16.msra.mxu1 %v5443_v54  ;;  %4220 = vmatprep.subr.bf16.mxu0 %v5466_v32  ;;  %v7413_v32 = vsel %vm1495_vm6, %v7050_v5, %v3377_v46  ;;  %v3467_v5 = vrot.slane %v7143_v39, 1 }
 0x47d   : > { %3838 = vmatmul.mubr.bf16.gmra.mxu1 %v7390_v36  ;;  %v3469_v59 = vsel %vm659_vm1, %v3467_v5, %v3468_v6 }
 0x47e   : > { %5040 = vmatprep.mubr.msk.bf16.mxu1 %vm1495_vm6, %v7398_v25  ;;  %4221 = vmatpush2.bf16.msra.mxu0 %v5444_v10 }
 0x481   : > { %3774 = vmatmul.mubr.bf16.gmra.mxu0 %v3492_v45 }
 0x482   : > { %5032 = vmatprep.mubr.msk.bf16.mxu0 %vm1495_vm6, %v3442_v63 }
 0x485   : > { %3846 = vmatmul.mubr.bf16.gmra.mxu1 %v7413_v32 }
 0x486   : > { %5053 = vmatprep.mubr.msk.bf16.mxu1 %vm1495_vm6, %v3418_v47 }
 0x489   : > { %3782 = vmatmul.mubr.bf16.gmra.mxu0 %v3495_v12 }
 0x48a   : > { %5105 = vmatprep.mubr.msk.bf16.mxu0 %vm1495_vm6, %v7183_v16 }
 0x48d   : > { %3962 = vmatmul.mubr.bf16.vlgmr.msra.gmra.mxu1 %v3471_v7 }
 0x48e   : > { %5054 = vmatprep.mubr.msk.bf16.mxu1 %vm1495_vm6, %v7110_v40 }
 0x491   : > { %4223 = vmatmul.mubr.bf16.vlgmr.msra.gmra.mxu0 %v7210_v11 }
 0x492   : > { %5106 = vmatprep.mubr.msk.bf16.mxu0 %vm1495_vm6, %v7225_v33 }
 0x495   : > { %3970 = vmatmul.mubr.bf16.gmra.mxu1 %v7180_v53 }
 0x496   : > { %5055 = vmatprep.mubr.msk.bf16.mxu1 %vm1495_vm6, %v7183_v16 }
 0x499   : > { %4231 = vmatmul.mubr.bf16.gmra.mxu0 %v7250_v61 }
 0x49a   : > { %5107 = vmatprep.mubr.msk.bf16.mxu0 %vm1495_vm6, %v7259_v48 }
 0x49d   : > { %3978 = vmatmul.mubr.bf16.gmra.mxu1 %v7210_v11 }
 0x49e   : > { %5056 = vmatprep.mubr.msk.bf16.mxu1 %vm1495_vm6, %v7225_v33 }
 0x4a1   : > { %4239 = vmatmul.mubr.bf16.gmra.mxu0 %v7290_v44 }
 0x4a2   : > { %5108 = vmatprep.mubr.msk.bf16.mxu0 %vm1495_vm6, %v7298_v55 }
 0x4a5   : > { %3986 = vmatmul.mubr.bf16.gmra.mxu1 %v7250_v61 }
 0x4a6   : > { %5057 = vmatprep.mubr.msk.bf16.mxu1 %vm1495_vm6, %v7259_v48 }
 0x4a9   : > { %4247 = vmatmul.mubr.bf16.gmra.mxu0 %v7330_v35 }
 0x4aa   : > { %5109 = vmatprep.mubr.msk.bf16.mxu0 %vm1495_vm6, %v7338_v21 }
 0x4ad   : > { %3994 = vmatmul.mubr.bf16.gmra.mxu1 %v7290_v44 }
 0x4ae   : > { %5058 = vmatprep.mubr.msk.bf16.mxu1 %vm1495_vm6, %v7298_v55 }
 0x4b1   : > { %4255 = vmatmul.mubr.bf16.gmra.mxu0 %v7370_v8 }
 0x4b2   : > { %5110 = vmatprep.mubr.msk.bf16.mxu0 %vm1495_vm6, %v7378_v20 }
 0x4b5   : > { %4002 = vmatmul.mubr.bf16.gmra.mxu1 %v7330_v35 }
 0x4b6   : > { %5059 = vmatprep.mubr.msk.bf16.mxu1 %vm1495_vm6, %v7338_v21 }
 0x4b9   : > { %4263 = vmatmul.mubr.bf16.gmra.mxu0 %v3492_v45 }
 0x4ba   : > { %5111 = vmatprep.mubr.msk.bf16.mxu0 %vm1495_vm6, %v3442_v63 }
 0x4bd   : > { %4010 = vmatmul.mubr.bf16.gmra.mxu1 %v7370_v8 }
 0x4be   : > { %5060 = vmatprep.mubr.msk.bf16.mxu1 %vm1495_vm6, %v7378_v20 }
 0x4c1   : > { %4271 = vmatmul.mubr.bf16.gmra.mxu0 %v3495_v12 }
 0x4c2   : > { %5112 = vmatprep.mubr.msk.bf16.mxu0 %vm1495_vm6, %v7099_v19 }
 0x4c5   : > { %4018 = vmatmul.mubr.bf16.gmra.mxu1 %v3492_v45 }
 0x4c6   : > { %5061 = vmatprep.mubr.msk.bf16.mxu1 %vm1495_vm6, %v3442_v63 }
 0x4c9   : > { %4279 = vmatmul.mubr.bf16.gmra.mxu0 %v7164_v1 }
 0x4ca   : > { %5113 = vmatprep.mubr.msk.bf16.mxu0 %vm1495_vm6, %v7160_v50 }
 0x4cd   : > { %4026 = vmatmul.mubr.bf16.gmra.mxu1 %v3495_v12 }
 0x4ce   : > { %5062 = vmatprep.mubr.msk.bf16.mxu1 %vm1495_vm6, %v7099_v19  ;;  %v3379_v19 = vpop.permute.xlu1 %3378 }
 0x4cf   : > { %v3522_v40 = vsel %vm1495_vm6, %v7143_v39, %v3379_v19 }
 0x4d1   : > { %4287 = vmatmul.mubr.bf16.gmra.mxu0 %v7190_v51 }
 0x4d2   : > { %5114 = vmatprep.mubr.msk.bf16.mxu0 %vm1495_vm6, %v7203_v0 }
 0x4d5   : > { %4034 = vmatmul.mubr.bf16.gmra.mxu1 %v7164_v1 }
 0x4d6   : > { %5063 = vmatprep.mubr.msk.bf16.mxu1 %vm1495_vm6, %v7160_v50 }
 0x4d9   : > { %4295 = vmatmul.mubr.bf16.gmra.mxu0 %v7230_v13 }
 0x4da   : > { %5115 = vmatprep.mubr.msk.bf16.mxu0 %vm1495_vm6, %v7239_v52 }
 0x4dd   : > { %4042 = vmatmul.mubr.bf16.gmra.mxu1 %v7190_v51 }
 0x4de   : > { %5064 = vmatprep.mubr.msk.bf16.mxu1 %vm1495_vm6, %v7203_v0 }
 0x4e1   : > { %4303 = vmatmul.mubr.bf16.gmra.mxu0 %v7270_v3 }
 0x4e2   : > { %5116 = vmatprep.mubr.msk.bf16.mxu0 %vm1495_vm6, %v7279_v31 }
 0x4e5   : > { %4050 = vmatmul.mubr.bf16.gmra.mxu1 %v7230_v13 }
 0x4e6   : > { %5065 = vmatprep.mubr.msk.bf16.mxu1 %vm1495_vm6, %v7239_v52 }
 0x4e9   : > { %4311 = vmatmul.mubr.bf16.gmra.mxu0 %v7310_v38 }
 0x4ea   : > { %5117 = vmatprep.mubr.msk.bf16.mxu0 %vm1495_vm6, %v7318_v28 }
 0x4ed   : > { %4058 = vmatmul.mubr.bf16.gmra.mxu1 %v7270_v3 }
 0x4ee   : > { %5066 = vmatprep.mubr.msk.bf16.mxu1 %vm1495_vm6, %v7279_v31 }
 0x4f1   : > { %4319 = vmatmul.mubr.bf16.gmra.mxu0 %v7350_v2 }
 0x4f2   : > { %5118 = vmatprep.mubr.msk.bf16.mxu0 %vm1495_vm6, %v7358_v24 }
 0x4f5   : > { %4066 = vmatmul.mubr.bf16.gmra.mxu1 %v7310_v38 }
 0x4f6   : > { %5067 = vmatprep.mubr.msk.bf16.mxu1 %vm1495_vm6, %v7318_v28 }
 0x4f9   : > { %4327 = vmatmul.mubr.bf16.gmra.mxu0 %v7390_v36 }
 0x4fa   : > { %5119 = vmatprep.mubr.msk.bf16.mxu0 %vm1495_vm6, %v7398_v25 }
 0x4fd   : > { %4074 = vmatmul.mubr.bf16.gmra.mxu1 %v7350_v2 }
 0x4fe   : > { %5068 = vmatprep.mubr.msk.bf16.mxu1 %vm1495_vm6, %v7358_v24 }
 0x501   : > { %4335 = vmatmul.mubr.bf16.gmra.mxu0 %v7413_v32 }
 0x502   : > { %5120 = vmatprep.mubr.msk.bf16.mxu0 %vm1495_vm6, %v3469_v59 }
 0x505   : > { %4082 = vmatmul.mubr.bf16.gmra.mxu1 %v7390_v36 }
 0x509   : > { %4343 = vmatmul.mubr.bf16.gmra.mxu0 %v3522_v40 }
 0x50d   : > { %v7513_v50 = vpop.f32.mrf.mxu1 }
 0x50f   : > { %v3793_v9 = vpop.f32.mrf.mxu1 }
 0x510   : > { %v4454_v9 = vld [vmem:[%s5527_s12 + $0x18] sm:$0xff] }
 0x511   : > { %v7515_v1 = vpop.f32.mrf.mxu0  ;;  %v7517_v53 = vpop.f32.mrf.mxu1 }
 0x513   : > { %v3729_v16 = vpop.f32.mrf.mxu0  ;;  %v3796_v51 = vpop.f32.mrf.mxu1 }
 0x514   : > { %v4455_v16 = vld [vmem:[%s5527_s12 + $0x20] sm:$0xff] }
 0x515   : > { %v7519_v0 = vpop.f32.mrf.mxu0  ;;  %v7521_v11 = vpop.f32.mrf.mxu1 }
 0x517   : > { %v3732_v33 = vpop.f32.mrf.mxu0  ;;  %v3801_v13 = vpop.f32.mrf.mxu1 }
 0x519   : > { %v7523_v52 = vpop.f32.mrf.mxu0  ;;  %v7525_v61 = vpop.f32.mrf.mxu1 }
 0x51b   : > { %v3737_v39 = vpop.f32.mrf.mxu0  ;;  %v3804_v48 = vpop.f32.mrf.mxu1 }
 0x51d   : > { %v7527_v3 = vpop.f32.mrf.mxu0  ;;  %v7529_v31 = vpop.f32.mrf.mxu1 }
 0x51f   : > { %v3740_v44 = vpop.f32.mrf.mxu0  ;;  %v3809_v55 = vpop.f32.mrf.mxu1 }
 0x520   : > { %v7583_v44 = vld [vmem:[%s7799_s6] ss:$0 sm:$0xff]  ;;  %v4551_v55 = vrot.slane %v4454_v9, 1 }
 0x521   : > { %v7531_v38 = vpop.f32.mrf.mxu0  ;;  %v7533_v28 = vpop.f32.mrf.mxu1 }
 0x523   : > { %v3745_v56 = vpop.f32.mrf.mxu0  ;;  %v3812_v35 = vpop.f32.mrf.mxu1 }
 0x524   : > { %v4552_v56 = vrot.slane %v4455_v16, 1 }
 0x525   : > { %v7535_v57 = vpop.f32.mrf.mxu0  ;;  %v7537_v58 = vpop.f32.mrf.mxu1 }
 0x527   : > { %v3748_v21 = vpop.f32.mrf.mxu0  ;;  %v3817_v43 = vpop.f32.mrf.mxu1 }
 0x528   : > { %v4456_v21 = vld [vmem:[%s5527_s12 + $0x28] sm:$0x3] }
 0x529   : > { %v7539_v34 = vpop.f32.mrf.mxu0  ;;  %v7541_v60 = vpop.f32.mrf.mxu1 }
 0x52b   : > { %v3753_v2 = vpop.f32.mrf.mxu0  ;;  %v3820_v37 = vpop.f32.mrf.mxu1 }
 0x52d   : > { %v7543_v30 = vpop.f32.mrf.mxu0  ;;  %v7545_v24 = vpop.f32.mrf.mxu1 }
 0x52f   : > { %v3756_v27 = vpop.f32.mrf.mxu0  ;;  %v3825_v4 = vpop.f32.mrf.mxu1 }
 0x531   : > { %v7547_v41 = vpop.f32.mrf.mxu0  ;;  %v7549_v8 = vpop.f32.mrf.mxu1 }
 0x533   : > { %v3761_v18 = vpop.f32.mrf.mxu0  ;;  %v3828_v42 = vpop.f32.mrf.mxu1 }
 0x534   : > { %v4554_v42 = vrot.slane %v4456_v21, 1 }
 0x535   : > { %v7551_v20 = vpop.f32.mrf.mxu0  ;;  %v7553_v15 = vpop.f32.mrf.mxu1 }
 0x537   : > { %v3764_v29 = vpop.f32.mrf.mxu0  ;;  %v3833_v54 = vpop.f32.mrf.mxu1 }
 0x539   : > { %v7555_v36 = vpop.f32.mrf.mxu0  ;;  %v7557_v10 = vpop.f32.mrf.mxu1 }
 0x53b   : > { %v3769_v14 = vpop.f32.mrf.mxu0  ;;  %v3836_v25 = vpop.f32.mrf.mxu1 }
 0x53c   : > { %v4457_v14 = vld [vmem:[%s5527_s12 + $0x30] sm:$0xff]  ;;  %v4458_v25 = vld [vmem:[%s5527_s12 + $0x38] sm:$0xff] }
 0x53d   : > { %v7559_v23 = vpop.f32.mrf.mxu0  ;;  %v7561_v17 = vpop.f32.mrf.mxu1 }
 0x53f   : > { %v3772_v45 = vpop.f32.mrf.mxu0  ;;  %v3841_v46 = vpop.f32.mrf.mxu1 }
 0x541   : > { %v7563_v63 = vpop.f32.mrf.mxu0  ;;  %v7565_v49 = vpop.f32.mrf.mxu1 }
 0x543   : > { %v3777_v26 = vpop.f32.mrf.mxu0  ;;  %v3844_v32 = vpop.f32.mrf.mxu1 }
 0x545   : > { %v7567_v22 = vpop.f32.mrf.mxu0  ;;  %v7569_v47 = vpop.f32.mrf.mxu1 }
 0x547   : > { %v3780_v12 = vpop.f32.mrf.mxu0  ;;  %v3849_v62 = vpop.f32.mrf.mxu1 }
 0x548   : > { %v4555_v12 = vsel %vm659_vm1, %v4552_v56, %v4554_v42 }
 0x549   : > { %v7571_v7 = vpop.f32.mrf.mxu0  ;;  %v7573_v5 = vpop.f32.mrf.mxu1 }
 0x54b   : > { %v3785_v6 = vpop.f32.mrf.mxu0  ;;  %v3852_v59 = vpop.f32.mrf.mxu1 }
 0x54c   : > { %v4556_v59 = vrot.slane %v4457_v14, 1 }
 0x54d   : > { %v7575_v19 = vpop.f32.mrf.mxu0  ;;  %v3963_v40 = vpop.f32.mrf.mxu1 }
 0x54e   : > { %v3964_v13 = vadd.f32 %v3963_v40, %v7515_v1  ;;  %v4553_v1 = vsel %vm659_vm1, %v4551_v55, %v4552_v56  ;;  %v4557_v40 = vrot.slane %v4458_v25, 1 }
 0x54f   : > { %v3788_v51 = vpop.f32.mrf.mxu0  ;;  %v3965_v33 = vpop.f32.mrf.mxu1 }
 0x550   : > { %v4459_v51 = vld [vmem:[%s5527_s12 + $0x40] sm:$0x3]  ;;  %v4558_v55 = vsel %vm659_vm1, %v4556_v59, %v4557_v40 }
 0x551   : > { %v3966_v39 = vpop.f32.mrf.mxu1  ;;  %v4224_v48 = vpop.f32.mrf.mxu0  ;;  %v4559_v21 = vrot.slane %v4459_v51, 1 }
 0x552   : > { %v4351_v35 = vadd.f32 %v4224_v48, %v3964_v13  ;;  %v3967_v37 = vadd.f32 %v3966_v39, %v7519_v0 }
 0x553   : > { %v3968_v43 = vpop.f32.mrf.mxu1  ;;  %v4226_v2 = vpop.f32.mrf.mxu0 }
 0x554   : > { %v4390_v27 = vadd.f32 %v7583_v44, %v4351_v35 }
 0x555   : > { %v3971_v4 = vpop.f32.mrf.mxu1  ;;  %v4227_v18 = vpop.f32.mrf.mxu0 }
 0x556   : > { %v4422_v29 = vmax.f32 %v4390_v27, 0.0  ;;  %v4352_v54 = vadd.f32 %v4227_v18, %v3967_v37  ;;  %v3972_v32 = vadd.f32 %v3971_v4, %v7523_v52  ;;  %v4460_v37 = vld [vmem:[%s5527_s12 + $0x48] sm:$0xff]  ;;  %v4461_v27 = vld [vmem:[%s5527_s12 + $0x50] sm:$0xff] }
 0x557   : > { %v3973_v45 = vpop.f32.mrf.mxu1  ;;  %v4229_v46 = vpop.f32.mrf.mxu0  ;;  %v4561_v25 = vrot.slane %v4460_v37, 1 }
 0x558   : > { %v4663_v26 = vadd.f32 %v4553_v1, %v4422_v29  ;;  %v4391_v0 = vadd.f32 %v7583_v44, %v4352_v54  ;;  %v4560_v29 = vsel %vm659_vm1, %v4557_v40, %v4559_v21  ;;  %v4562_v45 = vrot.slane %v4461_v27, 1 }
 0x559   : > { %v3974_v62 = vpop.f32.mrf.mxu1  ;;  %v4232_v6 = vpop.f32.mrf.mxu0 }
 0x55a   : > { %4695 = vst.msk [vmem:[%s5522_s9] sm:$0xff] %vm750_vm3, %v4663_v26  ;;  %v4423_v9 = vmax.f32 %v4391_v0, 0.0  ;;  %v4353_v16 = vadd.f32 %v4232_v6, %v3972_v32  ;;  %v3975_v52 = vadd.f32 %v3974_v62, %v7527_v3  ;;  %v4462_v32 = vld [vmem:[%s5527_s12 + $0x58] sm:$0x3]  ;;  %v4563_v59 = vsel %vm659_vm1, %v4561_v25, %v4562_v45 }
 0x55b   : > { %v3976_v33 = vpop.f32.mrf.mxu1  ;;  %v4234_v13 = vpop.f32.mrf.mxu0 }
 0x55c   : > { %v4664_v39 = vadd.f32 %v4555_v12, %v4423_v9  ;;  %v4392_v48 = vadd.f32 %v7583_v44, %v4353_v16  ;;  %v4564_v16 = vrot.slane %v4462_v32, 1  ;;  %v4463_v13 = vld [vmem:[%s5527_s12 + $0x60] sm:$0xff]  ;;  %v4466_v32 = vld [vmem:[%s5527_s12 + $0x78] sm:$0xff] }
 0x55d   : > { %v3979_v56 = vpop.f32.mrf.mxu1  ;;  %v4235_v35 = vpop.f32.mrf.mxu0 }
 0x55e   : > { %4696 = vst.msk [vmem:[%s5522_s9 + $0x8] sm:$0xff] %vm750_vm3, %v4664_v39  ;;  %v4424_v43 = vmax.f32 %v4392_v48, 0.0  ;;  %v4354_v2 = vadd.f32 %v4235_v35, %v3975_v52  ;;  %v3980_v3 = vadd.f32 %v3979_v56, %v7531_v38  ;;  %v4464_v39 = vld [vmem:[%s5527_s12 + $0x68] sm:$0xff]  ;;  %v4565_v35 = vsel %vm659_vm1, %v4562_v45, %v4564_v16 }
 0x55f   : > { %v3981_v1 = vpop.f32.mrf.mxu1  ;;  %v4237_v4 = vpop.f32.mrf.mxu0  ;;  %v4567_v37 = vrot.slane %v4464_v39, 1  ;;  %v4571_v16 = vrot.slane %v4466_v32, 1  ;;  %v4468_v39 = vld [vmem:[%s5527_s12 + $0x88] sm:$0x3] }
 0x560   : > { %v4665_v18 = vadd.f32 %v4558_v55, %v4424_v43  ;;  %v4393_v42 = vadd.f32 %v7583_v44, %v4354_v2  ;;  %v4566_v2 = vrot.slane %v4463_v13, 1  ;;  %v4465_v4 = vld [vmem:[%s5527_s12 + $0x70] sm:$0x3] }
 0x561   : > { %v3982_v54 = vpop.f32.mrf.mxu1  ;;  %v4240_v14 = vpop.f32.mrf.mxu0  ;;  %v4569_v45 = vrot.slane %v4465_v4, 1 }
 0x562   : > { %4697 = vst.msk [vmem:[%s5522_s9 + $0x10] sm:$0xff] %vm750_vm3, %v4665_v18  ;;  %v4425_v46 = vmax.f32 %v4393_v42, 0.0  ;;  %v4355_v26 = vadd.f32 %v4240_v14, %v3980_v3  ;;  %v3983_v38 = vadd.f32 %v3982_v54, %v7535_v57  ;;  %v4568_v54 = vsel %vm659_vm1, %v4566_v2, %v4567_v37 }
 0x563   : > { %v3984_v0 = vpop.f32.mrf.mxu1  ;;  %v4242_v12 = vpop.f32.mrf.mxu0 }
 0x564   : > { %v4666_v62 = vadd.f32 %v4560_v29, %v4425_v46  ;;  %v4394_v6 = vadd.f32 %v7583_v44, %v4355_v26  ;;  %v4467_v0 = vld [vmem:[%s5527_s12 + $0x80] sm:$0xff] }
 0x565   : > { %v3987_v40 = vpop.f32.mrf.mxu1  ;;  %v4243_v9 = vpop.f32.mrf.mxu0 }
 0x566   : > { %4698 = vst.msk [vmem:[%s5522_s9 + $0x18] sm:$0xff] %vm750_vm3, %v4666_v62  ;;  %v4426_v51 = vmax.f32 %v4394_v6, 0.0  ;;  %v4356_v33 = vadd.f32 %v4243_v9, %v3983_v38  ;;  %v3988_v57 = vadd.f32 %v3987_v40, %v7539_v34 }
 0x567   : > { %v3989_v52 = vpop.f32.mrf.mxu1  ;;  %v4245_v48 = vpop.f32.mrf.mxu0 }
 0x568   : > { %v4667_v55 = vadd.f32 %v4563_v59, %v4426_v51  ;;  %v4395_v56 = vadd.f32 %v7583_v44, %v4356_v33  ;;  %v4570_v59 = vsel %vm659_vm1, %v4567_v37, %v4569_v45  ;;  %v4572_v51 = vrot.slane %v4467_v0, 1 }
 0x569   : > { %v3990_v21 = vpop.f32.mrf.mxu1  ;;  %v4248_v43 = vpop.f32.mrf.mxu0 }
 0x56a   : > { %4699 = vst.msk [vmem:[%s5522_s9 + $0x20] sm:$0xff] %vm750_vm3, %v4667_v55  ;;  %v4427_v27 = vmax.f32 %v4395_v56, 0.0  ;;  %v4357_v1 = vadd.f32 %v4248_v43, %v3988_v57  ;;  %v3991_v34 = vadd.f32 %v3990_v21, %v7543_v30  ;;  %v4573_v56 = vsel %vm659_vm1, %v4571_v16, %v4572_v51  ;;  %v4472_v16 = vld [vmem:[%s5527_s12 + $0xa8] sm:$0xff] }
 0x56b   : > { %v3992_v18 = vpop.f32.mrf.mxu1  ;;  %v4250_v3 = vpop.f32.mrf.mxu0  ;;  %v4574_v43 = vrot.slane %v4468_v39, 1 }
 0x56c   : > { %v4668_v42 = vadd.f32 %v4565_v35, %v4427_v27  ;;  %v4396_v29 = vadd.f32 %v7583_v44, %v4357_v1  ;;  %v4469_v27 = vld [vmem:[%s5527_s12 + $0x90] sm:$0xff]  ;;  %v4470_v1 = vld [vmem:[%s5527_s12 + $0x98] sm:$0xff] }
 0x56d   : > { %v3995_v14 = vpop.f32.mrf.mxu1  ;;  %v4251_v25 = vpop.f32.mrf.mxu0 }
 0x56e   : > { %4700 = vst.msk [vmem:[%s5522_s9 + $0x28] sm:$0xff] %vm750_vm3, %v4668_v42  ;;  %v4428_v46 = vmax.f32 %v4396_v29, 0.0  ;;  %v4358_v26 = vadd.f32 %v4251_v25, %v3991_v34  ;;  %v3996_v30 = vadd.f32 %v3995_v14, %v7547_v41  ;;  %v4575_v34 = vsel %vm659_vm1, %v4572_v51, %v4574_v43  ;;  %v4473_v51 = vld [vmem:[%s5527_s12 + $0xb0] sm:$0xff]  ;;  %v4474_v43 = vld [vmem:[%s5527_s12 + $0xb8] sm:$0x3] }
 0x56f   : > { %v3997_v12 = vpop.f32.mrf.mxu1  ;;  %v4253_v62 = vpop.f32.mrf.mxu0  ;;  %v4576_v14 = vrot.slane %v4469_v27, 1  ;;  %v4577_v25 = vrot.slane %v4470_v1, 1 }
 0x570   : > { %v4669_v38 = vadd.f32 %v4568_v54, %v4428_v46  ;;  %v4397_v6 = vadd.f32 %v7583_v44, %v4358_v26  ;;  %v4471_v26 = vld [vmem:[%s5527_s12 + $0xa0] sm:$0x3] }
 0x571   : > { %v3998_v40 = vpop.f32.mrf.mxu1  ;;  %v4256_v9 = vpop.f32.mrf.mxu0 }
 0x572   : > { %4701 = vst.msk [vmem:[%s5522_s9 + $0x30] sm:$0xff] %vm750_vm3, %v4669_v38  ;;  %v4429_v33 = vmax.f32 %v4397_v6, 0.0  ;;  %v4359_v13 = vadd.f32 %v4256_v9, %v3996_v30  ;;  %v3999_v41 = vadd.f32 %v3998_v40, %v7551_v20  ;;  %v4578_v38 = vsel %vm659_vm1, %v4576_v14, %v4577_v25 }
 0x573   : > { %v4000_v52 = vpop.f32.mrf.mxu1  ;;  %v4258_v48 = vpop.f32.mrf.mxu0 }
 0x574   : > { %v4670_v55 = vadd.f32 %v4570_v59, %v4429_v33  ;;  %v4398_v57 = vadd.f32 %v7583_v44, %v4359_v13  ;;  %v4579_v59 = vrot.slane %v4471_v26, 1 }
 0x575   : > { %v4003_v35 = vpop.f32.mrf.mxu1  ;;  %v4259_v21 = vpop.f32.mrf.mxu0 }
 0x576   : > { %4702 = vst.msk [vmem:[%s5522_s9 + $0x38] sm:$0xff] %vm750_vm3, %v4670_v55  ;;  %v4430_v2 = vmax.f32 %v4398_v57, 0.0  ;;  %v4360_v37 = vadd.f32 %v4259_v21, %v3999_v41  ;;  %v4004_v20 = vadd.f32 %v4003_v35, %v7555_v36  ;;  %v4580_v48 = vsel %vm659_vm1, %v4577_v25, %v4579_v59 }
 0x577   : > { %v4005_v4 = vpop.f32.mrf.mxu1  ;;  %v4261_v18 = vpop.f32.mrf.mxu0  ;;  %v4581_v57 = vrot.slane %v4472_v16, 1 }
 0x578   : > { %v4671_v3 = vadd.f32 %v4573_v56, %v4430_v2  ;;  %v4399_v42 = vadd.f32 %v7583_v44, %v4360_v37  ;;  %v4582_v56 = vrot.slane %v4473_v51, 1 }
 0x579   : > { %v4006_v29 = vpop.f32.mrf.mxu1  ;;  %v4264_v54 = vpop.f32.mrf.mxu0 }
 0x57a   : > { %4703 = vst.msk [vmem:[%s5522_s9 + $0x40] sm:$0xff] %vm750_vm3, %v4671_v3  ;;  %v4431_v45 = vmax.f32 %v4399_v42, 0.0  ;;  %v4361_v46 = vadd.f32 %v4264_v54, %v4004_v20  ;;  %v4007_v36 = vadd.f32 %v4006_v29, %v7559_v23  ;;  %v4583_v4 = vsel %vm659_vm1, %v4581_v57, %v4582_v56  ;;  %v4475_v29 = vld [vmem:[%s5527_s12 + $0xc0] sm:$0xff]  ;;  %v4476_v54 = vld [vmem:[%s5527_s12 + $0xc8] sm:$0xff] }
 0x57b   : > { %v4008_v32 = vpop.f32.mrf.mxu1  ;;  %v4266_v0 = vpop.f32.mrf.mxu0  ;;  %v4584_v20 = vrot.slane %v4474_v43, 1 }
 0x57c   : > { %v4672_v12 = vadd.f32 %v4575_v34, %v4431_v45  ;;  %v4400_v62 = vadd.f32 %v7583_v44, %v4361_v46 }
 0x57d   : > { %v4011_v30 = vpop.f32.mrf.mxu1  ;;  %v4267_v6 = vpop.f32.mrf.mxu0  ;;  %v4585_v26 = vsel %vm659_vm1, %v4582_v56, %v4584_v20 }
 0x57e   : > { %4704 = vst.msk [vmem:[%s5522_s9 + $0x48] sm:$0xff] %vm750_vm3, %v4672_v12  ;;  %v4432_v40 = vmax.f32 %v4400_v62, 0.0  ;;  %v4362_v9 = vadd.f32 %v4267_v6, %v4007_v36  ;;  %v4012_v23 = vadd.f32 %v4011_v30, %v7563_v63  ;;  %v4586_v12 = vrot.slane %v4475_v29, 1  ;;  %v4477_v30 = vld [vmem:[%s5527_s12 + $0xd0] sm:$0x3] }
 0x57f   : > { %v4013_v33 = vpop.f32.mrf.mxu1  ;;  %v4269_v13 = vpop.f32.mrf.mxu0  ;;  %v4587_v36 = vrot.slane %v4476_v54, 1 }
 0x580   : > { %v4673_v39 = vadd.f32 %v4578_v38, %v4432_v40  ;;  %v4401_v52 = vadd.f32 %v7583_v44, %v4362_v9  ;;  %v4589_v13 = vrot.slane %v4477_v30, 1 }
 0x581   : > { %v4014_v55 = vpop.f32.mrf.mxu1  ;;  %v4272_v41 = vpop.f32.mrf.mxu0  ;;  %v4588_v16 = vsel %vm659_vm1, %v4586_v12, %v4587_v36 }
 0x582   : > { %4705 = vst.msk [vmem:[%s5522_s9 + $0x50] sm:$0xff] %vm750_vm3, %v4673_v39  ;;  %v4433_v35 = vmax.f32 %v4401_v52, 0.0  ;;  %v4363_v21 = vadd.f32 %v4272_v41, %v4012_v23  ;;  %v4015_v63 = vadd.f32 %v4014_v55, %v7567_v22  ;;  %v4478_v52 = vld [vmem:[%s5527_s12 + $0xd8] sm:$0xff] }
 0x583   : > { %v4016_v2 = vpop.f32.mrf.mxu1  ;;  %v4274_v37 = vpop.f32.mrf.mxu0 }
 0x584   : > { %v4674_v27 = vadd.f32 %v4580_v48, %v4433_v35  ;;  %v4402_v1 = vadd.f32 %v7583_v44, %v4363_v21  ;;  %v4479_v48 = vld [vmem:[%s5527_s12 + $0xe0] sm:$0xff]  ;;  %v4590_v35 = vsel %vm659_vm1, %v4587_v36, %v4589_v13  ;;  %v4591_v2 = vrot.slane %v4478_v52, 1 }
 0x585   : > { %v4019_v18 = vpop.f32.mrf.mxu1  ;;  %v4275_v3 = vpop.f32.mrf.mxu0  ;;  %v4592_v37 = vrot.slane %v4479_v48, 1 }
 0x586   : > { %4706 = vst.msk [vmem:[%s5522_s9 + $0x58] sm:$0xff] %vm750_vm3, %v4674_v27  ;;  %v4434_v42 = vmax.f32 %v4402_v1, 0.0  ;;  %v4364_v34 = vadd.f32 %v4275_v3, %v4015_v63  ;;  %v4020_v22 = vadd.f32 %v4019_v18, %v7571_v7  ;;  %v4480_v1 = vld [vmem:[%s5527_s12 + $0xe8] sm:$0x3] }
 0x587   : > { %v4021_v14 = vpop.f32.mrf.mxu1  ;;  %v4277_v25 = vpop.f32.mrf.mxu0  ;;  %v4594_v54 = vrot.slane %v4480_v1, 1 }
 0x588   : > { %v4675_v45 = vadd.f32 %v4583_v4, %v4434_v42  ;;  %v4403_v46 = vadd.f32 %v7583_v44, %v4364_v34  ;;  %v4593_v42 = vsel %vm659_vm1, %v4591_v2, %v4592_v37 }
 0x589   : > { %v4022_v32 = vpop.f32.mrf.mxu1  ;;  %v4280_v0 = vpop.f32.mrf.mxu0  ;;  %v4595_v12 = vsel %vm659_vm1, %v4592_v37, %v4594_v54 }
 0x58a   : > { %4707 = vst.msk [vmem:[%s5522_s9 + $0x60] sm:$0xff] %vm750_vm3, %v4675_v45  ;;  %v4435_v62 = vmax.f32 %v4403_v46, 0.0  ;;  %v4365_v38 = vadd.f32 %v4280_v0, %v4020_v22  ;;  %v4023_v7 = vadd.f32 %v4022_v32, %v7575_v19  ;;  %v4481_v45 = vld [vmem:[%s5527_s12 + $0xf0] sm:$0xff]  ;;  %v4482_v22 = vld [vmem:[%s5527_s12 + $0xf8] sm:$0xff] }
 0x58b   : > { %v4024_v6 = vpop.f32.mrf.mxu1  ;;  %v4282_v59 = vpop.f32.mrf.mxu0  ;;  %v4597_v30 = vrot.slane %v4482_v22, 1  ;;  %v4488_v22 = vld [vmem:[%s5527_s12 + $0x128] sm:$0xff] }
 0x58c   : > { %v4676_v40 = vadd.f32 %v4585_v26, %v4435_v62  ;;  %v4404_v9 = vadd.f32 %v7583_v44, %v4365_v38  ;;  %v4596_v38 = vrot.slane %v4481_v45, 1  ;;  %v4487_v45 = vld [vmem:[%s5527_s12 + $0x120] sm:$0xff] }
 0x58d   : > { %v4027_v51 = vpop.f32.mrf.mxu1  ;;  %v4283_v33 = vpop.f32.mrf.mxu0 }
 0x58e   : > { %4708 = vst.msk [vmem:[%s5522_s9 + $0x68] sm:$0xff] %vm750_vm3, %v4676_v40  ;;  %v4436_v39 = vmax.f32 %v4404_v9, 0.0  ;;  %v4366_v23 = vadd.f32 %v4283_v33, %v4023_v7  ;;  %v4028_v19 = vadd.f32 %v4027_v51, %v7513_v50  ;;  %v4483_v40 = vld [vmem:[%s5527_s12 + $0x100] sm:$0x3]  ;;  %v4598_v33 = vsel %vm659_vm1, %v4596_v38, %v4597_v30 }
 0x58f   : > { %v4029_v55 = vpop.f32.mrf.mxu1  ;;  %v4285_v41 = vpop.f32.mrf.mxu0  ;;  %v4607_v38 = vrot.slane %v4488_v22, 1 }
 0x590   : > { %v4677_v57 = vadd.f32 %v4588_v16, %v4436_v39  ;;  %v4405_v56 = vadd.f32 %v7583_v44, %v4366_v23  ;;  %v4599_v23 = vrot.slane %v4483_v40, 1  ;;  %v4484_v55 = vld [vmem:[%s5527_s12 + $0x108] sm:$0xff]  ;;  %v4485_v41 = vld [vmem:[%s5527_s12 + $0x110] sm:$0xff] }
 0x591   : > { %v4030_v21 = vpop.f32.mrf.mxu1  ;;  %v4288_v43 = vpop.f32.mrf.mxu0  ;;  %v4601_v37 = vrot.slane %v4484_v55, 1 }
 0x592   : > { %4709 = vst.msk [vmem:[%s5522_s9 + $0x70] sm:$0xff] %vm750_vm3, %v4677_v57  ;;  %v4437_v27 = vmax.f32 %v4405_v56, 0.0  ;;  %v4367_v63 = vadd.f32 %v4288_v43, %v4028_v19  ;;  %v4031_v50 = vadd.f32 %v4030_v21, %v7517_v53  ;;  %v4600_v21 = vsel %vm659_vm1, %v4597_v30, %v4599_v23 }
 0x593   : > { %v4032_v4 = vpop.f32.mrf.mxu1  ;;  %v4290_v18 = vpop.f32.mrf.mxu0 }
 0x594   : > { %v4678_v3 = vadd.f32 %v4590_v35, %v4437_v27  ;;  %v4406_v20 = vadd.f32 %v7583_v44, %v4367_v63  ;;  %v4602_v27 = vrot.slane %v4485_v41, 1  ;;  %v4486_v4 = vld [vmem:[%s5527_s12 + $0x118] sm:$0x3] }
 0x595   : > { %v4035_v34 = vpop.f32.mrf.mxu1  ;;  %v4291_v29 = vpop.f32.mrf.mxu0  ;;  %v4604_v54 = vrot.slane %v4486_v4, 1 }
 0x596   : > { %4710 = vst.msk [vmem:[%s5522_s9 + $0x78] sm:$0xff] %vm750_vm3, %v4678_v3  ;;  %v4438_v14 = vmax.f32 %v4406_v20, 0.0  ;;  %v4368_v25 = vadd.f32 %v4291_v29, %v4031_v50  ;;  %v4036_v53 = vadd.f32 %v4035_v34, %v7521_v11 }
 0x597   : > { %v4037_v46 = vpop.f32.mrf.mxu1  ;;  %v4293_v26 = vpop.f32.mrf.mxu0 }
 0x598   : > { %v4679_v32 = vadd.f32 %v4593_v42, %v4438_v14  ;;  %v4407_v0 = vadd.f32 %v7583_v44, %v4368_v25  ;;  %v4603_v42 = vsel %vm659_vm1, %v4601_v37, %v4602_v27 }
 0x599   : > { %v4038_v36 = vpop.f32.mrf.mxu1  ;;  %v4296_v62 = vpop.f32.mrf.mxu0 }
 0x59a   : > { %4711 = vst.msk [vmem:[%s5522_s9 + $0x80] sm:$0xff] %vm750_vm3, %v4679_v32  ;;  %v4439_v6 = vmax.f32 %v4407_v0, 0.0  ;;  %v4369_v59 = vadd.f32 %v4296_v62, %v4036_v53  ;;  %v4039_v11 = vadd.f32 %v4038_v36, %v7525_v61  ;;  %v4605_v0 = vsel %vm659_vm1, %v4602_v27, %v4604_v54  ;;  %v4492_v27 = vld [vmem:[%s5527_s12 + $0x148] sm:$0x3]  ;;  %v4494_v54 = vld [vmem:[%s5527_s12 + $0x158] sm:$0xff] }
 0x59b   : > { %v4040_v7 = vpop.f32.mrf.mxu1  ;;  %v4298_v9 = vpop.f32.mrf.mxu0  ;;  %v4606_v62 = vrot.slane %v4487_v45, 1 }
 0x59c   : > { %v4680_v16 = vadd.f32 %v4595_v12, %v4439_v6  ;;  %v4408_v51 = vadd.f32 %v7583_v44, %v4369_v59  ;;  %v4489_v59 = vld [vmem:[%s5527_s12 + $0x130] sm:$0x3] }
 0x59d   : > { %v4043_v13 = vpop.f32.mrf.mxu1  ;;  %v4299_v39 = vpop.f32.mrf.mxu0 }
 0x59e   : > { %4712 = vst.msk [vmem:[%s5522_s9 + $0x88] sm:$0xff] %vm750_vm3, %v4680_v16  ;;  %v4440_v52 = vmax.f32 %v4408_v51, 0.0  ;;  %v4370_v48 = vadd.f32 %v4299_v39, %v4039_v11  ;;  %v4044_v61 = vadd.f32 %v4043_v13, %v7529_v31  ;;  %v4608_v11 = vsel %vm659_vm1, %v4606_v62, %v4607_v38 }
 0x59f   : > { %v4045_v57 = vpop.f32.mrf.mxu1  ;;  %v4301_v19 = vpop.f32.mrf.mxu0  ;;  %v4609_v13 = vrot.slane %v4489_v59, 1 }
 0x5a0   : > { %v4681_v56 = vadd.f32 %v4598_v33, %v4440_v52  ;;  %v4409_v35 = vadd.f32 %v7583_v44, %v4370_v48  ;;  %v4490_v52 = vld [vmem:[%s5527_s12 + $0x138] sm:$0xff]  ;;  %v4491_v48 = vld [vmem:[%s5527_s12 + $0x140] sm:$0xff] }
 0x5a1   : > { %v4046_v43 = vpop.f32.mrf.mxu1  ;;  %v4304_v2 = vpop.f32.mrf.mxu0 }
 0x5a2   : > { %4713 = vst.msk [vmem:[%s5522_s9 + $0x90] sm:$0xff] %vm750_vm3, %v4681_v56  ;;  %v4441_v63 = vmax.f32 %v4409_v35, 0.0  ;;  %v4371_v1 = vadd.f32 %v4304_v2, %v4044_v61  ;;  %v4047_v31 = vadd.f32 %v4046_v43, %v7533_v28  ;;  %v4610_v56 = vsel %vm659_vm1, %v4607_v38, %v4609_v13 }
 0x5a3   : > { %v4048_v18 = vpop.f32.mrf.mxu1  ;;  %v4306_v3 = vpop.f32.mrf.mxu0  ;;  %v4612_v43 = vrot.slane %v4491_v48, 1 }
 0x5a4   : > { %v4682_v50 = vadd.f32 %v4600_v21, %v4441_v63  ;;  %v4410_v20 = vadd.f32 %v7583_v44, %v4371_v1  ;;  %v4611_v21 = vrot.slane %v4490_v52, 1 }
 0x5a5   : > { %v4051_v34 = vpop.f32.mrf.mxu1  ;;  %v4307_v29 = vpop.f32.mrf.mxu0 }
 0x5a6   : > { %4714 = vst.msk [vmem:[%s5522_s9 + $0x98] sm:$0xff] %vm750_vm3, %v4682_v50  ;;  %v4442_v14 = vmax.f32 %v4410_v20, 0.0  ;;  %v4372_v25 = vadd.f32 %v4307_v29, %v4047_v31  ;;  %v4052_v28 = vadd.f32 %v4051_v34, %v7537_v58  ;;  %v4613_v3 = vsel %vm659_vm1, %v4611_v21, %v4612_v43  ;;  %v4493_v29 = vld [vmem:[%s5527_s12 + $0x150] sm:$0xff] }
 0x5a7   : > { %v4053_v46 = vpop.f32.mrf.mxu1  ;;  %v4309_v26 = vpop.f32.mrf.mxu0  ;;  %v4614_v20 = vrot.slane %v4492_v27, 1 }
 0x5a8   : > { %v4683_v32 = vadd.f32 %v4603_v42, %v4442_v14  ;;  %v4411_v53 = vadd.f32 %v7583_v44, %v4372_v25 }
 0x5a9   : > { %v4054_v12 = vpop.f32.mrf.mxu1  ;;  %v4312_v36 = vpop.f32.mrf.mxu0  ;;  %v4615_v46 = vsel %vm659_vm1, %v4612_v43, %v4614_v20 }
 0x5aa   : > { %4715 = vst.msk [vmem:[%s5522_s9 + $0xa0] sm:$0xff] %vm750_vm3, %v4683_v32  ;;  %v4443_v30 = vmax.f32 %v4411_v53, 0.0  ;;  %v4373_v6 = vadd.f32 %v4312_v36, %v4052_v28  ;;  %v4055_v58 = vadd.f32 %v4054_v12, %v7541_v60  ;;  %v4616_v28 = vrot.slane %v4493_v29, 1  ;;  %v4495_v36 = vld [vmem:[%s5527_s12 + $0x160] sm:$0x3] }
 0x5ab   : > { %v4056_v40 = vpop.f32.mrf.mxu1  ;;  %v4314_v7 = vpop.f32.mrf.mxu0  ;;  %v4617_v53 = vrot.slane %v4494_v54, 1 }
 0x5ac   : > { %v4684_v9 = vadd.f32 %v4605_v0, %v4443_v30  ;;  %v4412_v16 = vadd.f32 %v7583_v44, %v4373_v6 }
 0x5ad   : > { %v4059_v51 = vpop.f32.mrf.mxu1  ;;  %v4315_v33 = vpop.f32.mrf.mxu0  ;;  %v4618_v59 = vsel %vm659_vm1, %v4616_v28, %v4617_v53 }
 0x5ae   : > { %4716 = vst.msk [vmem:[%s5522_s9 + $0xa8] sm:$0xff] %vm750_vm3, %v4684_v9  ;;  %v4444_v39 = vmax.f32 %v4412_v16, 0.0  ;;  %v4374_v23 = vadd.f32 %v4315_v33, %v4055_v58  ;;  %v4060_v60 = vadd.f32 %v4059_v51, %v7545_v24  ;;  %v4619_v9 = vrot.slane %v4495_v36, 1  ;;  %v4497_v51 = vld [vmem:[%s5527_s12 + $0x170] sm:$0xff] }
 0x5af   : > { %v4061_v55 = vpop.f32.mrf.mxu1  ;;  %v4317_v41 = vpop.f32.mrf.mxu0 }
 0x5b0   : > { %v4685_v57 = vadd.f32 %v4608_v11, %v4444_v39  ;;  %v4413_v19 = vadd.f32 %v7583_v44, %v4374_v23  ;;  %v4496_v11 = vld [vmem:[%s5527_s12 + $0x168] sm:$0xff]  ;;  %v4620_v52 = vsel %vm659_vm1, %v4617_v53, %v4619_v9 }
 0x5b1   : > { %v4062_v61 = vpop.f32.mrf.mxu1  ;;  %v4320_v35 = vpop.f32.mrf.mxu0  ;;  %v4621_v41 = vrot.slane %v4496_v11, 1 }
 0x5b2   : > { %4717 = vst.msk [vmem:[%s5522_s9 + $0xb0] sm:$0xff] %vm750_vm3, %v4685_v57  ;;  %v4445_v2 = vmax.f32 %v4413_v19, 0.0  ;;  %v4375_v37 = vadd.f32 %v4320_v35, %v4060_v60  ;;  %v4063_v24 = vadd.f32 %v4062_v61, %v7549_v8  ;;  %v4622_v57 = vrot.slane %v4497_v51, 1 }
 0x5b3   : > { %v4064_v63 = vpop.f32.mrf.mxu1  ;;  %v4322_v1 = vpop.f32.mrf.mxu0 }
 0x5b4   : > { %v4686_v4 = vadd.f32 %v4610_v56, %v4445_v2  ;;  %v4414_v18 = vadd.f32 %v7583_v44, %v4375_v37  ;;  %v4498_v56 = vld [vmem:[%s5527_s12 + $0x178] sm:$0x3]  ;;  %v4623_v2 = vsel %vm659_vm1, %v4621_v41, %v4622_v57 }
 0x5b5   : > { %v4067_v50 = vpop.f32.mrf.mxu1  ;;  %v4323_v31 = vpop.f32.mrf.mxu0  ;;  %v4624_v63 = vrot.slane %v4498_v56, 1 }
 0x5b6   : > { %4718 = vst.msk [vmem:[%s5522_s9 + $0xb8] sm:$0xff] %vm750_vm3, %v4686_v4  ;;  %v4446_v42 = vmax.f32 %v4414_v18, 0.0  ;;  %v4376_v34 = vadd.f32 %v4323_v31, %v4063_v24  ;;  %v4068_v8 = vadd.f32 %v4067_v50, %v7553_v15  ;;  %v4499_v24 = vld [vmem:[%s5527_s12 + $0x180] sm:$0xff]  ;;  %v4500_v18 = vld [vmem:[%s5527_s12 + $0x188] sm:$0xff] }
 0x5b7   : > { %v4069_v14 = vpop.f32.mrf.mxu1  ;;  %v4325_v25 = vpop.f32.mrf.mxu0  ;;  %v4626_v54 = vrot.slane %v4499_v24, 1 }
 0x5b8   : > { %v4687_v45 = vadd.f32 %v4613_v3, %v4446_v42  ;;  %v4415_v22 = vadd.f32 %v7583_v44, %v4376_v34  ;;  %v4625_v42 = vsel %vm659_vm1, %v4622_v57, %v4624_v63  ;;  %v4627_v14 = vrot.slane %v4500_v18, 1 }
 0x5b9   : > { %v4070_v26 = vpop.f32.mrf.mxu1  ;;  %v4328_v32 = vpop.f32.mrf.mxu0 }
 0x5ba   : > { %4719 = vst.msk [vmem:[%s5522_s9 + $0xc0] sm:$0xff] %vm750_vm3, %v4687_v45  ;;  %v4447_v0 = vmax.f32 %v4415_v22, 0.0  ;;  %v4377_v12 = vadd.f32 %v4328_v32, %v4068_v8  ;;  %v4071_v15 = vadd.f32 %v4070_v26, %v7557_v10  ;;  %v4501_v8 = vld [vmem:[%s5527_s12 + $0x190] sm:$0x3]  ;;  %v4628_v28 = vsel %vm659_vm1, %v4626_v54, %v4627_v14 }
 0x5bb   : > { %v4072_v62 = vpop.f32.mrf.mxu1  ;;  %v4330_v38 = vpop.f32.mrf.mxu0 }
 0x5bc   : > { %v4688_v30 = vadd.f32 %v4615_v46, %v4447_v0  ;;  %v4416_v6 = vadd.f32 %v7583_v44, %v4377_v12  ;;  %v4629_v0 = vrot.slane %v4501_v8, 1 }
 0x5bd   : > { %v4075_v40 = vpop.f32.mrf.mxu1  ;;  %v4331_v7 = vpop.f32.mrf.mxu0 }
 0x5be   : > { %4720 = vst.msk [vmem:[%s5522_s9 + $0xc8] sm:$0xff] %vm750_vm3, %v4688_v30  ;;  %v4448_v58 = vmax.f32 %v4416_v6, 0.0  ;;  %v4378_v16 = vadd.f32 %v4331_v7, %v4071_v15  ;;  %v4076_v10 = vadd.f32 %v4075_v40, %v7561_v17  ;;  %v4630_v15 = vsel %vm659_vm1, %v4627_v14, %v4629_v0 }
 0x5bf   : > { %v4077_v33 = vpop.f32.mrf.mxu1  ;;  %v4333_v13 = vpop.f32.mrf.mxu0 }
 0x5c0   : > { %v4689_v39 = vadd.f32 %v4618_v59, %v4448_v58  ;;  %v4417_v23 = vadd.f32 %v7583_v44, %v4378_v16 }
 0x5c1   : > { %v4078_v48 = vpop.f32.mrf.mxu1  ;;  %v4336_v55 = vpop.f32.mrf.mxu0 }
 0x5c2   : > { %4721 = vst.msk [vmem:[%s5522_s9 + $0xd0] sm:$0xff] %vm750_vm3, %v4689_v39  ;;  %v4449_v60 = vmax.f32 %v4417_v23, 0.0  ;;  %v4379_v19 = vadd.f32 %v4336_v55, %v4076_v10  ;;  %v4079_v17 = vadd.f32 %v4078_v48, %v7565_v49 }
 0x5c3   : > { %v4080_v61 = vpop.f32.mrf.mxu1  ;;  %v4338_v35 = vpop.f32.mrf.mxu0 }
 0x5c4   : > { %v4690_v21 = vadd.f32 %v4620_v52, %v4449_v60  ;;  %v4418_v43 = vadd.f32 %v7583_v44, %v4379_v19 }
 0x5c5   : > { %v4083_v37 = vpop.f32.mrf.mxu1  ;;  %v4339_v27 = vpop.f32.mrf.mxu0 }
 0x5c6   : > { %4722 = vst.msk [vmem:[%s5522_s9 + $0xd8] sm:$0xff] %vm750_vm3, %v4690_v21  ;;  %v4450_v1 = vmax.f32 %v4418_v43, 0.0  ;;  %v4380_v4 = vadd.f32 %v4339_v27, %v4079_v17  ;;  %v4084_v49 = vadd.f32 %v4083_v37, %v7569_v47 }
 0x5c7   : > { %v4085_v3 = vpop.f32.mrf.mxu1  ;;  %v4341_v50 = vpop.f32.mrf.mxu0 }
 0x5c8   : > { %v4691_v31 = vadd.f32 %v4623_v2, %v4450_v1  ;;  %v4419_v20 = vadd.f32 %v7583_v44, %v4380_v4 }
 0x5c9   : > { %v4086_v34 = vpop.f32.mrf.mxu1  ;;  %v4344_v29 = vpop.f32.mrf.mxu0 }
 0x5ca   : > { %4723 = vst.msk [vmem:[%s5522_s9 + $0xe0] sm:$0xff] %vm750_vm3, %v4691_v31  ;;  %v4451_v25 = vmax.f32 %v4419_v20, 0.0  ;;  %v4381_v45 = vadd.f32 %v4344_v29, %v4084_v49  ;;  %v4087_v47 = vadd.f32 %v4086_v34, %v7573_v5 }
 0x5cb   : > { %v4088_v22 = vpop.f32.mrf.mxu1  ;;  %v4346_v46 = vpop.f32.mrf.mxu0 }
 0x5cc   : > { %v4692_v26 = vadd.f32 %v4625_v42, %v4451_v25  ;;  %v4420_v32 = vadd.f32 %v7583_v44, %v4381_v45 }
 0x5cd   : > { %v4347_v53 = vpop.f32.mrf.mxu0 }
 0x5ce   : > { %4724 = vst.msk [vmem:[%s5522_s9 + $0xe8] sm:$0xff] %vm750_vm3, %v4692_v26  ;;  %v4452_v12 = vmax.f32 %v4420_v32, 0.0  ;;  %v4382_v36 = vadd.f32 %v4347_v53, %v4087_v47 }
 0x5cf   : > { %v4349_v62 = vpop.f32.mrf.mxu0 }
 0x5d0   : > { %v4693_v38 = vadd.f32 %v4628_v28, %v4452_v12  ;;  %v4421_v30 = vadd.f32 %v7583_v44, %v4382_v36 }
 0x5d2   : > { %4725 = vst.msk [vmem:[%s5522_s9 + $0xf0] sm:$0xff] %vm750_vm3, %v4693_v38  ;;  %v4453_v6 = vmax.f32 %v4421_v30, 0.0 }
 0x5d4   : > { %v4694_v5 = vadd.f32 %v4630_v15, %v4453_v6 }
 0x5d6   : > { %4726 = vst.msk [vmem:[%s5522_s9 + $0xf8] sm:$0xff] %vm750_vm3, %v4694_v5 }
 0x5d7 PF: > { %s17_s24 = sadd.s32 1, %s5455_s24  }
 0x5d8   : > { %p14_p5 = scmp.ge.s32.totalorder %s17_s24, 4  }
 0x5da   :  { %16 = sbr.rel (!%p14_p5) target bundleno = 1 (0x1), region = 103 }

</bundles_post_ra>
